<compile_context>
chip_gen: v7x
topology: tpu7x:2x2x1
jax: 0.10.0
libtpu: 0.0.40
codegen_flags: <defaults>
</compile_context>

<pallas_src>
import functools

import jax
import jax.numpy as jnp
from jax.experimental import pallas as pl
from jax.experimental.pallas import tpu as pltpu


# ----------------------------------------------------------------------------- helpers
def _round_up(x, m):
    return ((x + m - 1) // m) * m


def _pad_rows(x, mp):
    m = x.shape[0]
    if mp == m:
        return x
    return jnp.pad(x, ((0, mp - m), (0, 0)))


# ----------------------------------------------------------------------------- kernels
def _mm_kernel(a_ref, b_ref, o_ref, acc_ref, *, activation):
    """K-tiled matmul: bf16 inputs, f32 accumulation. Optional fused tanh epilogue."""
    k = pl.program_id(1)

    @pl.when(k == 0)
    def _():
        acc_ref[...] = jnp.zeros_like(acc_ref)

    acc_ref[...] += jnp.dot(a_ref[...], b_ref[...], preferred_element_type=jnp.float32)

    @pl.when(k == pl.num_programs(1) - 1)
    def _():
        acc = acc_ref[...]
        if activation == "tanh":
            acc = jnp.tanh(acc)
        o_ref[...] = acc.astype(o_ref.dtype)


def _mm_stats_kernel(a_ref, b_ref, o_ref, s_ref, q_ref, acc_ref):
    """K-tiled matmul with fused per-channel sum / sumsq (per-M-tile partial) epilogue."""
    k = pl.program_id(1)

    @pl.when(k == 0)
    def _():
        acc_ref[...] = jnp.zeros_like(acc_ref)

    acc_ref[...] += jnp.dot(a_ref[...], b_ref[...], preferred_element_type=jnp.float32)

    @pl.when(k == pl.num_programs(1) - 1)
    def _():
        acc = acc_ref[...]
        o_ref[...] = acc.astype(o_ref.dtype)
        s = jnp.sum(acc, axis=0, keepdims=True)          # (1, N)
        q = jnp.sum(acc * acc, axis=0, keepdims=True)    # (1, N)
        s_ref[...] = jnp.broadcast_to(s, s_ref.shape)
        q_ref[...] = jnp.broadcast_to(q, q_ref.shape)


def _stats_kernel(x_ref, sum_ref, sq_ref):
    """Standalone per-channel sum / sumsq (only used for the tiny layer-0 activation)."""
    @pl.when(pl.program_id(0) == 0)
    def _():
        sum_ref[...] = jnp.zeros_like(sum_ref)
        sq_ref[...] = jnp.zeros_like(sq_ref)

    x = x_ref[...]
    sum_ref[...] += jnp.sum(x, axis=0, keepdims=True)
    sq_ref[...] += jnp.sum(x * x, axis=0, keepdims=True)


def _bn_relu_kernel(x_ref, scale_ref, shift_ref, o_ref):
    """Pre-folded BatchNorm + ReLU: y = max(x*scale + shift, 0)."""
    y = x_ref[...] * scale_ref[...] + shift_ref[...]
    o_ref[...] = jnp.maximum(y, 0.0).astype(o_ref.dtype)


# ----------------------------------------------------------------------------- wrappers
def pallas_matmul_fused(a, b, *, epilogue="none"):
    """a: (M, K), b: (K, N). Inputs cast to bf16, accumulate f32.
    epilogue: 'none' | 'tanh' | 'stats'.
      'stats' returns (out (M,N) f32, col_sum (N,) f32, col_sumsq (N,) f32),
      otherwise returns out (M, N) f32."""
    M, K = a.shape
    Kb, N = b.shape
    assert K == Kb
    a = a.astype(jnp.bfloat16)
    b = b.astype(jnp.bfloat16)

    tm = min(256, _round_up(M, 16))
    Mp = _round_up(M, tm)
    if K <= 1024:
        tk, Kp = K, K
    else:
        tk = 512
        Kp = _round_up(K, tk)

    if Mp != M:
        a = jnp.pad(a, ((0, Mp - M), (0, 0)))
    if Kp != K:
        a = jnp.pad(a, ((0, 0), (0, Kp - K)))
        b = jnp.pad(b, ((0, Kp - K), (0, 0)))
    gm, gk = Mp // tm, Kp // tk

    a_spec = pl.BlockSpec((tm, tk), lambda i, k: (i, k))
    b_spec = pl.BlockSpec((tk, N), lambda i, k: (k, 0))
    o_spec = pl.BlockSpec((tm, N), lambda i, k: (i, 0))

    flops = 2 * Mp * Kp * N
    bytes_acc = Mp * Kp * 2 + gm * Kp * N * 2 + Mp * N * 4
    vmem_needed = 2 * (tm * tk * 2 + tk * N * 2 + tm * N * 4 + 2 * 8 * N * 4) + tm * N * 4
    cparams = pltpu.CompilerParams(
        dimension_semantics=("parallel", "arbitrary"),
        vmem_limit_bytes=int(min(max(vmem_needed + (4 << 20), 16 << 20), 48 << 20)),
    )
    scratch = [pltpu.VMEM((tm, N), jnp.float32)]

    if epilogue == "stats":
        out, ps, pq = pl.pallas_call(
            _mm_stats_kernel,
            out_shape=(
                jax.ShapeDtypeStruct((Mp, N), jnp.float32),
                jax.ShapeDtypeStruct((gm * 8, N), jnp.float32),
                jax.ShapeDtypeStruct((gm * 8, N), jnp.float32),
            ),
            grid=(gm, gk),
            in_specs=[a_spec, b_spec],
            out_specs=[
                o_spec,
                pl.BlockSpec((8, N), lambda i, k: (i, 0)),
                pl.BlockSpec((8, N), lambda i, k: (i, 0)),
            ],
            scratch_shapes=scratch,
            compiler_params=cparams,
            cost_estimate=pl.CostEstimate(
                flops=flops, transcendentals=0, bytes_accessed=bytes_acc),
        )(a, b)
        col_sum = ps.reshape(gm, 8, N)[:, 0, :].sum(axis=0)
        col_sq = pq.reshape(gm, 8, N)[:, 0, :].sum(axis=0)
        return out[:M], col_sum, col_sq

    kern = functools.partial(_mm_kernel, activation=epilogue)
    out = pl.pallas_call(
        kern,
        out_shape=jax.ShapeDtypeStruct((Mp, N), jnp.float32),
        grid=(gm, gk),
        in_specs=[a_spec, b_spec],
        out_specs=o_spec,
        scratch_shapes=scratch,
        compiler_params=cparams,
        cost_estimate=pl.CostEstimate(
            flops=flops,
            transcendentals=(Mp * N if epilogue == "tanh" else 0),
            bytes_accessed=bytes_acc),
    )(a, b)
    return out[:M]


def pallas_stats(x):
    """x: (M, C) f32 -> per-channel (sum, sumsq), each (C,). Serial reduction grid."""
    M, C = x.shape
    tm = min(1024, _round_up(M, 8))
    Mp = _round_up(M, tm)
    xp = _pad_rows(x, Mp)  # zero rows do not perturb sum / sumsq
    s, q = pl.pallas_call(
        _stats_kernel,
        out_shape=(
            jax.ShapeDtypeStruct((1, C), jnp.float32),
            jax.ShapeDtypeStruct((1, C), jnp.float32),
        ),
        grid=(Mp // tm,),
        in_specs=[pl.BlockSpec((tm, C), lambda i: (i, 0))],
        out_specs=[
            pl.BlockSpec((1, C), lambda i: (0, 0)),
            pl.BlockSpec((1, C), lambda i: (0, 0)),
        ],
        compiler_params=pltpu.CompilerParams(dimension_semantics=("arbitrary",)),
    )(xp)
    return s[0], q[0]


def pallas_scale_shift_relu(x, scale, shift, out_dtype=jnp.bfloat16):
    """x: (M, C) f32; scale/shift: (1, C) f32 -> max(x*scale+shift, 0) in out_dtype."""
    M, C = x.shape
    tm = min(1024, _round_up(M, 16))
    Mp = _round_up(M, tm)
    xp = _pad_rows(x, Mp)
    y = pl.pallas_call(
        _bn_relu_kernel,
        out_shape=jax.ShapeDtypeStruct((Mp, C), out_dtype),
        grid=(Mp // tm,),
        in_specs=[
            pl.BlockSpec((tm, C), lambda i: (i, 0)),
            pl.BlockSpec((1, C), lambda i: (0, 0)),
            pl.BlockSpec((1, C), lambda i: (0, 0)),
        ],
        out_specs=pl.BlockSpec((tm, C), lambda i: (i, 0)),
        compiler_params=pltpu.CompilerParams(dimension_semantics=("parallel",)),
    )(xp, scale, shift)
    return y[:M]


# ----------------------------------------------------------------------------- BN folding
def _bn_fold(total_sum, total_sq, count, gamma, beta, eps=1e-5):
    """Training-mode BatchNorm (biased variance) folded to per-channel scale/shift."""
    mean = total_sum / count
    var = jnp.maximum(total_sq / count - mean * mean, 0.0)   # clamp cancellation
    invstd = jax.lax.rsqrt(var + eps)
    scale = gamma * invstd
    shift = beta - mean * scale
    return (scale.reshape(1, -1).astype(jnp.float32),
            shift.reshape(1, -1).astype(jnp.float32))


# ----------------------------------------------------------------------------- conv-transpose glue
# ConvTranspose2d(k=4, s=2, p=1): out[o] = sum x[i] w[k] with o = 2i - 1 + k.
# Output phase r in {0 (even), 1 (odd)} per dimension needs 2 taps of the (1-padded) input:
#   (slice start in padded input, kernel index) for d in {0, 1}:
_PHASE_TAPS = {0: ((1, 1), (0, 3)),
               1: ((2, 0), (1, 2))}


def _phase_operands(xp, w_bf16, ry, rx, H, W):
    """Build the (N*H*W, 4*Cin) patch matrix and (4*Cin, Cout) weight matrix for one phase."""
    cols, wrows = [], []
    for (sy, ky) in _PHASE_TAPS[ry]:
        for (sx, kx) in _PHASE_TAPS[rx]:
            cols.append(xp[:, sy:sy + H, sx:sx + W, :])   # (N, H, W, Cin)
            wrows.append(w_bf16[:, :, ky, kx])            # (Cin, Cout)
    Nb, Cin = xp.shape[0], xp.shape[-1]
    a = jnp.stack(cols, axis=3).reshape(Nb * H * W, 4 * Cin)
    wm = jnp.stack(wrows, axis=0).reshape(4 * Cin, -1)
    return a, wm


def _interleave_phases(phases, Nb, H, W, C):
    """phases in order (ry,rx) = (0,0),(0,1),(1,0),(1,1), each (Nb,H,W,C) -> (Nb,2H,2W,C)."""
    stacked = jnp.stack(phases, axis=3).reshape(Nb, H, W, 2, 2, C)
    return stacked.transpose(0, 1, 3, 2, 4, 5).reshape(Nb, 2 * H, 2 * W, C)


def conv_t_s2_bn_relu(x, w, gamma, beta, eps=1e-5):
    """x: (N,H,W,Cin) bf16; w: (Cin,Cout,4,4) f32.
    ConvTranspose2d(4,2,1,no bias) + BatchNorm2d(train) + ReLU -> (N,2H,2W,Cout) bf16."""
    Nb, H, W_, Cin = x.shape
    Cout = w.shape[1]
    xp = jnp.pad(x, ((0, 0), (1, 1), (1, 1), (0, 0)))
    wb = w.astype(jnp.bfloat16)

    phase_out = []
    tot_s = jnp.zeros((Cout,), jnp.float32)
    tot_q = jnp.zeros((Cout,), jnp.float32)
    for ry in (0, 1):
        for rx in (0, 1):
            a, wm = _phase_operands(xp, wb, ry, rx, H, W_)
            o, s, q = pallas_matmul_fused(a, wm, epilogue="stats")
            phase_out.append(o)
            tot_s = tot_s + s
            tot_q = tot_q + q

    count = float(Nb * 4 * H * W_)   # = N * (2H) * (2W)
    scale, shift = _bn_fold(tot_s, tot_q, count, gamma, beta, eps)

    normed = [pallas_scale_shift_relu(o, scale, shift, jnp.bfloat16).reshape(Nb, H, W_, Cout)
              for o in phase_out]
    return _interleave_phases(normed, Nb, H, W_, Cout)


def conv_t_s2_tanh(x, w, lane_pad=128):
    """Final ConvTranspose2d(4,2,1) + Tanh (fused in the matmul epilogue), lane-dense output."""
    Nb, H, W_, Cin = x.shape
    Cout = w.shape[1]
    Cp = max(Cout, lane_pad)
    xp = jnp.pad(x, ((0, 0), (1, 1), (1, 1), (0, 0)))
    wb = w.astype(jnp.bfloat16)

    phases = []
    for ry in (0, 1):
        for rx in (0, 1):
            a, wm = _phase_operands(xp, wb, ry, rx, H, W_)
            if Cp != Cout:
                wm = jnp.pad(wm, ((0, 0), (0, Cp - Cout)))   # zero-pad channels -> lane-dense
            o = pallas_matmul_fused(a, wm, epilogue="tanh")  # (M, Cp) f32
            phases.append(o[:, :Cout].reshape(Nb, H, W_, Cout))
    return _interleave_phases(phases, Nb, H, W_, Cout)


def conv_t_l0_bn_relu(z, w, gamma, beta, eps=1e-5):
    """Layer 0: ConvTranspose2d(4,1,0) on a 1x1 latent == (N,Cin)@(Cin,16*Cout), + BN + ReLU."""
    Nb, Cin = z.shape
    Cout = w.shape[1]
    w_mat = jnp.transpose(w, (0, 2, 3, 1)).reshape(Cin, 16 * Cout)   # cols = (ky, kx, cout)
    o = pallas_matmul_fused(z, w_mat, epilogue="none")               # (Nb, 16*Cout) f32
    flat = o.reshape(Nb * 16, Cout)
    s, q = pallas_stats(flat)
    scale, shift = _bn_fold(s, q, float(Nb * 16), gamma, beta, eps)
    y = pallas_scale_shift_relu(flat, scale, shift, jnp.bfloat16)
    return y.reshape(Nb, 4, 4, Cout)


# ----------------------------------------------------------------------------- Generator
def init_generator_params(key, size_fm=64, size_z=100, channel_size=3):
    chans = [size_z, size_fm * 8, size_fm * 4, size_fm * 2, size_fm, channel_size]
    params = {}
    for li in range(5):
        key, sub = jax.random.split(key)
        cin, cout = chans[li], chans[li + 1]
        # deterministic synthetic init (~ DCGAN-style N(0, 0.02)); PyTorch layout (Cin, Cout, KH, KW)
        params[f"w{li}"] = 0.02 * jax.random.normal(sub, (cin, cout, 4, 4), jnp.float32)
        if li < 4:
            params[f"gamma{li}"] = jnp.ones((cout,), jnp.float32)
            params[f"beta{li}"] = jnp.zeros((cout,), jnp.float32)
    return params


@jax.jit
def generator_forward(x_nchw, params):
    """x_nchw: (N, size_z, 1, 1) -> (N, channel_size, 64, 64), matching the PyTorch module."""
    assert x_nchw.shape[2] == 1 and x_nchw.shape[3] == 1, "DCGAN generator expects 1x1 latent"
    Nb = x_nchw.shape[0]
    z = x_nchw.reshape(Nb, x_nchw.shape[1]).astype(jnp.float32)

    x = conv_t_l0_bn_relu(z, params["w0"], params["gamma0"], params["beta0"])
    for li in (1, 2, 3):
        x = conv_t_s2_bn_relu(x, params[f"w{li}"], params[f"gamma{li}"], params[f"beta{li}"])
    x = conv_t_s2_tanh(x, params["w4"])
    return jnp.transpose(x, (0, 3, 1, 2)).astype(jnp.float32)   # NHWC -> NCHW


if __name__ == "__main__":
    # Small shapes consistent with the module: DCGAN latent (N, size_z, 1, 1).
    size_fm, size_z, channel_size = 8, 16, 3
    batch = 2

    key = jax.random.PRNGKey(0)
    kp, kx = jax.random.split(key)
    params = init_generator_params(kp, size_fm=size_fm, size_z=size_z, channel_size=channel_size)
    z = jax.random.normal(kx, (batch, size_z, 1, 1), jnp.float32)

    out = generator_forward(z, params)
    out = jax.block_until_ready(out)

    assert out.shape == (batch, channel_size, 64, 64), out.shape
    assert bool(jnp.all(jnp.isfinite(out)))
    assert bool(jnp.all(jnp.abs(out) <= 1.0))  # tanh output range
    print("KERNEL_OK")
</pallas_src>

<mosaic_0001>
module attributes {stable_mosaic.version = 11 : i64} {
  func.func @_mm_kernel(%arg0: i32, %arg1: i32, %arg2: memref<16x16xbf16, #tpu.memory_space<vmem>>, %arg3: memref<16x1024xbf16, #tpu.memory_space<vmem>>, %arg4: memref<16x1024xf32, #tpu.memory_space<vmem>>, %arg5: memref<16x1024xf32, #tpu.memory_space<vmem>>) attributes {dimension_semantics = [#tpu.dimension_semantics<parallel>, #tpu.dimension_semantics<arbitrary>], iteration_bounds = array<i64: 1, 1>, scalar_prefetch = 0 : i64, scratch_operands = 1 : i64, tpu.core_type = #tpu.core_type<tc>, window_params = [{transform_indices = @transform_0, window_bounds = array<i64: 16, 16>}, {transform_indices = @transform_1, window_bounds = array<i64: 16, 1024>}, {transform_indices = @transform_2, window_bounds = array<i64: 16, 1024>}]} {
    %c0_i32 = arith.constant 0 : i32
    %0 = arith.cmpi eq, %arg1, %c0_i32 : i32
    %1 = arith.extui %0 : i1 to i32
    %c0_i32_0 = arith.constant 0 : i32
    %2 = arith.cmpi ne, %1, %c0_i32_0 : i32
    scf.if %2 {
      %cst_10 = arith.constant 0.000000e+00 : f32
      %12 = vector.broadcast %cst_10 : f32 to vector<16x1024xf32>
      %c0_11 = arith.constant 0 : index
      %c0_12 = arith.constant 0 : index
      %13 = vector.load %arg5[%c0_11, %c0_12] : memref<16x1024xf32, #tpu.memory_space<vmem>>, vector<16x1024xf32>
      tpu.vector_store %arg5[%c0_11, %c0_12], %12 {strides = array<i32>} : memref<16x1024xf32, #tpu.memory_space<vmem>>, vector<16x1024xf32>,
    } else {
    }
    %c0 = arith.constant 0 : index
    %c0_1 = arith.constant 0 : index
    %3 = vector.load %arg5[%c0, %c0_1] : memref<16x1024xf32, #tpu.memory_space<vmem>>, vector<16x1024xf32>
    %c0_2 = arith.constant 0 : index
    %c0_3 = arith.constant 0 : index
    %4 = vector.load %arg2[%c0_2, %c0_3] : memref<16x16xbf16, #tpu.memory_space<vmem>>, vector<16x16xbf16>
    %c0_4 = arith.constant 0 : index
    %c0_5 = arith.constant 0 : index
    %5 = vector.load %arg3[%c0_4, %c0_5] : memref<16x1024xbf16, #tpu.memory_space<vmem>>, vector<16x1024xbf16>
    %cst = arith.constant dense<0.000000e+00> : vector<16x1024xf32>
    %6 = tpu.matmul %4, %5, %cst {dimension_numbers = #tpu.dot_dimension_numbers<[1], [0], [0], [1], [0, 0, 1, 1], [], []>} : vector<16x16xbf16>, vector<16x1024xbf16>, vector<16x1024xf32> -> vector<16x1024xf32>
    %7 = arith.addf %3, %6 : vector<16x1024xf32>
    %c0_6 = arith.constant 0 : index
    %c0_7 = arith.constant 0 : index
    %8 = vector.load %arg5[%c0_6, %c0_7] : memref<16x1024xf32, #tpu.memory_space<vmem>>, vector<16x1024xf32>
    tpu.vector_store %arg5[%c0_6, %c0_7], %7 {strides = array<i32>} : memref<16x1024xf32, #tpu.memory_space<vmem>>, vector<16x1024xf32>,
    %c0_i32_8 = arith.constant 0 : i32
    %9 = arith.cmpi eq, %arg1, %c0_i32_8 : i32
    %10 = arith.extui %9 : i1 to i32
    %c0_i32_9 = arith.constant 0 : i32
    %11 = arith.cmpi ne, %10, %c0_i32_9 : i32
    scf.if %11 {
      %c0_10 = arith.constant 0 : index
      %c0_11 = arith.constant 0 : index
      %12 = vector.load %arg5[%c0_10, %c0_11] : memref<16x1024xf32, #tpu.memory_space<vmem>>, vector<16x1024xf32>
      %c0_12 = arith.constant 0 : index
      %c0_13 = arith.constant 0 : index
      %13 = vector.load %arg4[%c0_12, %c0_13] : memref<16x1024xf32, #tpu.memory_space<vmem>>, vector<16x1024xf32>
      tpu.vector_store %arg4[%c0_12, %c0_13], %12 {strides = array<i32>} : memref<16x1024xf32, #tpu.memory_space<vmem>>, vector<16x1024xf32>,
    } else {
    }
    return
  }
  func.func @transform_0(%arg0: i32, %arg1: i32) -> (i32, i32) {
    %c0_i32 = arith.constant 0 : i32
    return %arg0, %arg1 : i32, i32
  }
  func.func @transform_1(%arg0: i32, %arg1: i32) -> (i32, i32) {
    %c0_i32 = arith.constant 0 : i32
    %c0_i32_0 = arith.constant 0 : i32
    return %arg1, %c0_i32 : i32, i32
  }
  func.func @transform_2(%arg0: i32, %arg1: i32) -> (i32, i32) {
    %c0_i32 = arith.constant 0 : i32
    %c0_i32_0 = arith.constant 0 : i32
    return %arg0, %c0_i32 : i32, i32
  }
}

module attributes {stable_mosaic.version = 11 : i64} {
  func.func @_stats_kernel(%arg0: i32, %arg1: memref<32x64xf32, #tpu.memory_space<vmem>>, %arg2: memref<1x64xf32, #tpu.memory_space<vmem>>, %arg3: memref<1x64xf32, #tpu.memory_space<vmem>>) attributes {dimension_semantics = [#tpu.dimension_semantics<arbitrary>], iteration_bounds = array<i64: 1>, scalar_prefetch = 0 : i64, scratch_operands = 0 : i64, tpu.core_type = #tpu.core_type<tc>, window_params = [{transform_indices = @transform_0, window_bounds = array<i64: 32, 64>}, {pipeline_mode = #tpu.pipeline_mode<synchronous>, transform_indices = @transform_1, window_bounds = array<i64: 1, 64>}, {pipeline_mode = #tpu.pipeline_mode<synchronous>, transform_indices = @transform_2, window_bounds = array<i64: 1, 64>}]} {
    %c0_i32 = arith.constant 0 : i32
    %0 = arith.cmpi eq, %arg0, %c0_i32 : i32
    %1 = arith.extui %0 : i1 to i32
    %c0_i32_0 = arith.constant 0 : i32
    %2 = arith.cmpi ne, %1, %c0_i32_0 : i32
    scf.if %2 {
      %cst_11 = arith.constant 0.000000e+00 : f32
      %15 = vector.broadcast %cst_11 : f32 to vector<1x64xf32>
      %c0_12 = arith.constant 0 : index
      %c0_13 = arith.constant 0 : index
      %16 = vector.load %arg2[%c0_12, %c0_13] : memref<1x64xf32, #tpu.memory_space<vmem>>, vector<1x64xf32>
      tpu.vector_store %arg2[%c0_12, %c0_13], %15 {strides = array<i32>} : memref<1x64xf32, #tpu.memory_space<vmem>>, vector<1x64xf32>,
      %cst_14 = arith.constant 0.000000e+00 : f32
      %17 = vector.broadcast %cst_14 : f32 to vector<1x64xf32>
      %c0_15 = arith.constant 0 : index
      %c0_16 = arith.constant 0 : index
      %18 = vector.load %arg3[%c0_15, %c0_16] : memref<1x64xf32, #tpu.memory_space<vmem>>, vector<1x64xf32>
      tpu.vector_store %arg3[%c0_15, %c0_16], %17 {strides = array<i32>} : memref<1x64xf32, #tpu.memory_space<vmem>>, vector<1x64xf32>,
    } else {
    }
    %c0 = arith.constant 0 : index
    %c0_1 = arith.constant 0 : index
    %3 = vector.load %arg1[%c0, %c0_1] : memref<32x64xf32, #tpu.memory_space<vmem>>, vector<32x64xf32>
    %c0_2 = arith.constant 0 : index
    %c0_3 = arith.constant 0 : index
    %4 = vector.load %arg2[%c0_2, %c0_3] : memref<1x64xf32, #tpu.memory_space<vmem>>, vector<1x64xf32>
    %cst = arith.constant dense<0.000000e+00> : vector<64xf32>
    %5 = vector.multi_reduction <add>, %3, %cst [0] : vector<32x64xf32> to vector<64xf32>
    %6 = vector.shape_cast %5 : vector<64xf32> to vector<1x64xf32>
    %7 = arith.addf %4, %6 : vector<1x64xf32>
    %c0_4 = arith.constant 0 : index
    %c0_5 = arith.constant 0 : index
    %8 = vector.load %arg2[%c0_4, %c0_5] : memref<1x64xf32, #tpu.memory_space<vmem>>, vector<1x64xf32>
    tpu.vector_store %arg2[%c0_4, %c0_5], %7 {strides = array<i32>} : memref<1x64xf32, #tpu.memory_space<vmem>>, vector<1x64xf32>,
    %c0_6 = arith.constant 0 : index
    %c0_7 = arith.constant 0 : index
    %9 = vector.load %arg3[%c0_6, %c0_7] : memref<1x64xf32, #tpu.memory_space<vmem>>, vector<1x64xf32>
    %10 = arith.mulf %3, %3 : vector<32x64xf32>
    %cst_8 = arith.constant dense<0.000000e+00> : vector<64xf32>
    %11 = vector.multi_reduction <add>, %10, %cst_8 [0] : vector<32x64xf32> to vector<64xf32>
    %12 = vector.shape_cast %11 : vector<64xf32> to vector<1x64xf32>
    %13 = arith.addf %9, %12 : vector<1x64xf32>
    %c0_9 = arith.constant 0 : index
    %c0_10 = arith.constant 0 : index
    %14 = vector.load %arg3[%c0_9, %c0_10] : memref<1x64xf32, #tpu.memory_space<vmem>>, vector<1x64xf32>
    tpu.vector_store %arg3[%c0_9, %c0_10], %13 {strides = array<i32>} : memref<1x64xf32, #tpu.memory_space<vmem>>, vector<1x64xf32>,
    return
  }
  func.func @transform_0(%arg0: i32) -> (i32, i32) {
    %c0_i32 = arith.constant 0 : i32
    %c0_i32_0 = arith.constant 0 : i32
    return %arg0, %c0_i32 : i32, i32
  }
  func.func @transform_1(%arg0: i32) -> (i32, i32) {
    %c0_i32 = arith.constant 0 : i32
    %c0_i32_0 = arith.constant 0 : i32
    %c0_i32_1 = arith.constant 0 : i32
    return %c0_i32, %c0_i32_0 : i32, i32
  }
  func.func @transform_2(%arg0: i32) -> (i32, i32) {
    %c0_i32 = arith.constant 0 : i32
    %c0_i32_0 = arith.constant 0 : i32
    %c0_i32_1 = arith.constant 0 : i32
    return %c0_i32, %c0_i32_0 : i32, i32
  }
}

module attributes {stable_mosaic.version = 11 : i64} {
  func.func @_bn_relu_kernel(%arg0: i32, %arg1: memref<32x64xf32, #tpu.memory_space<vmem>>, %arg2: memref<1x64xf32, #tpu.memory_space<vmem>>, %arg3: memref<1x64xf32, #tpu.memory_space<vmem>>, %arg4: memref<32x64xbf16, #tpu.memory_space<vmem>>) attributes {dimension_semantics = [#tpu.dimension_semantics<parallel>], iteration_bounds = array<i64: 1>, scalar_prefetch = 0 : i64, scratch_operands = 0 : i64, tpu.core_type = #tpu.core_type<tc>, window_params = [{transform_indices = @transform_0, window_bounds = array<i64: 32, 64>}, {pipeline_mode = #tpu.pipeline_mode<synchronous>, transform_indices = @transform_1, window_bounds = array<i64: 1, 64>}, {pipeline_mode = #tpu.pipeline_mode<synchronous>, transform_indices = @transform_2, window_bounds = array<i64: 1, 64>}, {transform_indices = @transform_3, window_bounds = array<i64: 32, 64>}]} {
    %c0 = arith.constant 0 : index
    %c0_0 = arith.constant 0 : index
    %0 = vector.load %arg1[%c0, %c0_0] : memref<32x64xf32, #tpu.memory_space<vmem>>, vector<32x64xf32>
    %c0_1 = arith.constant 0 : index
    %c0_2 = arith.constant 0 : index
    %1 = vector.load %arg2[%c0_1, %c0_2] : memref<1x64xf32, #tpu.memory_space<vmem>>, vector<1x64xf32>
    %2 = vector.broadcast %1 : vector<1x64xf32> to vector<32x64xf32>
    %3 = arith.mulf %0, %2 : vector<32x64xf32>
    %c0_3 = arith.constant 0 : index
    %c0_4 = arith.constant 0 : index
    %4 = vector.load %arg3[%c0_3, %c0_4] : memref<1x64xf32, #tpu.memory_space<vmem>>, vector<1x64xf32>
    %5 = vector.broadcast %4 : vector<1x64xf32> to vector<32x64xf32>
    %6 = arith.addf %3, %5 : vector<32x64xf32>
    %cst = arith.constant 0.000000e+00 : f32
    %7 = vector.broadcast %cst : f32 to vector<32x64xf32>
    %8 = arith.maximumf %6, %7 : vector<32x64xf32>
    %9 = arith.truncf %8 : vector<32x64xf32> to vector<32x64xbf16>
    %c0_5 = arith.constant 0 : index
    %c0_6 = arith.constant 0 : index
    %10 = vector.load %arg4[%c0_5, %c0_6] : memref<32x64xbf16, #tpu.memory_space<vmem>>, vector<32x64xbf16>
    tpu.vector_store %arg4[%c0_5, %c0_6], %9 {strides = array<i32>} : memref<32x64xbf16, #tpu.memory_space<vmem>>, vector<32x64xbf16>,
    return
  }
  func.func @transform_0(%arg0: i32) -> (i32, i32) {
    %c0_i32 = arith.constant 0 : i32
    %c0_i32_0 = arith.constant 0 : i32
    return %arg0, %c0_i32 : i32, i32
  }
  func.func @transform_1(%arg0: i32) -> (i32, i32) {
    %c0_i32 = arith.constant 0 : i32
    %c0_i32_0 = arith.constant 0 : i32
    %c0_i32_1 = arith.constant 0 : i32
    return %c0_i32, %c0_i32_0 : i32, i32
  }
  func.func @transform_2(%arg0: i32) -> (i32, i32) {
    %c0_i32 = arith.constant 0 : i32
    %c0_i32_0 = arith.constant 0 : i32
    %c0_i32_1 = arith.constant 0 : i32
    return %c0_i32, %c0_i32_0 : i32, i32
  }
  func.func @transform_3(%arg0: i32) -> (i32, i32) {
    %c0_i32 = arith.constant 0 : i32
    %c0_i32_0 = arith.constant 0 : i32
    return %arg0, %c0_i32 : i32, i32
  }
}

module attributes {stable_mosaic.version = 11 : i64} {
  func.func @_mm_stats_kernel(%arg0: i32, %arg1: i32, %arg2: memref<32x256xbf16, #tpu.memory_space<vmem>>, %arg3: memref<256x32xbf16, #tpu.memory_space<vmem>>, %arg4: memref<32x32xf32, #tpu.memory_space<vmem>>, %arg5: memref<8x32xf32, #tpu.memory_space<vmem>>, %arg6: memref<8x32xf32, #tpu.memory_space<vmem>>, %arg7: memref<32x32xf32, #tpu.memory_space<vmem>>) attributes {dimension_semantics = [#tpu.dimension_semantics<parallel>, #tpu.dimension_semantics<arbitrary>], iteration_bounds = array<i64: 1, 1>, scalar_prefetch = 0 : i64, scratch_operands = 1 : i64, tpu.core_type = #tpu.core_type<tc>, window_params = [{transform_indices = @transform_0, window_bounds = array<i64: 32, 256>}, {transform_indices = @transform_1, window_bounds = array<i64: 256, 32>}, {transform_indices = @transform_2, window_bounds = array<i64: 32, 32>}, {transform_indices = @transform_3, window_bounds = array<i64: 8, 32>}, {transform_indices = @transform_4, window_bounds = array<i64: 8, 32>}]} {
    %c0_i32 = arith.constant 0 : i32
    %0 = arith.cmpi eq, %arg1, %c0_i32 : i32
    %1 = arith.extui %0 : i1 to i32
    %c0_i32_0 = arith.constant 0 : i32
    %2 = arith.cmpi ne, %1, %c0_i32_0 : i32
    scf.if %2 {
      %cst_10 = arith.constant 0.000000e+00 : f32
      %12 = vector.broadcast %cst_10 : f32 to vector<32x32xf32>
      %c0_11 = arith.constant 0 : index
      %c0_12 = arith.constant 0 : index
      %13 = vector.load %arg7[%c0_11, %c0_12] : memref<32x32xf32, #tpu.memory_space<vmem>>, vector<32x32xf32>
      tpu.vector_store %arg7[%c0_11, %c0_12], %12 {strides = array<i32>} : memref<32x32xf32, #tpu.memory_space<vmem>>, vector<32x32xf32>,
    } else {
    }
    %c0 = arith.constant 0 : index
    %c0_1 = arith.constant 0 : index
    %3 = vector.load %arg7[%c0, %c0_1] : memref<32x32xf32, #tpu.memory_space<vmem>>, vector<32x32xf32>
    %c0_2 = arith.constant 0 : index
    %c0_3 = arith.constant 0 : index
    %4 = vector.load %arg2[%c0_2, %c0_3] : memref<32x256xbf16, #tpu.memory_space<vmem>>, vector<32x256xbf16>
    %c0_4 = arith.constant 0 : index
    %c0_5 = arith.constant 0 : index
    %5 = vector.load %arg3[%c0_4, %c0_5] : memref<256x32xbf16, #tpu.memory_space<vmem>>, vector<256x32xbf16>
    %cst = arith.constant dense<0.000000e+00> : vector<32x32xf32>
    %6 = tpu.matmul %4, %5, %cst {dimension_numbers = #tpu.dot_dimension_numbers<[1], [0], [0], [1], [0, 0, 1, 1], [], []>} : vector<32x256xbf16>, vector<256x32xbf16>, vector<32x32xf32> -> vector<32x32xf32>
    %7 = arith.addf %3, %6 : vector<32x32xf32>
    %c0_6 = arith.constant 0 : index
    %c0_7 = arith.constant 0 : index
    %8 = vector.load %arg7[%c0_6, %c0_7] : memref<32x32xf32, #tpu.memory_space<vmem>>, vector<32x32xf32>
    tpu.vector_store %arg7[%c0_6, %c0_7], %7 {strides = array<i32>} : memref<32x32xf32, #tpu.memory_space<vmem>>, vector<32x32xf32>,
    %c0_i32_8 = arith.constant 0 : i32
    %9 = arith.cmpi eq, %arg1, %c0_i32_8 : i32
    %10 = arith.extui %9 : i1 to i32
    %c0_i32_9 = arith.constant 0 : i32
    %11 = arith.cmpi ne, %10, %c0_i32_9 : i32
    scf.if %11 {
      %c0_10 = arith.constant 0 : index
      %c0_11 = arith.constant 0 : index
      %12 = vector.load %arg7[%c0_10, %c0_11] : memref<32x32xf32, #tpu.memory_space<vmem>>, vector<32x32xf32>
      %c0_12 = arith.constant 0 : index
      %c0_13 = arith.constant 0 : index
      %13 = vector.load %arg4[%c0_12, %c0_13] : memref<32x32xf32, #tpu.memory_space<vmem>>, vector<32x32xf32>
      tpu.vector_store %arg4[%c0_12, %c0_13], %12 {strides = array<i32>} : memref<32x32xf32, #tpu.memory_space<vmem>>, vector<32x32xf32>,
      %cst_14 = arith.constant dense<0.000000e+00> : vector<32xf32>
      %14 = vector.multi_reduction <add>, %12, %cst_14 [0] : vector<32x32xf32> to vector<32xf32>
      %15 = vector.shape_cast %14 : vector<32xf32> to vector<1x32xf32>
      %16 = arith.mulf %12, %12 : vector<32x32xf32>
      %cst_15 = arith.constant dense<0.000000e+00> : vector<32xf32>
      %17 = vector.multi_reduction <add>, %16, %cst_15 [0] : vector<32x32xf32> to vector<32xf32>
      %18 = vector.shape_cast %17 : vector<32xf32> to vector<1x32xf32>
      %19 = vector.shape_cast %15 : vector<1x32xf32> to vector<1x32xf32>
      %20 = vector.broadcast %19 : vector<1x32xf32> to vector<8x32xf32>
      %c0_16 = arith.constant 0 : index
      %c0_17 = arith.constant 0 : index
      %21 = vector.load %arg5[%c0_16, %c0_17] : memref<8x32xf32, #tpu.memory_space<vmem>>, vector<8x32xf32>
      tpu.vector_store %arg5[%c0_16, %c0_17], %20 {strides = array<i32>} : memref<8x32xf32, #tpu.memory_space<vmem>>, vector<8x32xf32>,
      %22 = vector.shape_cast %18 : vector<1x32xf32> to vector<1x32xf32>
      %23 = vector.broadcast %22 : vector<1x32xf32> to vector<8x32xf32>
      %c0_18 = arith.constant 0 : index
      %c0_19 = arith.constant 0 : index
      %24 = vector.load %arg6[%c0_18, %c0_19] : memref<8x32xf32, #tpu.memory_space<vmem>>, vector<8x32xf32>
      tpu.vector_store %arg6[%c0_18, %c0_19], %23 {strides = array<i32>} : memref<8x32xf32, #tpu.memory_space<vmem>>, vector<8x32xf32>,
    } else {
    }
    return
  }
  func.func @transform_0(%arg0: i32, %arg1: i32) -> (i32, i32) {
    %c0_i32 = arith.constant 0 : i32
    return %arg0, %arg1 : i32, i32
  }
  func.func @transform_1(%arg0: i32, %arg1: i32) -> (i32, i32) {
    %c0_i32 = arith.constant 0 : i32
    %c0_i32_0 = arith.constant 0 : i32
    return %arg1, %c0_i32 : i32, i32
  }
  func.func @transform_2(%arg0: i32, %arg1: i32) -> (i32, i32) {
    %c0_i32 = arith.constant 0 : i32
    %c0_i32_0 = arith.constant 0 : i32
    return %arg0, %c0_i32 : i32, i32
  }
  func.func @transform_3(%arg0: i32, %arg1: i32) -> (i32, i32) {
    %c0_i32 = arith.constant 0 : i32
    %c0_i32_0 = arith.constant 0 : i32
    return %arg0, %c0_i32 : i32, i32
  }
  func.func @transform_4(%arg0: i32, %arg1: i32) -> (i32, i32) {
    %c0_i32 = arith.constant 0 : i32
    %c0_i32_0 = arith.constant 0 : i32
    return %arg0, %c0_i32 : i32, i32
  }
}

module attributes {stable_mosaic.version = 11 : i64} {
  func.func @_bn_relu_kernel(%arg0: i32, %arg1: memref<32x32xf32, #tpu.memory_space<vmem>>, %arg2: memref<1x32xf32, #tpu.memory_space<vmem>>, %arg3: memref<1x32xf32, #tpu.memory_space<vmem>>, %arg4: memref<32x32xbf16, #tpu.memory_space<vmem>>) attributes {dimension_semantics = [#tpu.dimension_semantics<parallel>], iteration_bounds = array<i64: 1>, scalar_prefetch = 0 : i64, scratch_operands = 0 : i64, tpu.core_type = #tpu.core_type<tc>, window_params = [{transform_indices = @transform_0, window_bounds = array<i64: 32, 32>}, {pipeline_mode = #tpu.pipeline_mode<synchronous>, transform_indices = @transform_1, window_bounds = array<i64: 1, 32>}, {pipeline_mode = #tpu.pipeline_mode<synchronous>, transform_indices = @transform_2, window_bounds = array<i64: 1, 32>}, {transform_indices = @transform_3, window_bounds = array<i64: 32, 32>}]} {
    %c0 = arith.constant 0 : index
    %c0_0 = arith.constant 0 : index
    %0 = vector.load %arg1[%c0, %c0_0] : memref<32x32xf32, #tpu.memory_space<vmem>>, vector<32x32xf32>
    %c0_1 = arith.constant 0 : index
    %c0_2 = arith.constant 0 : index
    %1 = vector.load %arg2[%c0_1, %c0_2] : memref<1x32xf32, #tpu.memory_space<vmem>>, vector<1x32xf32>
    %2 = vector.broadcast %1 : vector<1x32xf32> to vector<32x32xf32>
    %3 = arith.mulf %0, %2 : vector<32x32xf32>
    %c0_3 = arith.constant 0 : index
    %c0_4 = arith.constant 0 : index
    %4 = vector.load %arg3[%c0_3, %c0_4] : memref<1x32xf32, #tpu.memory_space<vmem>>, vector<1x32xf32>
    %5 = vector.broadcast %4 : vector<1x32xf32> to vector<32x32xf32>
    %6 = arith.addf %3, %5 : vector<32x32xf32>
    %cst = arith.constant 0.000000e+00 : f32
    %7 = vector.broadcast %cst : f32 to vector<32x32xf32>
    %8 = arith.maximumf %6, %7 : vector<32x32xf32>
    %9 = arith.truncf %8 : vector<32x32xf32> to vector<32x32xbf16>
    %c0_5 = arith.constant 0 : index
    %c0_6 = arith.constant 0 : index
    %10 = vector.load %arg4[%c0_5, %c0_6] : memref<32x32xbf16, #tpu.memory_space<vmem>>, vector<32x32xbf16>
    tpu.vector_store %arg4[%c0_5, %c0_6], %9 {strides = array<i32>} : memref<32x32xbf16, #tpu.memory_space<vmem>>, vector<32x32xbf16>,
    return
  }
  func.func @transform_0(%arg0: i32) -> (i32, i32) {
    %c0_i32 = arith.constant 0 : i32
    %c0_i32_0 = arith.constant 0 : i32
    return %arg0, %c0_i32 : i32, i32
  }
  func.func @transform_1(%arg0: i32) -> (i32, i32) {
    %c0_i32 = arith.constant 0 : i32
    %c0_i32_0 = arith.constant 0 : i32
    %c0_i32_1 = arith.constant 0 : i32
    return %c0_i32, %c0_i32_0 : i32, i32
  }
  func.func @transform_2(%arg0: i32) -> (i32, i32) {
    %c0_i32 = arith.constant 0 : i32
    %c0_i32_0 = arith.constant 0 : i32
    %c0_i32_1 = arith.constant 0 : i32
    return %c0_i32, %c0_i32_0 : i32, i32
  }
  func.func @transform_3(%arg0: i32) -> (i32, i32) {
    %c0_i32 = arith.constant 0 : i32
    %c0_i32_0 = arith.constant 0 : i32
    return %arg0, %c0_i32 : i32, i32
  }
}

module attributes {stable_mosaic.version = 11 : i64} {
  func.func @_bn_relu_kernel(%arg0: i32, %arg1: memref<128x16xf32, #tpu.memory_space<vmem>>, %arg2: memref<1x16xf32, #tpu.memory_space<vmem>>, %arg3: memref<1x16xf32, #tpu.memory_space<vmem>>, %arg4: memref<128x16xbf16, #tpu.memory_space<vmem>>) attributes {dimension_semantics = [#tpu.dimension_semantics<parallel>], iteration_bounds = array<i64: 1>, scalar_prefetch = 0 : i64, scratch_operands = 0 : i64, tpu.core_type = #tpu.core_type<tc>, window_params = [{transform_indices = @transform_0, window_bounds = array<i64: 128, 16>}, {pipeline_mode = #tpu.pipeline_mode<synchronous>, transform_indices = @transform_1, window_bounds = array<i64: 1, 16>}, {pipeline_mode = #tpu.pipeline_mode<synchronous>, transform_indices = @transform_2, window_bounds = array<i64: 1, 16>}, {transform_indices = @transform_3, window_bounds = array<i64: 128, 16>}]} {
    %c0 = arith.constant 0 : index
    %c0_0 = arith.constant 0 : index
    %0 = vector.load %arg1[%c0, %c0_0] : memref<128x16xf32, #tpu.memory_space<vmem>>, vector<128x16xf32>
    %c0_1 = arith.constant 0 : index
    %c0_2 = arith.constant 0 : index
    %1 = vector.load %arg2[%c0_1, %c0_2] : memref<1x16xf32, #tpu.memory_space<vmem>>, vector<1x16xf32>
    %2 = vector.broadcast %1 : vector<1x16xf32> to vector<128x16xf32>
    %3 = arith.mulf %0, %2 : vector<128x16xf32>
    %c0_3 = arith.constant 0 : index
    %c0_4 = arith.constant 0 : index
    %4 = vector.load %arg3[%c0_3, %c0_4] : memref<1x16xf32, #tpu.memory_space<vmem>>, vector<1x16xf32>
    %5 = vector.broadcast %4 : vector<1x16xf32> to vector<128x16xf32>
    %6 = arith.addf %3, %5 : vector<128x16xf32>
    %cst = arith.constant 0.000000e+00 : f32
    %7 = vector.broadcast %cst : f32 to vector<128x16xf32>
    %8 = arith.maximumf %6, %7 : vector<128x16xf32>
    %9 = arith.truncf %8 : vector<128x16xf32> to vector<128x16xbf16>
    %c0_5 = arith.constant 0 : index
    %c0_6 = arith.constant 0 : index
    %10 = vector.load %arg4[%c0_5, %c0_6] : memref<128x16xbf16, #tpu.memory_space<vmem>>, vector<128x16xbf16>
    tpu.vector_store %arg4[%c0_5, %c0_6], %9 {strides = array<i32>} : memref<128x16xbf16, #tpu.memory_space<vmem>>, vector<128x16xbf16>,
    return
  }
  func.func @transform_0(%arg0: i32) -> (i32, i32) {
    %c0_i32 = arith.constant 0 : i32
    %c0_i32_0 = arith.constant 0 : i32
    return %arg0, %c0_i32 : i32, i32
  }
  func.func @transform_1(%arg0: i32) -> (i32, i32) {
    %c0_i32 = arith.constant 0 : i32
    %c0_i32_0 = arith.constant 0 : i32
    %c0_i32_1 = arith.constant 0 : i32
    return %c0_i32, %c0_i32_0 : i32, i32
  }
  func.func @transform_2(%arg0: i32) -> (i32, i32) {
    %c0_i32 = arith.constant 0 : i32
    %c0_i32_0 = arith.constant 0 : i32
    %c0_i32_1 = arith.constant 0 : i32
    return %c0_i32, %c0_i32_0 : i32, i32
  }
  func.func @transform_3(%arg0: i32) -> (i32, i32) {
    %c0_i32 = arith.constant 0 : i32
    %c0_i32_0 = arith.constant 0 : i32
    return %arg0, %c0_i32 : i32, i32
  }
}

module attributes {stable_mosaic.version = 11 : i64} {
  func.func @_mm_stats_kernel(%arg0: i32, %arg1: i32, %arg2: memref<128x128xbf16, #tpu.memory_space<vmem>>, %arg3: memref<128x16xbf16, #tpu.memory_space<vmem>>, %arg4: memref<128x16xf32, #tpu.memory_space<vmem>>, %arg5: memref<8x16xf32, #tpu.memory_space<vmem>>, %arg6: memref<8x16xf32, #tpu.memory_space<vmem>>, %arg7: memref<128x16xf32, #tpu.memory_space<vmem>>) attributes {dimension_semantics = [#tpu.dimension_semantics<parallel>, #tpu.dimension_semantics<arbitrary>], iteration_bounds = array<i64: 1, 1>, scalar_prefetch = 0 : i64, scratch_operands = 1 : i64, tpu.core_type = #tpu.core_type<tc>, window_params = [{transform_indices = @transform_0, window_bounds = array<i64: 128, 128>}, {transform_indices = @transform_1, window_bounds = array<i64: 128, 16>}, {transform_indices = @transform_2, window_bounds = array<i64: 128, 16>}, {transform_indices = @transform_3, window_bounds = array<i64: 8, 16>}, {transform_indices = @transform_4, window_bounds = array<i64: 8, 16>}]} {
    %c0_i32 = arith.constant 0 : i32
    %0 = arith.cmpi eq, %arg1, %c0_i32 : i32
    %1 = arith.extui %0 : i1 to i32
    %c0_i32_0 = arith.constant 0 : i32
    %2 = arith.cmpi ne, %1, %c0_i32_0 : i32
    scf.if %2 {
      %cst_10 = arith.constant 0.000000e+00 : f32
      %12 = vector.broadcast %cst_10 : f32 to vector<128x16xf32>
      %c0_11 = arith.constant 0 : index
      %c0_12 = arith.constant 0 : index
      %13 = vector.load %arg7[%c0_11, %c0_12] : memref<128x16xf32, #tpu.memory_space<vmem>>, vector<128x16xf32>
      tpu.vector_store %arg7[%c0_11, %c0_12], %12 {strides = array<i32>} : memref<128x16xf32, #tpu.memory_space<vmem>>, vector<128x16xf32>,
    } else {
    }
    %c0 = arith.constant 0 : index
    %c0_1 = arith.constant 0 : index
    %3 = vector.load %arg7[%c0, %c0_1] : memref<128x16xf32, #tpu.memory_space<vmem>>, vector<128x16xf32>
    %c0_2 = arith.constant 0 : index
    %c0_3 = arith.constant 0 : index
    %4 = vector.load %arg2[%c0_2, %c0_3] : memref<128x128xbf16, #tpu.memory_space<vmem>>, vector<128x128xbf16>
    %c0_4 = arith.constant 0 : index
    %c0_5 = arith.constant 0 : index
    %5 = vector.load %arg3[%c0_4, %c0_5] : memref<128x16xbf16, #tpu.memory_space<vmem>>, vector<128x16xbf16>
    %cst = arith.constant dense<0.000000e+00> : vector<128x16xf32>
    %6 = tpu.matmul %4, %5, %cst {dimension_numbers = #tpu.dot_dimension_numbers<[1], [0], [0], [1], [0, 0, 1, 1], [], []>} : vector<128x128xbf16>, vector<128x16xbf16>, vector<128x16xf32> -> vector<128x16xf32>
    %7 = arith.addf %3, %6 : vector<128x16xf32>
    %c0_6 = arith.constant 0 : index
    %c0_7 = arith.constant 0 : index
    %8 = vector.load %arg7[%c0_6, %c0_7] : memref<128x16xf32, #tpu.memory_space<vmem>>, vector<128x16xf32>
    tpu.vector_store %arg7[%c0_6, %c0_7], %7 {strides = array<i32>} : memref<128x16xf32, #tpu.memory_space<vmem>>, vector<128x16xf32>,
    %c0_i32_8 = arith.constant 0 : i32
    %9 = arith.cmpi eq, %arg1, %c0_i32_8 : i32
    %10 = arith.extui %9 : i1 to i32
    %c0_i32_9 = arith.constant 0 : i32
    %11 = arith.cmpi ne, %10, %c0_i32_9 : i32
    scf.if %11 {
      %c0_10 = arith.constant 0 : index
      %c0_11 = arith.constant 0 : index
      %12 = vector.load %arg7[%c0_10, %c0_11] : memref<128x16xf32, #tpu.memory_space<vmem>>, vector<128x16xf32>
      %c0_12 = arith.constant 0 : index
      %c0_13 = arith.constant 0 : index
      %13 = vector.load %arg4[%c0_12, %c0_13] : memref<128x16xf32, #tpu.memory_space<vmem>>, vector<128x16xf32>
      tpu.vector_store %arg4[%c0_12, %c0_13], %12 {strides = array<i32>} : memref<128x16xf32, #tpu.memory_space<vmem>>, vector<128x16xf32>,
      %cst_14 = arith.constant dense<0.000000e+00> : vector<16xf32>
      %14 = vector.multi_reduction <add>, %12, %cst_14 [0] : vector<128x16xf32> to vector<16xf32>
      %15 = vector.shape_cast %14 : vector<16xf32> to vector<1x16xf32>
      %16 = arith.mulf %12, %12 : vector<128x16xf32>
      %cst_15 = arith.constant dense<0.000000e+00> : vector<16xf32>
      %17 = vector.multi_reduction <add>, %16, %cst_15 [0] : vector<128x16xf32> to vector<16xf32>
      %18 = vector.shape_cast %17 : vector<16xf32> to vector<1x16xf32>
      %19 = vector.shape_cast %15 : vector<1x16xf32> to vector<1x16xf32>
      %20 = vector.broadcast %19 : vector<1x16xf32> to vector<8x16xf32>
      %c0_16 = arith.constant 0 : index
      %c0_17 = arith.constant 0 : index
      %21 = vector.load %arg5[%c0_16, %c0_17] : memref<8x16xf32, #tpu.memory_space<vmem>>, vector<8x16xf32>
      tpu.vector_store %arg5[%c0_16, %c0_17], %20 {strides = array<i32>} : memref<8x16xf32, #tpu.memory_space<vmem>>, vector<8x16xf32>,
      %22 = vector.shape_cast %18 : vector<1x16xf32> to vector<1x16xf32>
      %23 = vector.broadcast %22 : vector<1x16xf32> to vector<8x16xf32>
      %c0_18 = arith.constant 0 : index
      %c0_19 = arith.constant 0 : index
      %24 = vector.load %arg6[%c0_18, %c0_19] : memref<8x16xf32, #tpu.memory_space<vmem>>, vector<8x16xf32>
      tpu.vector_store %arg6[%c0_18, %c0_19], %23 {strides = array<i32>} : memref<8x16xf32, #tpu.memory_space<vmem>>, vector<8x16xf32>,
    } else {
    }
    return
  }
  func.func @transform_0(%arg0: i32, %arg1: i32) -> (i32, i32) {
    %c0_i32 = arith.constant 0 : i32
    return %arg0, %arg1 : i32, i32
  }
  func.func @transform_1(%arg0: i32, %arg1: i32) -> (i32, i32) {
    %c0_i32 = arith.constant 0 : i32
    %c0_i32_0 = arith.constant 0 : i32
    return %arg1, %c0_i32 : i32, i32
  }
  func.func @transform_2(%arg0: i32, %arg1: i32) -> (i32, i32) {
    %c0_i32 = arith.constant 0 : i32
    %c0_i32_0 = arith.constant 0 : i32
    return %arg0, %c0_i32 : i32, i32
  }
  func.func @transform_3(%arg0: i32, %arg1: i32) -> (i32, i32) {
    %c0_i32 = arith.constant 0 : i32
    %c0_i32_0 = arith.constant 0 : i32
    return %arg0, %c0_i32 : i32, i32
  }
  func.func @transform_4(%arg0: i32, %arg1: i32) -> (i32, i32) {
    %c0_i32 = arith.constant 0 : i32
    %c0_i32_0 = arith.constant 0 : i32
    return %arg0, %c0_i32 : i32, i32
  }
}

module attributes {stable_mosaic.version = 11 : i64} {
  func.func @_mm_stats_kernel(%arg0: i32, %arg1: i32, %arg2: memref<256x64xbf16, #tpu.memory_space<vmem>>, %arg3: memref<64x8xbf16, #tpu.memory_space<vmem>>, %arg4: memref<256x8xf32, #tpu.memory_space<vmem>>, %arg5: memref<8x8xf32, #tpu.memory_space<vmem>>, %arg6: memref<8x8xf32, #tpu.memory_space<vmem>>, %arg7: memref<256x8xf32, #tpu.memory_space<vmem>>) attributes {dimension_semantics = [#tpu.dimension_semantics<parallel>, #tpu.dimension_semantics<arbitrary>], iteration_bounds = array<i64: 2, 1>, scalar_prefetch = 0 : i64, scratch_operands = 1 : i64, tpu.core_type = #tpu.core_type<tc>, window_params = [{transform_indices = @transform_0, window_bounds = array<i64: 256, 64>}, {transform_indices = @transform_1, window_bounds = array<i64: 64, 8>}, {transform_indices = @transform_2, window_bounds = array<i64: 256, 8>}, {transform_indices = @transform_3, window_bounds = array<i64: 8, 8>}, {transform_indices = @transform_4, window_bounds = array<i64: 8, 8>}]} {
    %c0_i32 = arith.constant 0 : i32
    %0 = arith.cmpi eq, %arg1, %c0_i32 : i32
    %1 = arith.extui %0 : i1 to i32
    %c0_i32_0 = arith.constant 0 : i32
    %2 = arith.cmpi ne, %1, %c0_i32_0 : i32
    scf.if %2 {
      %cst_10 = arith.constant 0.000000e+00 : f32
      %12 = vector.broadcast %cst_10 : f32 to vector<256x8xf32>
      %c0_11 = arith.constant 0 : index
      %c0_12 = arith.constant 0 : index
      %13 = vector.load %arg7[%c0_11, %c0_12] : memref<256x8xf32, #tpu.memory_space<vmem>>, vector<256x8xf32>
      tpu.vector_store %arg7[%c0_11, %c0_12], %12 {strides = array<i32>} : memref<256x8xf32, #tpu.memory_space<vmem>>, vector<256x8xf32>,
    } else {
    }
    %c0 = arith.constant 0 : index
    %c0_1 = arith.constant 0 : index
    %3 = vector.load %arg7[%c0, %c0_1] : memref<256x8xf32, #tpu.memory_space<vmem>>, vector<256x8xf32>
    %c0_2 = arith.constant 0 : index
    %c0_3 = arith.constant 0 : index
    %4 = vector.load %arg2[%c0_2, %c0_3] : memref<256x64xbf16, #tpu.memory_space<vmem>>, vector<256x64xbf16>
    %c0_4 = arith.constant 0 : index
    %c0_5 = arith.constant 0 : index
    %5 = vector.load %arg3[%c0_4, %c0_5] : memref<64x8xbf16, #tpu.memory_space<vmem>>, vector<64x8xbf16>
    %cst = arith.constant dense<0.000000e+00> : vector<256x8xf32>
    %6 = tpu.matmul %4, %5, %cst {dimension_numbers = #tpu.dot_dimension_numbers<[1], [0], [0], [1], [0, 0, 1, 1], [], []>} : vector<256x64xbf16>, vector<64x8xbf16>, vector<256x8xf32> -> vector<256x8xf32>
    %7 = arith.addf %3, %6 : vector<256x8xf32>
    %c0_6 = arith.constant 0 : index
    %c0_7 = arith.constant 0 : index
    %8 = vector.load %arg7[%c0_6, %c0_7] : memref<256x8xf32, #tpu.memory_space<vmem>>, vector<256x8xf32>
    tpu.vector_store %arg7[%c0_6, %c0_7], %7 {strides = array<i32>} : memref<256x8xf32, #tpu.memory_space<vmem>>, vector<256x8xf32>,
    %c0_i32_8 = arith.constant 0 : i32
    %9 = arith.cmpi eq, %arg1, %c0_i32_8 : i32
    %10 = arith.extui %9 : i1 to i32
    %c0_i32_9 = arith.constant 0 : i32
    %11 = arith.cmpi ne, %10, %c0_i32_9 : i32
    scf.if %11 {
      %c0_10 = arith.constant 0 : index
      %c0_11 = arith.constant 0 : index
      %12 = vector.load %arg7[%c0_10, %c0_11] : memref<256x8xf32, #tpu.memory_space<vmem>>, vector<256x8xf32>
      %c0_12 = arith.constant 0 : index
      %c0_13 = arith.constant 0 : index
      %13 = vector.load %arg4[%c0_12, %c0_13] : memref<256x8xf32, #tpu.memory_space<vmem>>, vector<256x8xf32>
      tpu.vector_store %arg4[%c0_12, %c0_13], %12 {strides = array<i32>} : memref<256x8xf32, #tpu.memory_space<vmem>>, vector<256x8xf32>,
      %cst_14 = arith.constant dense<0.000000e+00> : vector<8xf32>
      %14 = vector.multi_reduction <add>, %12, %cst_14 [0] : vector<256x8xf32> to vector<8xf32>
      %15 = vector.shape_cast %14 : vector<8xf32> to vector<1x8xf32>
      %16 = arith.mulf %12, %12 : vector<256x8xf32>
      %cst_15 = arith.constant dense<0.000000e+00> : vector<8xf32>
      %17 = vector.multi_reduction <add>, %16, %cst_15 [0] : vector<256x8xf32> to vector<8xf32>
      %18 = vector.shape_cast %17 : vector<8xf32> to vector<1x8xf32>
      %19 = vector.shape_cast %15 : vector<1x8xf32> to vector<1x8xf32>
      %20 = vector.broadcast %19 : vector<1x8xf32> to vector<8x8xf32>
      %c0_16 = arith.constant 0 : index
      %c0_17 = arith.constant 0 : index
      %21 = vector.load %arg5[%c0_16, %c0_17] : memref<8x8xf32, #tpu.memory_space<vmem>>, vector<8x8xf32>
      tpu.vector_store %arg5[%c0_16, %c0_17], %20 {strides = array<i32>} : memref<8x8xf32, #tpu.memory_space<vmem>>, vector<8x8xf32>,
      %22 = vector.shape_cast %18 : vector<1x8xf32> to vector<1x8xf32>
      %23 = vector.broadcast %22 : vector<1x8xf32> to vector<8x8xf32>
      %c0_18 = arith.constant 0 : index
      %c0_19 = arith.constant 0 : index
      %24 = vector.load %arg6[%c0_18, %c0_19] : memref<8x8xf32, #tpu.memory_space<vmem>>, vector<8x8xf32>
      tpu.vector_store %arg6[%c0_18, %c0_19], %23 {strides = array<i32>} : memref<8x8xf32, #tpu.memory_space<vmem>>, vector<8x8xf32>,
    } else {
    }
    return
  }
  func.func @transform_0(%arg0: i32, %arg1: i32) -> (i32, i32) {
    %c0_i32 = arith.constant 0 : i32
    return %arg0, %arg1 : i32, i32
  }
  func.func @transform_1(%arg0: i32, %arg1: i32) -> (i32, i32) {
    %c0_i32 = arith.constant 0 : i32
    %c0_i32_0 = arith.constant 0 : i32
    return %arg1, %c0_i32 : i32, i32
  }
  func.func @transform_2(%arg0: i32, %arg1: i32) -> (i32, i32) {
    %c0_i32 = arith.constant 0 : i32
    %c0_i32_0 = arith.constant 0 : i32
    return %arg0, %c0_i32 : i32, i32
  }
  func.func @transform_3(%arg0: i32, %arg1: i32) -> (i32, i32) {
    %c0_i32 = arith.constant 0 : i32
    %c0_i32_0 = arith.constant 0 : i32
    return %arg0, %c0_i32 : i32, i32
  }
  func.func @transform_4(%arg0: i32, %arg1: i32) -> (i32, i32) {
    %c0_i32 = arith.constant 0 : i32
    %c0_i32_0 = arith.constant 0 : i32
    return %arg0, %c0_i32 : i32, i32
  }
}

module attributes {stable_mosaic.version = 11 : i64} {
  func.func @_bn_relu_kernel(%arg0: i32, %arg1: memref<512x8xf32, #tpu.memory_space<vmem>>, %arg2: memref<1x8xf32, #tpu.memory_space<vmem>>, %arg3: memref<1x8xf32, #tpu.memory_space<vmem>>, %arg4: memref<512x8xbf16, #tpu.memory_space<vmem>>) attributes {dimension_semantics = [#tpu.dimension_semantics<parallel>], iteration_bounds = array<i64: 1>, scalar_prefetch = 0 : i64, scratch_operands = 0 : i64, tpu.core_type = #tpu.core_type<tc>, window_params = [{transform_indices = @transform_0, window_bounds = array<i64: 512, 8>}, {pipeline_mode = #tpu.pipeline_mode<synchronous>, transform_indices = @transform_1, window_bounds = array<i64: 1, 8>}, {pipeline_mode = #tpu.pipeline_mode<synchronous>, transform_indices = @transform_2, window_bounds = array<i64: 1, 8>}, {transform_indices = @transform_3, window_bounds = array<i64: 512, 8>}]} {
    %c0 = arith.constant 0 : index
    %c0_0 = arith.constant 0 : index
    %0 = vector.load %arg1[%c0, %c0_0] : memref<512x8xf32, #tpu.memory_space<vmem>>, vector<512x8xf32>
    %c0_1 = arith.constant 0 : index
    %c0_2 = arith.constant 0 : index
    %1 = vector.load %arg2[%c0_1, %c0_2] : memref<1x8xf32, #tpu.memory_space<vmem>>, vector<1x8xf32>
    %2 = vector.broadcast %1 : vector<1x8xf32> to vector<512x8xf32>
    %3 = arith.mulf %0, %2 : vector<512x8xf32>
    %c0_3 = arith.constant 0 : index
    %c0_4 = arith.constant 0 : index
    %4 = vector.load %arg3[%c0_3, %c0_4] : memref<1x8xf32, #tpu.memory_space<vmem>>, vector<1x8xf32>
    %5 = vector.broadcast %4 : vector<1x8xf32> to vector<512x8xf32>
    %6 = arith.addf %3, %5 : vector<512x8xf32>
    %cst = arith.constant 0.000000e+00 : f32
    %7 = vector.broadcast %cst : f32 to vector<512x8xf32>
    %8 = arith.maximumf %6, %7 : vector<512x8xf32>
    %9 = arith.truncf %8 : vector<512x8xf32> to vector<512x8xbf16>
    %c0_5 = arith.constant 0 : index
    %c0_6 = arith.constant 0 : index
    %10 = vector.load %arg4[%c0_5, %c0_6] : memref<512x8xbf16, #tpu.memory_space<vmem>>, vector<512x8xbf16>
    tpu.vector_store %arg4[%c0_5, %c0_6], %9 {strides = array<i32>} : memref<512x8xbf16, #tpu.memory_space<vmem>>, vector<512x8xbf16>,
    return
  }
  func.func @transform_0(%arg0: i32) -> (i32, i32) {
    %c0_i32 = arith.constant 0 : i32
    %c0_i32_0 = arith.constant 0 : i32
    return %arg0, %c0_i32 : i32, i32
  }
  func.func @transform_1(%arg0: i32) -> (i32, i32) {
    %c0_i32 = arith.constant 0 : i32
    %c0_i32_0 = arith.constant 0 : i32
    %c0_i32_1 = arith.constant 0 : i32
    return %c0_i32, %c0_i32_0 : i32, i32
  }
  func.func @transform_2(%arg0: i32) -> (i32, i32) {
    %c0_i32 = arith.constant 0 : i32
    %c0_i32_0 = arith.constant 0 : i32
    %c0_i32_1 = arith.constant 0 : i32
    return %c0_i32, %c0_i32_0 : i32, i32
  }
  func.func @transform_3(%arg0: i32) -> (i32, i32) {
    %c0_i32 = arith.constant 0 : i32
    %c0_i32_0 = arith.constant 0 : i32
    return %arg0, %c0_i32 : i32, i32
  }
}

module attributes {stable_mosaic.version = 11 : i64} {
  func.func @_mm_kernel(%arg0: i32, %arg1: i32, %arg2: memref<256x32xbf16, #tpu.memory_space<vmem>>, %arg3: memref<32x128xbf16, #tpu.memory_space<vmem>>, %arg4: memref<256x128xf32, #tpu.memory_space<vmem>>, %arg5: memref<256x128xf32, #tpu.memory_space<vmem>>) attributes {dimension_semantics = [#tpu.dimension_semantics<parallel>, #tpu.dimension_semantics<arbitrary>], iteration_bounds = array<i64: 8, 1>, scalar_prefetch = 0 : i64, scratch_operands = 1 : i64, tpu.core_type = #tpu.core_type<tc>, window_params = [{transform_indices = @transform_0, window_bounds = array<i64: 256, 32>}, {transform_indices = @transform_1, window_bounds = array<i64: 32, 128>}, {transform_indices = @transform_2, window_bounds = array<i64: 256, 128>}]} {
    %c0_i32 = arith.constant 0 : i32
    %0 = arith.cmpi eq, %arg1, %c0_i32 : i32
    %1 = arith.extui %0 : i1 to i32
    %c0_i32_0 = arith.constant 0 : i32
    %2 = arith.cmpi ne, %1, %c0_i32_0 : i32
    scf.if %2 {
      %cst_10 = arith.constant 0.000000e+00 : f32
      %12 = vector.broadcast %cst_10 : f32 to vector<256x128xf32>
      %c0_11 = arith.constant 0 : index
      %c0_12 = arith.constant 0 : index
      %13 = vector.load %arg5[%c0_11, %c0_12] : memref<256x128xf32, #tpu.memory_space<vmem>>, vector<256x128xf32>
      tpu.vector_store %arg5[%c0_11, %c0_12], %12 {strides = array<i32>} : memref<256x128xf32, #tpu.memory_space<vmem>>, vector<256x128xf32>,
    } else {
    }
    %c0 = arith.constant 0 : index
    %c0_1 = arith.constant 0 : index
    %3 = vector.load %arg5[%c0, %c0_1] : memref<256x128xf32, #tpu.memory_space<vmem>>, vector<256x128xf32>
    %c0_2 = arith.constant 0 : index
    %c0_3 = arith.constant 0 : index
    %4 = vector.load %arg2[%c0_2, %c0_3] : memref<256x32xbf16, #tpu.memory_space<vmem>>, vector<256x32xbf16>
    %c0_4 = arith.constant 0 : index
    %c0_5 = arith.constant 0 : index
    %5 = vector.load %arg3[%c0_4, %c0_5] : memref<32x128xbf16, #tpu.memory_space<vmem>>, vector<32x128xbf16>
    %cst = arith.constant dense<0.000000e+00> : vector<256x128xf32>
    %6 = tpu.matmul %4, %5, %cst {dimension_numbers = #tpu.dot_dimension_numbers<[1], [0], [0], [1], [0, 0, 1, 1], [], []>} : vector<256x32xbf16>, vector<32x128xbf16>, vector<256x128xf32> -> vector<256x128xf32>
    %7 = arith.addf %3, %6 : vector<256x128xf32>
    %c0_6 = arith.constant 0 : index
    %c0_7 = arith.constant 0 : index
    %8 = vector.load %arg5[%c0_6, %c0_7] : memref<256x128xf32, #tpu.memory_space<vmem>>, vector<256x128xf32>
    tpu.vector_store %arg5[%c0_6, %c0_7], %7 {strides = array<i32>} : memref<256x128xf32, #tpu.memory_space<vmem>>, vector<256x128xf32>,
    %c0_i32_8 = arith.constant 0 : i32
    %9 = arith.cmpi eq, %arg1, %c0_i32_8 : i32
    %10 = arith.extui %9 : i1 to i32
    %c0_i32_9 = arith.constant 0 : i32
    %11 = arith.cmpi ne, %10, %c0_i32_9 : i32
    scf.if %11 {
      %c0_10 = arith.constant 0 : index
      %c0_11 = arith.constant 0 : index
      %12 = vector.load %arg5[%c0_10, %c0_11] : memref<256x128xf32, #tpu.memory_space<vmem>>, vector<256x128xf32>
      %13 = math.tanh %12 : vector<256x128xf32>
      %c0_12 = arith.constant 0 : index
      %c0_13 = arith.constant 0 : index
      %14 = vector.load %arg4[%c0_12, %c0_13] : memref<256x128xf32, #tpu.memory_space<vmem>>, vector<256x128xf32>
      tpu.vector_store %arg4[%c0_12, %c0_13], %13 {strides = array<i32>} : memref<256x128xf32, #tpu.memory_space<vmem>>, vector<256x128xf32>,
    } else {
    }
    return
  }
  func.func @transform_0(%arg0: i32, %arg1: i32) -> (i32, i32) {
    %c0_i32 = arith.constant 0 : i32
    return %arg0, %arg1 : i32, i32
  }
  func.func @transform_1(%arg0: i32, %arg1: i32) -> (i32, i32) {
    %c0_i32 = arith.constant 0 : i32
    %c0_i32_0 = arith.constant 0 : i32
    return %arg1, %c0_i32 : i32, i32
  }
  func.func @transform_2(%arg0: i32, %arg1: i32) -> (i32, i32) {
    %c0_i32 = arith.constant 0 : i32
    %c0_i32_0 = arith.constant 0 : i32
    return %arg0, %c0_i32 : i32, i32
  }
}

</mosaic_0001>

<bundles_post_ra>
// kernel: generator_forward.32
= control target key start
LH: loop header
LB: loop body
LE: loop exit
PB: predicated region body
PF: predicated region fallthrough
CT: control target
= control target key end

     0   :  { %vm14_vm0 = vcmask 516096   ;;  %vm22_vm1 = vcmask 523264   ;;  %v68_v0 = vmov 0.0   ;;  %s126_s0 = inlined_call_operand.vmem [shape: f32[32,64], index: 0, kind: input, shape index: {}]   ;;  %s127_s1 = inlined_call_operand.vmem [shape: f32[1,64], index: 1, kind: output, shape index: {0}]   ;;  %s128_s2 = inlined_call_operand.vmem [shape: f32[1,64], index: 2, kind: output, shape index: {1}]  }
   0x1   :  { %15 = vst.msk [vmem:[%s127_s1] sm:$0x1] %vm14_vm0, %v68_v0  ;;  %v17_v1 = vld [vmem:[%s126_s0] sm:$0xff]  ;;  %v18_v2 = vld [vmem:[%s126_s0 + $0x8] sm:$0xff]  ;;  %v19_v3 = vld [vmem:[%s126_s0 + $0x10] sm:$0xff] }
   0x2   :  { %16 = vst.msk [vmem:[%s128_s2] sm:$0x1] %vm14_vm0, %v68_v0  ;;  %v20_v4 = vld [vmem:[%s126_s0 + $0x18] sm:$0xff]  ;;  %v23_v5 = vsel %vm22_vm1, %v17_v1, 0.0  ;;  %v24_v6 = vsel %vm22_vm1, %v18_v2, 0.0  ;;  %v26_v7 = vsel %vm22_vm1, %v19_v3, 0.0  ;;  %v40_v8 = vmul.f32 %v17_v1, %v17_v1 }
   0x3   :  { %v25_v9 = vadd.f32 %v24_v6, %v23_v5  ;;  %v41_v10 = vmul.f32 %v18_v2, %v18_v2  ;;  %v42_v11 = vmul.f32 %v19_v3, %v19_v3  ;;  %v28_v12 = vsel %vm22_vm1, %v20_v4, 0.0 }
   0x4   :  { %v43_v13 = vmul.f32 %v20_v4, %v20_v4  ;;  %v44_v14 = vsel %vm22_vm1, %v40_v8, 0.0 }
   0x5   :  { %v27_v15 = vadd.f32 %v26_v7, %v25_v9  ;;  %v45_v16 = vsel %vm22_vm1, %v41_v10, 0.0  ;;  %v47_v17 = vsel %vm22_vm1, %v42_v11, 0.0 }
   0x6   :  { %v46_v18 = vadd.f32 %v45_v16, %v44_v14  ;;  %v49_v20 = vsel %vm22_vm1, %v43_v13, 0.0 }
   0x7   :  { %v29_v19 = vadd.f32 %v28_v12, %v27_v15 }
   0x8   :  { %v48_v21 = vadd.f32 %v47_v17, %v46_v18  ;;  %v21_v31 = vld [vmem:[%s127_s1] sm:$0x1] }
   0x9   :  { %v30_v22 = vrot.slane %v29_v19, 4  ;;  %v39_v36 = vld [vmem:[%s128_s2] sm:$0x1] }
   0xa   :  { %v50_v23 = vadd.f32 %v49_v20, %v48_v21 }
   0xb   :  { %v31_v24 = vadd.f32 %v30_v22, %v29_v19 }
   0xc   :  { %v51_v25 = vrot.slane %v50_v23, 4 }
   0xd   :  { %v32_v26 = vrot.slane %v31_v24, 2 }
   0xe   :  { %v52_v27 = vadd.f32 %v51_v25, %v50_v23 }
   0xf   :  { %v33_v28 = vadd.f32 %v32_v26, %v31_v24 }
  0x10   :  { %v53_v29 = vrot.slane %v52_v27, 2 }
  0x11   :  { %v34_v30 = vrot.slane %v33_v28, 1 }
  0x12   :  { %v54_v32 = vadd.f32 %v53_v29, %v52_v27 }
  0x13   :  { %v35_v33 = vadd.f32 %v34_v30, %v33_v28 }
  0x14   :  { %v55_v34 = vrot.slane %v54_v32, 1 }
  0x15   :  { %v36_v35 = vadd.f32 %v35_v33, %v21_v31 }
  0x16   :  { %v56_v37 = vadd.f32 %v55_v34, %v54_v32 }
  0x17   :  { %38 = vst.msk [vmem:[%s127_s1] sm:$0x1] %vm14_vm0, %v36_v35 }
  0x18   :  { %v57_v38 = vadd.f32 %v56_v37, %v39_v36 }
  0x1a   :  { %58 = vst.msk [vmem:[%s128_s2] sm:$0x1] %vm14_vm0, %v57_v38 }

// kernel: generator_forward.33
= control target key start
LH: loop header
LB: loop body
LE: loop exit
PB: predicated region body
PF: predicated region fallthrough
CT: control target
= control target key end

     0   :  { %vm60_vm0 = vcmask 519168   ;;  %s129_s0 = inlined_call_operand.vmem [shape: f32[32,64], index: 0, kind: input, shape index: {}]   ;;  %s130_s1 = inlined_call_operand.vmem [shape: f32[1,64], index: 1, kind: input, shape index: {}]   ;;  %s131_s2 = inlined_call_operand.vmem [shape: f32[1,64], index: 2, kind: input, shape index: {}]   ;;  %s132_s3 = inlined_call_operand.vmem [shape: bf16[32,64], index: 3, kind: output, shape index: {}]  }
   0x1   :  { %v14_v0 = vld [vmem:[%s129_s0] sm:$0xff]  ;;  %v15_v4 = vld [vmem:[%s129_s0 + $0x8] sm:$0xff]  ;;  %v16_v5 = vld [vmem:[%s129_s0 + $0x10] sm:$0xff] }
   0x2   :  { %v69_v1 = vld [vmem:[%s130_s1] ss:$0 sm:$0xff]  ;;  %v17_v6 = vld [vmem:[%s129_s0 + $0x18] sm:$0xff] }
   0x3   :  { %v70_v2 = vld [vmem:[%s131_s2] ss:$0 sm:$0xff]  ;;  %v25_v3 = vmul.f32 %v69_v1, %v14_v0  ;;  %v26_v7 = vmul.f32 %v69_v1, %v15_v4  ;;  %v27_v8 = vmul.f32 %v69_v1, %v16_v5  ;;  %v28_v9 = vmul.f32 %v69_v1, %v17_v6 }
   0x5   :  { %v36_v10 = vadd.f32 %v70_v2, %v25_v3  ;;  %v37_v11 = vadd.f32 %v70_v2, %v26_v7  ;;  %v38_v12 = vadd.f32 %v70_v2, %v27_v8  ;;  %v39_v13 = vadd.f32 %v70_v2, %v28_v9 }
   0x7   :  { %v40_v14 = vmax.f32 %v36_v10, 0.0  ;;  %v41_v15 = vmax.f32 %v37_v11, 0.0  ;;  %v42_v16 = vmax.f32 %v38_v12, 0.0  ;;  %v43_v17 = vmax.f32 %v39_v13, 0.0 }
   0x9   :  { %v75_v18 = vpack.c.bf16 %v40_v14, %v40_v14  ;;  %v76_v19 = vpack.c.bf16 %v41_v15, %v41_v15  ;;  %v77_v20 = vpack.c.bf16 %v42_v16, %v42_v16  ;;  %v78_v21 = vpack.c.bf16 %v43_v17, %v43_v17 }
   0xb   :  { %61 = vst.msk [vmem:[%s132_s3] sm:$0xf] %vm60_vm0, %v75_v18  ;;  %62 = vst.msk [vmem:[%s132_s3 + $0x4] sm:$0xf] %vm60_vm0, %v76_v19 }
   0xc   :  { %63 = vst.msk [vmem:[%s132_s3 + $0x8] sm:$0xf] %vm60_vm0, %v77_v20  ;;  %64 = vst.msk [vmem:[%s132_s3 + $0xc] sm:$0xf] %vm60_vm0, %v78_v21 }

// kernel: generator_forward.31
= control target key start
LH: loop header
LB: loop body
LE: loop exit
PB: predicated region body
PF: predicated region fallthrough
CT: control target
= control target key end

     0   :  { %v365_v3 = vmov 0   ;;  %vm103_vm0 = vcmask 130048   ;;  %s456_s1 = inlined_call_operand.vmem [shape: bf16[16,1024], index: 1, kind: input, shape index: {}]   ;;  %s457_s0 = inlined_call_operand.vmem [shape: bf16[16,16], index: 0, kind: input, shape index: {}]   ;;  %s458_s2 = inlined_call_operand.vmem [shape: f32[16,1024], index: 2, kind: output, shape index: {}]  }
   0x1   :  { %v50_v0 = vld [vmem:[%s456_s1] sm:$0xff]  ;;  %v51_v2 = vld [vmem:[%s456_s1 + $0x8] sm:$0xff]  ;;  %139 = vmatprep.mubr.bf16.mxu0 %v365_v3  ;;  %182 = vmatprep.mubr.bf16.mxu1 %v365_v3  ;;  %v52_v9 = vld [vmem:[%s456_s1 + $0x10] sm:$0xff] }
   0x2   :  { %v54_v1 = vld [vmem:[%s456_s1 + $0x20] sm:$0xff]  ;;  %v55_v5 = vld [vmem:[%s456_s1 + $0x28] sm:$0xff]  ;;  %v56_v10 = vld [vmem:[%s456_s1 + $0x30] sm:$0xff] }
   0x3   :  { %v352_v4 = vcombine.high %v50_v0, %v54_v1  ;;  %v351_v6 = vcombine.low %v50_v0, %v54_v1  ;;  %v354_v7 = vcombine.high %v51_v2, %v55_v5  ;;  %v353_v8 = vcombine.low %v51_v2, %v55_v5  ;;  %v364_v11 = vld [vmem:[%s457_s0] sm:$0xff]   ;;  %v53_v13 = vld [vmem:[%s456_s1 + $0x18] sm:$0xff] }
   0x4   :  { %v356_v12 = vcombine.high %v52_v9, %v56_v10  ;;  %v57_v14 = vld [vmem:[%s456_s1 + $0x38] sm:$0xff]  ;;  %v355_v15 = vcombine.low %v52_v9, %v56_v10 }
   0x5   :  { %107 = vmatprep.subr.bf16.mxu0 %v352_v4  ;;  %150 = vmatprep.subr.bf16.mxu1 %v354_v7  ;;  %v358_v16 = vcombine.high %v53_v13, %v57_v14  ;;  %v357_v17 = vcombine.low %v53_v13, %v57_v14 }
   0x6   :  { %108 = vmatpush1.bf16.msra.mxu0 %v351_v6  ;;  %151 = vmatpush1.bf16.msra.mxu1 %v353_v8 }
   0x7   :  { %193 = vmatprep.subr.bf16.mxu0 %v356_v12  ;;  %236 = vmatprep.subr.bf16.mxu1 %v358_v16 }
   0x9   :  { %359 = vmatmul.mubr.msk.bf16.vlgmr.msra.gmra.mrb[0].mxu0 %vm103_vm0, %v364_v11  ;;  %360 = vmatmul.mubr.msk.bf16.vlgmr.msra.gmra.mrb[0].mxu1 %vm103_vm0, %v364_v11 }
   0xa   :  { %194 = vmatpush1.bf16.msra.mxu0 %v355_v15  ;;  %237 = vmatpush1.bf16.msra.mxu1 %v357_v17 }
   0xb   :  { %225 = vmatprep.mubr.bf16.mxu0 %v365_v3  ;;  %268 = vmatprep.mubr.bf16.mxu1 %v365_v3 }
  0x11   :  { %361 = vmatmul.mubr.msk.bf16.vlgmr.msra.gmra.mrb[4].mxu0 %vm103_vm0, %v364_v11  ;;  %362 = vmatmul.mubr.msk.bf16.vlgmr.msra.gmra.mrb[4].mxu1 %vm103_vm0, %v364_v11 }
  0xdc   :  { %v141_v18 = vpop.f32.mrb[0].mxu0  ;;  %v184_v19 = vpop.f32.mrb[0].mxu1 }
  0xdd   :  { %330 = vst [vmem:[%s458_s2] sm:$0xff] %v141_v18  ;;  %v143_v20 = vpop.f32.mrb[1].mxu0  ;;  %332 = vst [vmem:[%s458_s2 + $0x10] sm:$0xff] %v184_v19  ;;  %v186_v21 = vpop.f32.mrb[1].mxu1 }
  0xde   :  { %331 = vst [vmem:[%s458_s2 + $0x8] sm:$0xff] %v143_v20  ;;  %v145_v22 = vpop.f32.mrb[2].mxu0  ;;  %333 = vst [vmem:[%s458_s2 + $0x18] sm:$0xff] %v186_v21  ;;  %v188_v23 = vpop.f32.mrb[2].mxu1 }
  0xdf   :  { %338 = vst [vmem:[%s458_s2 + $0x40] sm:$0xff] %v145_v22  ;;  %v147_v24 = vpop.f32.mrb[3].mxu0  ;;  %340 = vst [vmem:[%s458_s2 + $0x50] sm:$0xff] %v188_v23  ;;  %v190_v25 = vpop.f32.mrb[3].mxu1 }
  0xe0   :  { %339 = vst [vmem:[%s458_s2 + $0x48] sm:$0xff] %v147_v24  ;;  %341 = vst [vmem:[%s458_s2 + $0x58] sm:$0xff] %v190_v25 }
  0xe4   :  { %v227_v26 = vpop.f32.mrb[4].mxu0  ;;  %v270_v27 = vpop.f32.mrb[4].mxu1 }
  0xe5   :  { %334 = vst [vmem:[%s458_s2 + $0x20] sm:$0xff] %v227_v26  ;;  %v229_v28 = vpop.f32.mrb[5].mxu0  ;;  %336 = vst [vmem:[%s458_s2 + $0x30] sm:$0xff] %v270_v27  ;;  %v272_v29 = vpop.f32.mrb[5].mxu1 }
  0xe6   :  { %335 = vst [vmem:[%s458_s2 + $0x28] sm:$0xff] %v229_v28  ;;  %v231_v30 = vpop.f32.mrb[6].mxu0  ;;  %337 = vst [vmem:[%s458_s2 + $0x38] sm:$0xff] %v272_v29  ;;  %v274_v31 = vpop.f32.mrb[6].mxu1 }
  0xe7   :  { %342 = vst [vmem:[%s458_s2 + $0x60] sm:$0xff] %v231_v30  ;;  %v233_v32 = vpop.f32.mrb[7].mxu0  ;;  %344 = vst [vmem:[%s458_s2 + $0x70] sm:$0xff] %v274_v31  ;;  %v276_v33 = vpop.f32.mrb[7].mxu1 }
  0xe8   :  { %343 = vst [vmem:[%s458_s2 + $0x68] sm:$0xff] %v233_v32  ;;  %345 = vst [vmem:[%s458_s2 + $0x78] sm:$0xff] %v276_v33 }

// kernel: generator_forward.38
= control target key start
LH: loop header
LB: loop body
LE: loop exit
PB: predicated region body
PF: predicated region fallthrough
CT: control target
= control target key end

     0   :  { %vm60_vm0 = vcmask 257024   ;;  %s129_s0 = inlined_call_operand.vmem [shape: f32[32,32], index: 0, kind: input, shape index: {}]   ;;  %s130_s1 = inlined_call_operand.vmem [shape: f32[1,32], index: 1, kind: input, shape index: {}]   ;;  %s131_s2 = inlined_call_operand.vmem [shape: f32[1,32], index: 2, kind: input, shape index: {}]   ;;  %s132_s3 = inlined_call_operand.vmem [shape: bf16[32,32], index: 3, kind: output, shape index: {}]  }
   0x1   :  { %v14_v0 = vld [vmem:[%s129_s0] sm:$0xff]  ;;  %v15_v4 = vld [vmem:[%s129_s0 + $0x8] sm:$0xff]  ;;  %v16_v5 = vld [vmem:[%s129_s0 + $0x10] sm:$0xff] }
   0x2   :  { %v69_v1 = vld [vmem:[%s130_s1] ss:$0 sm:$0xff]  ;;  %v17_v6 = vld [vmem:[%s129_s0 + $0x18] sm:$0xff] }
   0x3   :  { %v70_v2 = vld [vmem:[%s131_s2] ss:$0 sm:$0xff]  ;;  %v25_v3 = vmul.f32 %v69_v1, %v14_v0  ;;  %v26_v7 = vmul.f32 %v69_v1, %v15_v4  ;;  %v27_v8 = vmul.f32 %v69_v1, %v16_v5  ;;  %v28_v9 = vmul.f32 %v69_v1, %v17_v6 }
   0x5   :  { %v36_v10 = vadd.f32 %v70_v2, %v25_v3  ;;  %v37_v11 = vadd.f32 %v70_v2, %v26_v7  ;;  %v38_v12 = vadd.f32 %v70_v2, %v27_v8  ;;  %v39_v13 = vadd.f32 %v70_v2, %v28_v9 }
   0x7   :  { %v40_v14 = vmax.f32 %v36_v10, 0.0  ;;  %v41_v15 = vmax.f32 %v37_v11, 0.0  ;;  %v42_v16 = vmax.f32 %v38_v12, 0.0  ;;  %v43_v17 = vmax.f32 %v39_v13, 0.0 }
   0x9   :  { %v75_v18 = vpack.c.bf16 %v40_v14, %v40_v14  ;;  %v76_v19 = vpack.c.bf16 %v41_v15, %v41_v15  ;;  %v77_v20 = vpack.c.bf16 %v42_v16, %v42_v16  ;;  %v78_v21 = vpack.c.bf16 %v43_v17, %v43_v17 }
   0xb   :  { %61 = vst.msk [vmem:[%s132_s3] sm:$0xf] %vm60_vm0, %v75_v18  ;;  %62 = vst.msk [vmem:[%s132_s3 + $0x4] sm:$0xf] %vm60_vm0, %v76_v19 }
   0xc   :  { %63 = vst.msk [vmem:[%s132_s3 + $0x8] sm:$0xf] %vm60_vm0, %v77_v20  ;;  %64 = vst.msk [vmem:[%s132_s3 + $0xc] sm:$0xf] %vm60_vm0, %v78_v21 }

// kernel: generator_forward.34
= control target key start
LH: loop header
LB: loop body
LE: loop exit
PB: predicated region body
PF: predicated region fallthrough
CT: control target
= control target key end

     0   :  { %vm19_vm0 = vcmask 261120   ;;  %v380_v20 = vmov 0.0   ;;  %s506_s1 = inlined_call_operand.vmem [shape: bf16[256,32], index: 1, kind: input, shape index: {}]   ;;  %s507_s0 = inlined_call_operand.vmem [shape: bf16[32,256], index: 0, kind: input, shape index: {}]   ;;  %s508_s2 = inlined_call_operand.vmem [shape: f32[32,32], index: 2, kind: output, shape index: {0}]   ;;  %s509_s3 = inlined_call_operand.vmem [shape: f32[8,32], index: 3, kind: output, shape index: {1}]   ;;  %s510_s4 = inlined_call_operand.vmem [shape: f32[8,32], index: 4, kind: output, shape index: {2}]  }
   0x1   :  { %v358_v0 = vld [vmem:[%s506_s1 + $0x40] sm:$0xff]   ;;  %v360_v2 = vld [vmem:[%s506_s1 + $0x48] sm:$0xff]   ;;  %v362_v4 = vld [vmem:[%s506_s1 + $0x50] sm:$0xff]   ;;  %20 = vst.msk [vmem:[#allocation2] sm:$0xff] %vm19_vm0, %v380_v20 }
   0x2   :  { %v359_v1 = vld [vmem:[%s506_s1] sm:$0xff]   ;;  %313 = vmatprep.subr.bf16.mxu0 %v358_v0  ;;  %341 = vmatprep.subr.bf16.mxu1 %v358_v0  ;;  %v361_v3 = vld [vmem:[%s506_s1 + $0x8] sm:$0xff]   ;;  %v363_v5 = vld [vmem:[%s506_s1 + $0x10] sm:$0xff]   ;;  %21 = vst.msk [vmem:[#allocation2 + $0x8] sm:$0xff] %vm19_vm0, %v380_v20 }
   0x3   :  { %314 = vmatpush3.bf16.msra.mxu0 %v359_v1  ;;  %349 = vmatpush3.bf16.msra.mxu1 %v359_v1  ;;  %v364_v6 = vld [vmem:[%s506_s1 + $0x58] sm:$0xff]   ;;  %v366_v8 = vld [vmem:[%s506_s1 + $0x60] sm:$0xff]   ;;  %v368_v10 = vld [vmem:[%s506_s1 + $0x68] sm:$0xff]   ;;  %22 = vst.msk [vmem:[#allocation2 + $0x10] sm:$0xff] %vm19_vm0, %v380_v20 }
   0x4   :  { %315 = vmatprep.subr.bf16.mxu0 %v360_v2  ;;  %342 = vmatprep.subr.bf16.mxu1 %v360_v2  ;;  %v365_v7 = vld [vmem:[%s506_s1 + $0x18] sm:$0xff]   ;;  %v367_v9 = vld [vmem:[%s506_s1 + $0x20] sm:$0xff]   ;;  %v369_v13 = vld [vmem:[%s506_s1 + $0x28] sm:$0xff]   ;;  %23 = vst.msk [vmem:[#allocation2 + $0x18] sm:$0xff] %vm19_vm0, %v380_v20 }
   0x5   :  { %v376_v11 = vld [vmem:[%s507_s0 + $0x4] ss:$8 sps:$4 sm:$0xff]   ;;  %v379_v12 = vld [vmem:[%s507_s0 + $0x14] ss:$8 sps:$4 sm:$0xff]   ;;  %v374_v18 = vld [vmem:[%s507_s0] ss:$8 sps:$4 sm:$0xff]  }
   0x6   :  { %v370_v14 = vld [vmem:[%s506_s1 + $0x70] sm:$0xff]   ;;  %212 = vmatprep.mubr.bf16.mxu0 %v376_v11  ;;  %220 = vmatprep.mubr.bf16.mxu1 %v379_v12  ;;  %v372_v16 = vld [vmem:[%s506_s1 + $0x78] sm:$0xff]  }
   0x7   :  { %316 = vmatpush3.bf16.msra.mxu0 %v361_v3  ;;  %350 = vmatpush3.bf16.msra.mxu1 %v361_v3  ;;  %v371_v15 = vld [vmem:[%s506_s1 + $0x30] sm:$0xff]   ;;  %v373_v17 = vld [vmem:[%s506_s1 + $0x38] sm:$0xff]  }
   0x8   :  { %317 = vmatprep.subr.bf16.mxu0 %v362_v4  ;;  %343 = vmatprep.subr.bf16.mxu1 %v362_v4  ;;  %v377_v19 = vld [vmem:[%s507_s0 + $0x10] ss:$8 sps:$4 sm:$0xff]   ;;  %v24_v23 = vld [vmem:[#allocation2] sm:$0xff] }
   0x9   :  { %v25_v31 = vld [vmem:[#allocation2 + $0x8] sm:$0xff] }
   0xa   :  { %v26_v25 = vld [vmem:[#allocation2 + $0x10] sm:$0xff] }
   0xb   :  { %318 = vmatpush3.bf16.msra.mxu0 %v363_v5  ;;  %351 = vmatpush3.bf16.msra.mxu1 %v363_v5  ;;  %v27_v33 = vld [vmem:[#allocation2 + $0x18] sm:$0xff] }
   0xc   :  { %319 = vmatprep.subr.bf16.mxu0 %v364_v6  ;;  %344 = vmatprep.subr.bf16.mxu1 %v364_v6 }
   0xf   :  { %320 = vmatpush3.bf16.msra.mxu0 %v365_v7  ;;  %352 = vmatpush3.bf16.msra.mxu1 %v365_v7 }
  0x10   :  { %321 = vmatprep.subr.bf16.mxu0 %v366_v8  ;;  %345 = vmatprep.subr.bf16.mxu1 %v366_v8 }
  0x13   :  { %322 = vmatpush3.bf16.msra.mxu0 %v367_v9  ;;  %353 = vmatpush3.bf16.msra.mxu1 %v367_v9 }
  0x14   :  { %323 = vmatprep.subr.bf16.mxu0 %v368_v10  ;;  %346 = vmatprep.subr.bf16.mxu1 %v368_v10 }
  0x17   :  { %324 = vmatpush3.bf16.msra.mxu0 %v369_v13  ;;  %354 = vmatpush3.bf16.msra.mxu1 %v369_v13 }
  0x18   :  { %325 = vmatprep.subr.bf16.mxu0 %v370_v14  ;;  %347 = vmatprep.subr.bf16.mxu1 %v370_v14 }
  0x1b   :  { %326 = vmatpush3.bf16.msra.mxu0 %v371_v15  ;;  %355 = vmatpush3.bf16.msra.mxu1 %v371_v15 }
  0x1c   :  { %327 = vmatprep.subr.bf16.mxu0 %v372_v16  ;;  %348 = vmatprep.subr.bf16.mxu1 %v372_v16 }
  0x1f   :  { %328 = vmatpush3.bf16.msra.mxu0 %v373_v17  ;;  %356 = vmatpush3.bf16.msra.mxu1 %v373_v17 }
  0x22   :  { %213 = vmatmul.mubr.bf16.vlgmr.msra.gmra.mrb[0].mxu0 %v374_v18  ;;  %221 = vmatmul.mubr.bf16.vlgmr.msra.gmra.mrb[0].mxu1 %v377_v19 }
  0xf5   :  { %v329_v21 = vpop.f32.mrb[0].mxu0  ;;  %v335_v22 = vpop.f32.mrb[0].mxu1 }
  0xf6   :  { %v330_v24 = vpop.f32.mrb[1].mxu0  ;;  %v336_v26 = vpop.f32.mrb[1].mxu1 }
  0xf7   :  { %v331_v27 = vadd.f32 %v330_v24, %v329_v21  ;;  %v332_v28 = vpop.f32.mrb[2].mxu0  ;;  %v337_v29 = vadd.f32 %v336_v26, %v335_v22  ;;  %v338_v30 = vpop.f32.mrb[2].mxu1 }
  0xf8   :  { %v333_v32 = vpop.f32.mrb[3].mxu0  ;;  %v339_v34 = vpop.f32.mrb[3].mxu1 }
  0xf9   :  { %v229_v35 = vadd.f32 %v331_v27, %v24_v23  ;;  %v231_v36 = vadd.f32 %v337_v29, %v26_v25  ;;  %v334_v37 = vadd.f32 %v333_v32, %v332_v28  ;;  %v340_v38 = vadd.f32 %v339_v34, %v338_v30 }
  0xfb   :  { %234 = vst.msk [vmem:[#allocation2] sm:$0xff] %vm19_vm0, %v229_v35  ;;  %236 = vst.msk [vmem:[#allocation2 + $0x10] sm:$0xff] %vm19_vm0, %v231_v36  ;;  %v230_v39 = vadd.f32 %v334_v37, %v25_v31  ;;  %v232_v40 = vadd.f32 %v340_v38, %v27_v33 }
  0xfd   :  { %235 = vst.msk [vmem:[#allocation2 + $0x8] sm:$0xff] %vm19_vm0, %v230_v39  ;;  %237 = vst.msk [vmem:[#allocation2 + $0x18] sm:$0xff] %vm19_vm0, %v232_v40 }
 0x102   :  { %v241_v41 = vld [vmem:[#allocation2] sm:$0xff]  ;;  %v243_v42 = vld [vmem:[#allocation2 + $0x10] sm:$0xff] }
 0x103   :  { %245 = vst.msk [vmem:[%s508_s2] sm:$0xff] %vm19_vm0, %v241_v41  ;;  %v262_v43 = vmul.f32 %v241_v41, %v241_v41  ;;  %247 = vst.msk [vmem:[%s508_s2 + $0x10] sm:$0xff] %vm19_vm0, %v243_v42  ;;  %v264_v44 = vmul.f32 %v243_v42, %v243_v42  ;;  %v249_v47 = vsel %vm19_vm0, %v241_v41, 0.0  ;;  %v252_v48 = vsel %vm19_vm0, %v243_v42, 0.0 }
 0x104   :  { %v242_v45 = vld [vmem:[#allocation2 + $0x8] sm:$0xff]  ;;  %v244_v46 = vld [vmem:[#allocation2 + $0x18] sm:$0xff] }
 0x105   :  { %246 = vst.msk [vmem:[%s508_s2 + $0x8] sm:$0xff] %vm19_vm0, %v242_v45  ;;  %v250_v49 = vsel %vm19_vm0, %v242_v45, 0.0  ;;  %v263_v50 = vmul.f32 %v242_v45, %v242_v45  ;;  %248 = vst.msk [vmem:[%s508_s2 + $0x18] sm:$0xff] %vm19_vm0, %v244_v46  ;;  %v266_v52 = vsel %vm19_vm0, %v262_v43, 0.0  ;;  %v269_v53 = vsel %vm19_vm0, %v264_v44, 0.0 }
 0x106   :  { %v251_v51 = vadd.f32 %v250_v49, %v249_v47  ;;  %v265_v55 = vmul.f32 %v244_v46, %v244_v46  ;;  %v254_v58 = vsel %vm19_vm0, %v244_v46, 0.0 }
 0x107   :  { %v267_v54 = vsel %vm19_vm0, %v263_v50, 0.0 }
 0x108   :  { %v268_v56 = vadd.f32 %v267_v54, %v266_v52  ;;  %v253_v57 = vadd.f32 %v252_v48, %v251_v51  ;;  %v271_v61 = vsel %vm19_vm0, %v265_v55, 0.0 }
 0x10a   :  { %v255_v59 = vadd.f32 %v254_v58, %v253_v57  ;;  %v270_v60 = vadd.f32 %v269_v53, %v268_v56 }
 0x10c   :  { %v256_v62 = vrot.slane %v255_v59, 4  ;;  %v272_v63 = vadd.f32 %v271_v61, %v270_v60 }
 0x10e   :  { %v257_v0 = vadd.f32 %v256_v62, %v255_v59  ;;  %v273_v1 = vrot.slane %v272_v63, 4 }
 0x110   :  { %v258_v2 = vrot.slane %v257_v0, 2  ;;  %v274_v3 = vadd.f32 %v273_v1, %v272_v63 }
 0x112   :  { %v259_v4 = vadd.f32 %v258_v2, %v257_v0  ;;  %v275_v5 = vrot.slane %v274_v3, 2 }
 0x114   :  { %v260_v6 = vrot.slane %v259_v4, 1  ;;  %v276_v7 = vadd.f32 %v275_v5, %v274_v3 }
 0x116   :  { %v261_v8 = vadd.f32 %v260_v6, %v259_v4  ;;  %v277_v9 = vrot.slane %v276_v7, 1 }
 0x118   :  { %v278_v10 = vadd.f32 %v277_v9, %v276_v7  ;;  %279 = vst.msk [vmem:[%s509_s3] sm:$0xff] %vm19_vm0, %v261_v8 }
 0x11a   :  { %280 = vst.msk [vmem:[%s510_s4] sm:$0xff] %vm19_vm0, %v278_v10 }

// kernel: generator_forward.46
= control target key start
LH: loop header
LB: loop body
LE: loop exit
PB: predicated region body
PF: predicated region fallthrough
CT: control target
= control target key end

     0   :  { %vm156_vm0 = vcmask 125952   ;;  %s385_s0 = inlined_call_operand.vmem [shape: f32[128,16], index: 0, kind: input, shape index: {}]   ;;  %s386_s1 = inlined_call_operand.vmem [shape: f32[1,16], index: 1, kind: input, shape index: {}]   ;;  %s387_s2 = inlined_call_operand.vmem [shape: f32[1,16], index: 2, kind: input, shape index: {}]   ;;  %s388_s3 = inlined_call_operand.vmem [shape: bf16[128,16], index: 3, kind: output, shape index: {}]  }
   0x1   :  { %v14_v0 = vld [vmem:[%s385_s0] sm:$0xff]  ;;  %v15_v4 = vld [vmem:[%s385_s0 + $0x8] sm:$0xff]  ;;  %v16_v5 = vld [vmem:[%s385_s0 + $0x10] sm:$0xff] }
   0x2   :  { %v237_v1 = vld [vmem:[%s386_s1] ss:$0 sm:$0xff]  ;;  %v17_v6 = vld [vmem:[%s385_s0 + $0x18] sm:$0xff]  ;;  %v19_v11 = vld [vmem:[%s385_s0 + $0x28] sm:$0xff] }
   0x3   :  { %v242_v2 = vld [vmem:[%s387_s2] ss:$0 sm:$0xff]  ;;  %v37_v3 = vmul.f32 %v237_v1, %v14_v0  ;;  %v38_v7 = vmul.f32 %v237_v1, %v15_v4  ;;  %v39_v8 = vmul.f32 %v237_v1, %v16_v5  ;;  %v40_v9 = vmul.f32 %v237_v1, %v17_v6  ;;  %v20_v12 = vld [vmem:[%s385_s0 + $0x30] sm:$0xff]  ;;  %v21_v17 = vld [vmem:[%s385_s0 + $0x38] sm:$0xff] }
   0x4   :  { %v18_v10 = vld [vmem:[%s385_s0 + $0x20] sm:$0xff]  ;;  %v42_v15 = vmul.f32 %v237_v1, %v19_v11  ;;  %v43_v16 = vmul.f32 %v237_v1, %v20_v12  ;;  %v44_v21 = vmul.f32 %v237_v1, %v21_v17  ;;  %v23_v35 = vld [vmem:[%s385_s0 + $0x48] sm:$0xff]  ;;  %v24_v36 = vld [vmem:[%s385_s0 + $0x50] sm:$0xff] }
   0x5   :  { %v60_v13 = vadd.f32 %v242_v2, %v37_v3  ;;  %v41_v14 = vmul.f32 %v237_v1, %v18_v10  ;;  %v61_v18 = vadd.f32 %v242_v2, %v38_v7  ;;  %v62_v19 = vadd.f32 %v242_v2, %v39_v8  ;;  %v22_v30 = vld [vmem:[%s385_s0 + $0x40] sm:$0xff]  ;;  %v25_v37 = vld [vmem:[%s385_s0 + $0x58] sm:$0xff]  ;;  %v27_v43 = vld [vmem:[%s385_s0 + $0x68] sm:$0xff] }
   0x6   :  { %v63_v20 = vadd.f32 %v242_v2, %v40_v9  ;;  %v65_v24 = vadd.f32 %v242_v2, %v42_v15  ;;  %v66_v25 = vadd.f32 %v242_v2, %v43_v16  ;;  %v67_v29 = vadd.f32 %v242_v2, %v44_v21  ;;  %v26_v42 = vld [vmem:[%s385_s0 + $0x60] sm:$0xff]  ;;  %v28_v44 = vld [vmem:[%s385_s0 + $0x70] sm:$0xff]  ;;  %v29_v49 = vld [vmem:[%s385_s0 + $0x78] sm:$0xff] }
   0x7   :  { %v76_v22 = vmax.f32 %v60_v13, 0.0  ;;  %v64_v23 = vadd.f32 %v242_v2, %v41_v14  ;;  %v77_v26 = vmax.f32 %v61_v18, 0.0  ;;  %v78_v27 = vmax.f32 %v62_v19, 0.0 }
   0x8   :  { %v79_v28 = vmax.f32 %v63_v20, 0.0  ;;  %v81_v33 = vmax.f32 %v65_v24, 0.0  ;;  %v82_v34 = vmax.f32 %v66_v25, 0.0  ;;  %v83_v41 = vmax.f32 %v67_v29, 0.0 }
   0x9   :  { %v195_v31 = vpack.c.bf16 %v76_v22, %v76_v22  ;;  %v80_v32 = vmax.f32 %v64_v23, 0.0  ;;  %v196_v38 = vpack.c.bf16 %v77_v26, %v77_v26  ;;  %v197_v39 = vpack.c.bf16 %v78_v27, %v78_v27 }
   0xa   :  { %v198_v40 = vpack.c.bf16 %v79_v28, %v79_v28  ;;  %v200_v46 = vpack.c.bf16 %v81_v33, %v81_v33  ;;  %v201_v47 = vpack.c.bf16 %v82_v34, %v82_v34  ;;  %v45_v48 = vmul.f32 %v237_v1, %v22_v30 }
   0xb   :  { %157 = vst.msk [vmem:[%s388_s3] sm:$0xf] %vm156_vm0, %v195_v31  ;;  %v199_v45 = vpack.c.bf16 %v80_v32, %v80_v32  ;;  %158 = vst.msk [vmem:[%s388_s3 + $0x4] sm:$0xf] %vm156_vm0, %v196_v38  ;;  %v202_v50 = vpack.c.bf16 %v83_v41, %v83_v41  ;;  %v46_v51 = vmul.f32 %v237_v1, %v23_v35 }
   0xc   :  { %159 = vst.msk [vmem:[%s388_s3 + $0x8] sm:$0xf] %vm156_vm0, %v197_v39  ;;  %160 = vst.msk [vmem:[%s388_s3 + $0xc] sm:$0xf] %vm156_vm0, %v198_v40  ;;  %v47_v52 = vmul.f32 %v237_v1, %v24_v36  ;;  %v48_v53 = vmul.f32 %v237_v1, %v25_v37  ;;  %v68_v54 = vadd.f32 %v242_v2, %v45_v48 }
   0xd   :  { %161 = vst.msk [vmem:[%s388_s3 + $0x10] sm:$0xf] %vm156_vm0, %v199_v45  ;;  %162 = vst.msk [vmem:[%s388_s3 + $0x14] sm:$0xf] %vm156_vm0, %v200_v46  ;;  %v49_v55 = vmul.f32 %v237_v1, %v26_v42  ;;  %v50_v56 = vmul.f32 %v237_v1, %v27_v43  ;;  %v51_v57 = vmul.f32 %v237_v1, %v28_v44 }
   0xe   :  { %163 = vst.msk [vmem:[%s388_s3 + $0x18] sm:$0xf] %vm156_vm0, %v201_v47  ;;  %164 = vst.msk [vmem:[%s388_s3 + $0x1c] sm:$0xf] %vm156_vm0, %v202_v50  ;;  %v69_v58 = vadd.f32 %v242_v2, %v46_v51  ;;  %v70_v59 = vadd.f32 %v242_v2, %v47_v52  ;;  %v71_v60 = vadd.f32 %v242_v2, %v48_v53  ;;  %v84_v62 = vmax.f32 %v68_v54, 0.0 }
   0xf   :  { %v52_v61 = vmul.f32 %v237_v1, %v29_v49  ;;  %v72_v63 = vadd.f32 %v242_v2, %v49_v55  ;;  %v73_v0 = vadd.f32 %v242_v2, %v50_v56  ;;  %v74_v3 = vadd.f32 %v242_v2, %v51_v57 }
  0x10   :  { %v85_v4 = vmax.f32 %v69_v58, 0.0  ;;  %v86_v5 = vmax.f32 %v70_v59, 0.0  ;;  %v87_v6 = vmax.f32 %v71_v60, 0.0  ;;  %v203_v8 = vpack.c.bf16 %v84_v62, %v84_v62 }
  0x11   :  { %v75_v7 = vadd.f32 %v242_v2, %v52_v61  ;;  %v88_v9 = vmax.f32 %v72_v63, 0.0  ;;  %v89_v10 = vmax.f32 %v73_v0, 0.0  ;;  %v90_v11 = vmax.f32 %v74_v3, 0.0 }
  0x12   :  { %v204_v12 = vpack.c.bf16 %v85_v4, %v85_v4  ;;  %v205_v13 = vpack.c.bf16 %v86_v5, %v86_v5  ;;  %v206_v14 = vpack.c.bf16 %v87_v6, %v87_v6  ;;  %165 = vst.msk [vmem:[%s388_s3 + $0x20] sm:$0xf] %vm156_vm0, %v203_v8 }
  0x13   :  { %v91_v1 = vmax.f32 %v75_v7, 0.0  ;;  %v207_v15 = vpack.c.bf16 %v88_v9, %v88_v9  ;;  %v208_v16 = vpack.c.bf16 %v89_v10, %v89_v10  ;;  %v209_v17 = vpack.c.bf16 %v90_v11, %v90_v11 }
  0x14   :  { %166 = vst.msk [vmem:[%s388_s3 + $0x24] sm:$0xf] %vm156_vm0, %v204_v12  ;;  %167 = vst.msk [vmem:[%s388_s3 + $0x28] sm:$0xf] %vm156_vm0, %v205_v13 }
  0x15   :  { %168 = vst.msk [vmem:[%s388_s3 + $0x2c] sm:$0xf] %vm156_vm0, %v206_v14  ;;  %v210_v2 = vpack.c.bf16 %v91_v1, %v91_v1  ;;  %169 = vst.msk [vmem:[%s388_s3 + $0x30] sm:$0xf] %vm156_vm0, %v207_v15 }
  0x16   :  { %170 = vst.msk [vmem:[%s388_s3 + $0x34] sm:$0xf] %vm156_vm0, %v208_v16  ;;  %171 = vst.msk [vmem:[%s388_s3 + $0x38] sm:$0xf] %vm156_vm0, %v209_v17 }
  0x17   :  { %172 = vst.msk [vmem:[%s388_s3 + $0x3c] sm:$0xf] %vm156_vm0, %v210_v2 }

// kernel: generator_forward.42
= control target key start
LH: loop header
LB: loop body
LE: loop exit
PB: predicated region body
PF: predicated region fallthrough
CT: control target
= control target key end

     0   :  { %vm19_vm0 = vcmask 130048   ;;  %v546_v1 = vmov 0.0   ;;  %s786_s1 = inlined_call_operand.vmem [shape: bf16[128,16], index: 1, kind: input, shape index: {}]   ;;  %s787_s0 = inlined_call_operand.vmem [shape: bf16[128,128], index: 0, kind: input, shape index: {}]   ;;  %s788_s2 = inlined_call_operand.vmem [shape: f32[128,16], index: 2, kind: output, shape index: {0}]   ;;  %s789_s3 = inlined_call_operand.vmem [shape: f32[8,16], index: 3, kind: output, shape index: {1}]   ;;  %s790_s4 = inlined_call_operand.vmem [shape: f32[8,16], index: 4, kind: output, shape index: {2}]  }
   0x1   :  { %v530_v0 = vld [vmem:[%s786_s1] sm:$0xff]   ;;  %22 = vst.msk [vmem:[#allocation2 + $0x10] sm:$0xff] %vm19_vm0, %v546_v1  ;;  %20 = vst.msk [vmem:[#allocation2] sm:$0xff] %vm19_vm0, %v546_v1  ;;  %v531_v2 = vld [vmem:[%s786_s1 + $0x8] sm:$0xff]  }
   0x2   :  { %21 = vst.msk [vmem:[#allocation2 + $0x8] sm:$0xff] %vm19_vm0, %v546_v1  ;;  %23 = vst.msk [vmem:[#allocation2 + $0x18] sm:$0xff] %vm19_vm0, %v546_v1  ;;  %481 = vmatprep.subr.bf16.mxu0 %v530_v0  ;;  %513 = vmatprep.subr.bf16.mxu1 %v530_v0  ;;  %v532_v3 = vld [vmem:[%s786_s1 + $0x10] sm:$0xff]   ;;  %v533_v4 = vld [vmem:[%s786_s1 + $0x18] sm:$0xff]  }
   0x3   :  { %24 = vst.msk [vmem:[#allocation2 + $0x20] sm:$0xff] %vm19_vm0, %v546_v1  ;;  %25 = vst.msk [vmem:[#allocation2 + $0x28] sm:$0xff] %vm19_vm0, %v546_v1  ;;  %482 = vmatpush3.bf16.msra.mxu0 %v530_v0  ;;  %521 = vmatpush3.bf16.msra.mxu1 %v530_v0  ;;  %v538_v5 = vld [vmem:[%s787_s0] sm:$0xff]   ;;  %v535_v8 = vld [vmem:[%s786_s1 + $0x28] sm:$0xff]  }
   0x4   :  { %26 = vst.msk [vmem:[#allocation2 + $0x30] sm:$0xff] %vm19_vm0, %v546_v1  ;;  %27 = vst.msk [vmem:[#allocation2 + $0x38] sm:$0xff] %vm19_vm0, %v546_v1  ;;  %483 = vmatprep.subr.bf16.mxu0 %v531_v2  ;;  %514 = vmatprep.subr.bf16.mxu1 %v531_v2  ;;  %v534_v6 = vld [vmem:[%s786_s1 + $0x20] sm:$0xff]   ;;  %v536_v9 = vld [vmem:[%s786_s1 + $0x30] sm:$0xff]  }
   0x5   :  { %28 = vst.msk [vmem:[#allocation2 + $0x40] sm:$0xff] %vm19_vm0, %v546_v1  ;;  %29 = vst.msk [vmem:[#allocation2 + $0x48] sm:$0xff] %vm19_vm0, %v546_v1  ;;  %497 = vmatprep.mubr.bf16.mxu0 %v538_v5  ;;  %v542_v7 = vld [vmem:[%s787_s0 + $0x20] sm:$0xff]   ;;  %v537_v10 = vld [vmem:[%s786_s1 + $0x38] sm:$0xff]  }
   0x6   :  { %30 = vst.msk [vmem:[#allocation2 + $0x50] sm:$0xff] %vm19_vm0, %v546_v1  ;;  %31 = vst.msk [vmem:[#allocation2 + $0x58] sm:$0xff] %vm19_vm0, %v546_v1  ;;  %505 = vmatprep.mubr.bf16.mxu1 %v542_v7  ;;  %v539_v11 = vld [vmem:[%s787_s0 + $0x8] sm:$0xff]   ;;  %v540_v13 = vld [vmem:[%s787_s0 + $0x10] sm:$0xff]  }
   0x7   :  { %32 = vst.msk [vmem:[#allocation2 + $0x60] sm:$0xff] %vm19_vm0, %v546_v1  ;;  %33 = vst.msk [vmem:[#allocation2 + $0x68] sm:$0xff] %vm19_vm0, %v546_v1  ;;  %484 = vmatpush3.bf16.msra.mxu0 %v531_v2  ;;  %522 = vmatpush3.bf16.msra.mxu1 %v531_v2  ;;  %v543_v12 = vld [vmem:[%s787_s0 + $0x28] sm:$0xff]   ;;  %v544_v14 = vld [vmem:[%s787_s0 + $0x30] sm:$0xff]  }
   0x8   :  { %34 = vst.msk [vmem:[#allocation2 + $0x70] sm:$0xff] %vm19_vm0, %v546_v1  ;;  %35 = vst.msk [vmem:[#allocation2 + $0x78] sm:$0xff] %vm19_vm0, %v546_v1  ;;  %485 = vmatprep.subr.bf16.mxu0 %v532_v3  ;;  %515 = vmatprep.subr.bf16.mxu1 %v532_v3  ;;  %v541_v15 = vld [vmem:[%s787_s0 + $0x18] sm:$0xff]   ;;  %v38_v17 = vld [vmem:[#allocation2 + $0x10] sm:$0xff] }
   0x9   :  { %v545_v16 = vld [vmem:[%s787_s0 + $0x38] sm:$0xff]   ;;  %v36_v19 = vld [vmem:[#allocation2] sm:$0xff]  ;;  %v37_v27 = vld [vmem:[#allocation2 + $0x8] sm:$0xff] }
   0xa   :  { %v39_v22 = vld [vmem:[#allocation2 + $0x18] sm:$0xff]  ;;  %v40_v43 = vld [vmem:[#allocation2 + $0x20] sm:$0xff]  ;;  %v41_v50 = vld [vmem:[#allocation2 + $0x28] sm:$0xff] }
   0xb   :  { %486 = vmatpush3.bf16.msra.mxu0 %v532_v3  ;;  %523 = vmatpush3.bf16.msra.mxu1 %v532_v3  ;;  %v42_v41 = vld [vmem:[#allocation2 + $0x30] sm:$0xff]  ;;  %v43_v46 = vld [vmem:[#allocation2 + $0x38] sm:$0xff] }
   0xc   :  { %487 = vmatprep.subr.bf16.mxu0 %v533_v4  ;;  %516 = vmatprep.subr.bf16.mxu1 %v533_v4  ;;  %v44_v20 = vld [vmem:[#allocation2 + $0x40] sm:$0xff]  ;;  %v45_v30 = vld [vmem:[#allocation2 + $0x48] sm:$0xff] }
   0xd   :  { %v46_v18 = vld [vmem:[#allocation2 + $0x50] sm:$0xff]  ;;  %v47_v24 = vld [vmem:[#allocation2 + $0x58] sm:$0xff] }
   0xe   :  { %v48_v44 = vld [vmem:[#allocation2 + $0x60] sm:$0xff] }
   0xf   :  { %488 = vmatpush3.bf16.msra.mxu0 %v533_v4  ;;  %524 = vmatpush3.bf16.msra.mxu1 %v533_v4  ;;  %v50_v42 = vld [vmem:[#allocation2 + $0x70] sm:$0xff] }
  0x10   :  { %489 = vmatprep.subr.bf16.mxu0 %v534_v6  ;;  %517 = vmatprep.subr.bf16.mxu1 %v534_v6 }
  0x13   :  { %490 = vmatpush3.bf16.msra.mxu0 %v534_v6  ;;  %525 = vmatpush3.bf16.msra.mxu1 %v534_v6 }
  0x14   :  { %491 = vmatprep.subr.bf16.mxu0 %v535_v8  ;;  %518 = vmatprep.subr.bf16.mxu1 %v535_v8 }
  0x17   :  { %492 = vmatpush3.bf16.msra.mxu0 %v535_v8  ;;  %526 = vmatpush3.bf16.msra.mxu1 %v535_v8 }
  0x18   :  { %493 = vmatprep.subr.bf16.mxu0 %v536_v9  ;;  %519 = vmatprep.subr.bf16.mxu1 %v536_v9 }
  0x1b   :  { %494 = vmatpush3.bf16.msra.mxu0 %v536_v9  ;;  %527 = vmatpush3.bf16.msra.mxu1 %v536_v9 }
  0x1c   :  { %495 = vmatprep.subr.bf16.mxu0 %v537_v10  ;;  %520 = vmatprep.subr.bf16.mxu1 %v537_v10 }
  0x1f   :  { %496 = vmatpush3.bf16.msra.mxu0 %v537_v10  ;;  %528 = vmatpush3.bf16.msra.mxu1 %v537_v10  ;;  %v51_v10 = vld [vmem:[#allocation2 + $0x78] sm:$0xff] }
  0x22   :  { %498 = vmatmul.mubr.bf16.vlgmr.msra.gmra.mrb[0].mxu0 %v539_v11  ;;  %506 = vmatmul.mubr.bf16.vlgmr.msra.gmra.mrb[0].mxu1 %v543_v12  ;;  %v49_v12 = vld [vmem:[#allocation2 + $0x68] sm:$0xff] }
  0x23   :  { %501 = vmatprep.mubr.bf16.mxu0 %v540_v13  ;;  %509 = vmatprep.mubr.bf16.mxu1 %v544_v14 }
  0x2a   :  { %502 = vmatmul.mubr.bf16.gmra.mrb[4].mxu0 %v541_v15  ;;  %510 = vmatmul.mubr.bf16.gmra.mrb[4].mxu1 %v545_v16 }
  0xf5   :  { %v499_v21 = vpop.f32.mrb[0].mxu0  ;;  %v507_v23 = vpop.f32.mrb[0].mxu1 }
  0xf6   :  { %v279_v25 = vadd.f32 %v499_v21, %v38_v17  ;;  %v214_v26 = vpop.f32.mrb[1].mxu0  ;;  %v287_v28 = vadd.f32 %v507_v23, %v46_v18  ;;  %v246_v29 = vpop.f32.mrb[1].mxu1 }
  0xf7   :  { %v277_v31 = vadd.f32 %v214_v26, %v36_v19  ;;  %v500_v32 = vpop.f32.mrb[2].mxu0  ;;  %v285_v33 = vadd.f32 %v246_v29, %v44_v20  ;;  %v508_v34 = vpop.f32.mrb[2].mxu1 }
  0xf8   :  { %296 = vst.msk [vmem:[#allocation2 + $0x10] sm:$0xff] %vm19_vm0, %v279_v25  ;;  %v280_v35 = vadd.f32 %v500_v32, %v39_v22  ;;  %v217_v36 = vpop.f32.mrb[3].mxu0  ;;  %304 = vst.msk [vmem:[#allocation2 + $0x50] sm:$0xff] %vm19_vm0, %v287_v28  ;;  %v288_v37 = vadd.f32 %v508_v34, %v47_v24  ;;  %v249_v38 = vpop.f32.mrb[3].mxu1 }
  0xf9   :  { %294 = vst.msk [vmem:[#allocation2] sm:$0xff] %vm19_vm0, %v277_v31  ;;  %v278_v39 = vadd.f32 %v217_v36, %v37_v27  ;;  %302 = vst.msk [vmem:[#allocation2 + $0x40] sm:$0xff] %vm19_vm0, %v285_v33  ;;  %v286_v40 = vadd.f32 %v249_v38, %v45_v30 }
  0xfa   :  { %297 = vst.msk [vmem:[#allocation2 + $0x18] sm:$0xff] %vm19_vm0, %v280_v35  ;;  %305 = vst.msk [vmem:[#allocation2 + $0x58] sm:$0xff] %vm19_vm0, %v288_v37 }
  0xfb   :  { %295 = vst.msk [vmem:[#allocation2 + $0x8] sm:$0xff] %vm19_vm0, %v278_v39  ;;  %303 = vst.msk [vmem:[#allocation2 + $0x48] sm:$0xff] %vm19_vm0, %v286_v40 }
  0xfd   :  { %v503_v45 = vpop.f32.mrb[4].mxu0  ;;  %v511_v47 = vpop.f32.mrb[4].mxu1 }
  0xfe   :  { %v283_v48 = vadd.f32 %v503_v45, %v42_v41  ;;  %v230_v49 = vpop.f32.mrb[5].mxu0  ;;  %v291_v51 = vadd.f32 %v511_v47, %v50_v42  ;;  %v262_v52 = vpop.f32.mrb[5].mxu1 }
  0xff   :  { %v315_v53 = vld [vmem:[#allocation2 + $0x10] sm:$0xff]  ;;  %v281_v54 = vadd.f32 %v230_v49, %v40_v43  ;;  %v504_v55 = vpop.f32.mrb[6].mxu0  ;;  %v289_v57 = vadd.f32 %v262_v52, %v48_v44  ;;  %v512_v58 = vpop.f32.mrb[6].mxu1 }
 0x100   :  { %v644_v56 = vld [vmem:[#allocation2 + $0x50] sm:$0xff]  ;;  %331 = vst.msk [vmem:[%s788_s2 + $0x10] sm:$0xff] %vm19_vm0, %v315_v53  ;;  %v313_v59 = vld [vmem:[#allocation2] sm:$0xff]  ;;  %300 = vst.msk [vmem:[#allocation2 + $0x30] sm:$0xff] %vm19_vm0, %v283_v48  ;;  %v284_v60 = vadd.f32 %v504_v55, %v43_v46  ;;  %v233_v61 = vpop.f32.mrb[7].mxu0  ;;  %v265_v63 = vpop.f32.mrb[7].mxu1  ;;  %v384_v6 = vmul.f32 %v315_v53, %v315_v53  ;;  %v292_v19 = vadd.f32 %v512_v58, %v51_v10 }
 0x101   :  { %339 = vst.msk [vmem:[%s788_s2 + $0x50] sm:$0xff] %vm19_vm0, %v644_v56  ;;  %v656_v62 = vld [vmem:[#allocation2 + $0x40] sm:$0xff]  ;;  %308 = vst.msk [vmem:[#allocation2 + $0x70] sm:$0xff] %vm19_vm0, %v291_v51  ;;  %v382_v0 = vmul.f32 %v313_v59, %v313_v59  ;;  %v316_v1 = vld [vmem:[#allocation2 + $0x18] sm:$0xff]  ;;  %v282_v2 = vadd.f32 %v233_v61, %v41_v50  ;;  %v345_v7 = vsel %vm19_vm0, %v313_v59, 0.0  ;;  %v348_v13 = vsel %vm19_vm0, %v315_v53, 0.0 }
 0x102   :  { %329 = vst.msk [vmem:[%s788_s2] sm:$0xff] %vm19_vm0, %v313_v59  ;;  %298 = vst.msk [vmem:[#allocation2 + $0x20] sm:$0xff] %vm19_vm0, %v281_v54  ;;  %v669_v3 = vld [vmem:[#allocation2 + $0x58] sm:$0xff]  ;;  %v314_v4 = vld [vmem:[#allocation2 + $0x8] sm:$0xff]  ;;  %v385_v15 = vmul.f32 %v316_v1, %v316_v1  ;;  %v401_v20 = vsel %vm19_vm0, %v384_v6, 0.0  ;;  %v350_v21 = vsel %vm19_vm0, %v316_v1, 0.0  ;;  %v290_v24 = vadd.f32 %v265_v63, %v49_v12 }
 0x103   :  { %337 = vst.msk [vmem:[%s788_s2 + $0x40] sm:$0xff] %vm19_vm0, %v656_v62  ;;  %306 = vst.msk [vmem:[#allocation2 + $0x60] sm:$0xff] %vm19_vm0, %v289_v57  ;;  %v682_v5 = vld [vmem:[#allocation2 + $0x48] sm:$0xff]  ;;  %v346_v8 = vsel %vm19_vm0, %v314_v4, 0.0  ;;  %v383_v9 = vmul.f32 %v314_v4, %v314_v4  ;;  %v398_v14 = vsel %vm19_vm0, %v382_v0, 0.0  ;;  %v390_v45 = vmul.f32 %v656_v62, %v656_v62 }
 0x104   :  { %332 = vst.msk [vmem:[%s788_s2 + $0x18] sm:$0xff] %vm19_vm0, %v316_v1  ;;  %301 = vst.msk [vmem:[#allocation2 + $0x38] sm:$0xff] %vm19_vm0, %v284_v60  ;;  %v347_v11 = vadd.f32 %v346_v8, %v345_v7  ;;  %v403_v29 = vsel %vm19_vm0, %v385_v15, 0.0  ;;  %v360_v50 = vsel %vm19_vm0, %v656_v62, 0.0  ;;  %v391_v58 = vmul.f32 %v682_v5, %v682_v5 }
 0x105   :  { %340 = vst.msk [vmem:[%s788_s2 + $0x58] sm:$0xff] %vm19_vm0, %v669_v3  ;;  %330 = vst.msk [vmem:[%s788_s2 + $0x8] sm:$0xff] %vm19_vm0, %v314_v4  ;;  %v399_v16 = vsel %vm19_vm0, %v383_v9, 0.0  ;;  %v413_v57 = vsel %vm19_vm0, %v390_v45, 0.0  ;;  %v392_v61 = vmul.f32 %v644_v56, %v644_v56  ;;  %v362_v62 = vsel %vm19_vm0, %v682_v5, 0.0 }
 0x106   :  { %299 = vst.msk [vmem:[#allocation2 + $0x28] sm:$0xff] %vm19_vm0, %v282_v2  ;;  %338 = vst.msk [vmem:[%s788_s2 + $0x48] sm:$0xff] %vm19_vm0, %v682_v5  ;;  %v349_v17 = vadd.f32 %v348_v13, %v347_v11  ;;  %v400_v18 = vadd.f32 %v399_v16, %v398_v14  ;;  %v364_v1 = vsel %vm19_vm0, %v644_v56, 0.0  ;;  %v393_v2 = vmul.f32 %v669_v3, %v669_v3 }
 0x107   :  { %v319_v22 = vld [vmem:[#allocation2 + $0x30] sm:$0xff]  ;;  %309 = vst.msk [vmem:[#allocation2 + $0x78] sm:$0xff] %vm19_vm0, %v292_v19  ;;  %307 = vst.msk [vmem:[#allocation2 + $0x68] sm:$0xff] %vm19_vm0, %v290_v24  ;;  %v415_v4 = vsel %vm19_vm0, %v391_v58, 0.0  ;;  %v417_v9 = vsel %vm19_vm0, %v392_v61, 0.0  ;;  %v366_v10 = vsel %vm19_vm0, %v669_v3, 0.0 }
 0x108   :  { %v701_v23 = vld [vmem:[#allocation2 + $0x70] sm:$0xff]  ;;  %v402_v25 = vadd.f32 %v401_v20, %v400_v18  ;;  %335 = vst.msk [vmem:[%s788_s2 + $0x30] sm:$0xff] %vm19_vm0, %v319_v22  ;;  %v351_v27 = vadd.f32 %v350_v21, %v349_v17  ;;  %v388_v36 = vmul.f32 %v319_v22, %v319_v22  ;;  %v356_v42 = vsel %vm19_vm0, %v319_v22, 0.0 }
 0x109   :  { %v317_v26 = vld [vmem:[#allocation2 + $0x20] sm:$0xff]  ;;  %343 = vst.msk [vmem:[%s788_s2 + $0x70] sm:$0xff] %vm19_vm0, %v701_v23  ;;  %v419_v13 = vsel %vm19_vm0, %v393_v2, 0.0  ;;  %v396_v17 = vmul.f32 %v701_v23, %v701_v23  ;;  %v372_v3 = vsel %vm19_vm0, %v701_v23, 0.0 }
 0x10a   :  { %v325_v28 = vld [vmem:[#allocation2 + $0x60] sm:$0xff]  ;;  %333 = vst.msk [vmem:[%s788_s2 + $0x20] sm:$0xff] %vm19_vm0, %v317_v26  ;;  %v352_v30 = vsel %vm19_vm0, %v317_v26, 0.0  ;;  %v386_v31 = vmul.f32 %v317_v26, %v317_v26  ;;  %v404_v34 = vadd.f32 %v403_v29, %v402_v25  ;;  %v409_v48 = vsel %vm19_vm0, %v388_v36, 0.0 }
 0x10b   :  { %v320_v32 = vld [vmem:[#allocation2 + $0x38] sm:$0xff]  ;;  %341 = vst.msk [vmem:[%s788_s2 + $0x60] sm:$0xff] %vm19_vm0, %v325_v28  ;;  %v353_v33 = vadd.f32 %v352_v30, %v351_v27  ;;  %v394_v6 = vmul.f32 %v325_v28, %v325_v28  ;;  %v368_v5 = vsel %vm19_vm0, %v325_v28, 0.0  ;;  %v425_v26 = vsel %vm19_vm0, %v396_v17, 0.0 }
 0x10c   :  { %336 = vst.msk [vmem:[%s788_s2 + $0x38] sm:$0xff] %vm19_vm0, %v320_v32  ;;  %v405_v37 = vsel %vm19_vm0, %v386_v31, 0.0  ;;  %v389_v43 = vmul.f32 %v320_v32, %v320_v32  ;;  %v358_v49 = vsel %vm19_vm0, %v320_v32, 0.0 }
 0x10d   :  { %v318_v35 = vld [vmem:[#allocation2 + $0x28] sm:$0xff]  ;;  %v406_v40 = vadd.f32 %v405_v37, %v404_v34  ;;  %v421_v56 = vsel %vm19_vm0, %v394_v6, 0.0 }
 0x10e   :  { %334 = vst.msk [vmem:[%s788_s2 + $0x28] sm:$0xff] %vm19_vm0, %v318_v35  ;;  %v354_v38 = vsel %vm19_vm0, %v318_v35, 0.0  ;;  %v387_v39 = vmul.f32 %v318_v35, %v318_v35  ;;  %v328_v51 = vld [vmem:[#allocation2 + $0x78] sm:$0xff]  ;;  %v326_v54 = vld [vmem:[#allocation2 + $0x68] sm:$0xff]  ;;  %v411_v55 = vsel %vm19_vm0, %v389_v43, 0.0 }
 0x10f   :  { %v355_v41 = vadd.f32 %v354_v38, %v353_v33  ;;  %344 = vst.msk [vmem:[%s788_s2 + $0x78] sm:$0xff] %vm19_vm0, %v328_v51  ;;  %342 = vst.msk [vmem:[%s788_s2 + $0x68] sm:$0xff] %vm19_vm0, %v326_v54  ;;  %v395_v14 = vmul.f32 %v326_v54, %v326_v54  ;;  %v370_v18 = vsel %vm19_vm0, %v326_v54, 0.0  ;;  %v397_v21 = vmul.f32 %v328_v51, %v328_v51 }
 0x110   :  { %v407_v44 = vsel %vm19_vm0, %v387_v39, 0.0  ;;  %v374_v27 = vsel %vm19_vm0, %v328_v51, 0.0 }
 0x111   :  { %v357_v46 = vadd.f32 %v356_v42, %v355_v41  ;;  %v408_v47 = vadd.f32 %v407_v44, %v406_v40  ;;  %v423_v22 = vsel %vm19_vm0, %v395_v14, 0.0  ;;  %v427_v30 = vsel %vm19_vm0, %v397_v21, 0.0 }
 0x113   :  { %v410_v52 = vadd.f32 %v409_v48, %v408_v47  ;;  %v359_v53 = vadd.f32 %v358_v49, %v357_v46 }
 0x115   :  { %v361_v59 = vadd.f32 %v360_v50, %v359_v53  ;;  %v412_v60 = vadd.f32 %v411_v55, %v410_v52 }
 0x117   :  { %v414_v63 = vadd.f32 %v413_v57, %v412_v60  ;;  %v363_v0 = vadd.f32 %v362_v62, %v361_v59 }
 0x119   :  { %v365_v7 = vadd.f32 %v364_v1, %v363_v0  ;;  %v416_v8 = vadd.f32 %v415_v4, %v414_v63 }
 0x11b   :  { %v418_v11 = vadd.f32 %v417_v9, %v416_v8  ;;  %v367_v12 = vadd.f32 %v366_v10, %v365_v7 }
 0x11d   :  { %v369_v15 = vadd.f32 %v368_v5, %v367_v12  ;;  %v420_v16 = vadd.f32 %v419_v13, %v418_v11 }
 0x11f   :  { %v422_v19 = vadd.f32 %v421_v56, %v420_v16  ;;  %v371_v20 = vadd.f32 %v370_v18, %v369_v15 }
 0x121   :  { %v373_v24 = vadd.f32 %v372_v3, %v371_v20  ;;  %v424_v25 = vadd.f32 %v423_v22, %v422_v19 }
 0x123   :  { %v375_v28 = vadd.f32 %v374_v27, %v373_v24  ;;  %v426_v29 = vadd.f32 %v425_v26, %v424_v25 }
 0x125   :  { %v376_v31 = vrot.slane %v375_v28, 4  ;;  %v428_v32 = vadd.f32 %v427_v30, %v426_v29 }
 0x127   :  { %v377_v33 = vadd.f32 %v376_v31, %v375_v28  ;;  %v429_v34 = vrot.slane %v428_v32, 4 }
 0x129   :  { %v378_v35 = vrot.slane %v377_v33, 2  ;;  %v430_v36 = vadd.f32 %v429_v34, %v428_v32 }
 0x12b   :  { %v379_v23 = vadd.f32 %v378_v35, %v377_v33  ;;  %v431_v37 = vrot.slane %v430_v36, 2 }
 0x12d   :  { %v380_v38 = vrot.slane %v379_v23, 1  ;;  %v432_v39 = vadd.f32 %v431_v37, %v430_v36 }
 0x12f   :  { %v381_v40 = vadd.f32 %v380_v38, %v379_v23  ;;  %v433_v41 = vrot.slane %v432_v39, 1 }
 0x131   :  { %v434_v42 = vadd.f32 %v433_v41, %v432_v39  ;;  %435 = vst.msk [vmem:[%s789_s3] sm:$0xff] %vm19_vm0, %v381_v40 }
 0x133   :  { %436 = vst.msk [vmem:[%s790_s4] sm:$0xff] %vm19_vm0, %v434_v42 }

// kernel: generator_forward.52
= control target key start
LH: loop header
LB: loop body
LE: loop exit
PB: predicated region body
PF: predicated region fallthrough
CT: control target
= control target key end

     0   :  { %s1353_s15 = smov 0   ;;  %s1355_s16 = smov 0   ;;  %s1753_s0 = inlined_call_operand.vmem [shape: bf16[512,64], index: 0, kind: input, shape index: {}]   ;;  %s1754_s1 = inlined_call_operand.vmem [shape: bf16[64,8], index: 1, kind: input, shape index: {}]   ;;  %s1755_s2 = inlined_call_operand.vmem [shape: f32[512,8], index: 2, kind: output, shape index: {0}]   ;;  %s1756_s3 = inlined_call_operand.vmem [shape: f32[16,8], index: 3, kind: output, shape index: {1}]   ;;  %s1757_s4 = inlined_call_operand.vmem [shape: f32[16,8], index: 4, kind: output, shape index: {2}]  }
   0x1   :  { %s1357_s17 = smov 0  }
   0x2 LB: > { %s27_s18 = sadd.s32 1, %s1321_s16  ;;  %p1145_p0 = scmp.ge.s32.totalorder %s1325_s17, 1  ;;  %s1325_s17 = sphi %s1357_s17, %s15_s17   ;;  %s1321_s16 = sphi %s1355_s16, %s1759_s16   ;;  %s1317_s15 = sphi %s1353_s15, %s1758_s15  }
   0x3   : > { %p29_p1 = scmp.ge.s32.totalorder %s27_s18, 2  ;;  %p196_p2 = scmp.lt.s32.totalorder %s1325_s17, 3 }
   0x5   : > { %s1761_s18 = smov (%p29_p1, %s27_s18), 0  ;;  %p197_p3 = pnand %p1145_p0, %p196_p2 }
   0x6   : > { %v1283_v0 = vld [vmem:[%s1754_s1] sm:$0xff] (!%p197_p3)   ;;  %s1146_s21 = sshll.u32 (!%p197_p3), %s1317_s15, 5  ;;  %v1284_v1 = vld [vmem:[%s1754_s1 + $0x8] sm:$0xff] (!%p197_p3)   ;;  %v1285_v2 = vld [vmem:[%s1754_s1 + $0x10] sm:$0xff] (!%p197_p3)   ;;  %vm272_vm0 = vcmask (!%p197_p3), 64512   ;;  %v1327_v3 = vmov (!%p197_p3), 0.0  }
   0x7   : > { %200 = sbr.rel (%p197_p3) target bundleno = 329 (0x149), region = 28  ;;  %p239_p4 = scmp.lt.s32.totalorder (!%p197_p3), %s1146_s21, 63  ;;  %1210 = vmatprep.subr.bf16.mxu0 (!%p197_p3), %v1283_v0  ;;  %1250 = vmatprep.subr.bf16.mxu1 (!%p197_p3), %v1283_v0  ;;  %275 = vst.msk [vmem:[#allocation2 + $0x10] sm:$0xff] (!%p197_p3), %vm272_vm0, %v1327_v3  ;;  %273 = vst.msk [vmem:[#allocation2] sm:$0xff] (!%p197_p3), %vm272_vm0, %v1327_v3  ;;  %vm481_vm1 = vcmask (!%p197_p3), 523264   ;;  %v1286_v5 = vld [vmem:[%s1754_s1 + $0x18] sm:$0xff] (!%p197_p3)  }
   0x8   : > { %1211 = vmatpush3.bf16.msra.mxu0 (!%p197_p3), %v1283_v0  ;;  %1254 = vmatpush3.bf16.msra.mxu1 (!%p197_p3), %v1283_v0  ;;  %274 = vst.msk [vmem:[#allocation2 + $0x8] sm:$0xff] (!%p197_p3), %vm272_vm0, %v1327_v3  ;;  %276 = vst.msk [vmem:[#allocation2 + $0x18] sm:$0xff] (!%p197_p3), %vm272_vm0, %v1327_v3  ;;  %p259_p5 = scmp.lt.s32.totalorder (!%p197_p3), %s1317_s15, 1 }
   0x9   : > { %1212 = vmatprep.subr.bf16.mxu0 (!%p197_p3), %v1284_v1  ;;  %1251 = vmatprep.subr.bf16.mxu1 (!%p197_p3), %v1284_v1  ;;  %277 = vst.msk [vmem:[#allocation2 + $0x20] sm:$0xff] (!%p197_p3), %vm272_vm0, %v1327_v3  ;;  %278 = vst.msk [vmem:[#allocation2 + $0x28] sm:$0xff] (!%p197_p3), %vm272_vm0, %v1327_v3 }
   0xa   : > { %279 = vst.msk [vmem:[#allocation2 + $0x30] sm:$0xff] (!%p197_p3), %vm272_vm0, %v1327_v3  ;;  %280 = vst.msk [vmem:[#allocation2 + $0x38] sm:$0xff] (!%p197_p3), %vm272_vm0, %v1327_v3 }
   0xb   : > { %281 = vst.msk [vmem:[#allocation2 + $0x40] sm:$0xff] (!%p197_p3), %vm272_vm0, %v1327_v3  ;;  %282 = vst.msk [vmem:[#allocation2 + $0x48] sm:$0xff] (!%p197_p3), %vm272_vm0, %v1327_v3 }
   0xc   : > { %283 = vst.msk [vmem:[#allocation2 + $0x50] sm:$0xff] (!%p197_p3), %vm272_vm0, %v1327_v3  ;;  %284 = vst.msk [vmem:[#allocation2 + $0x58] sm:$0xff] (!%p197_p3), %vm272_vm0, %v1327_v3  ;;  %1213 = vmatpush3.bf16.msra.mxu0 (!%p197_p3), %v1284_v1  ;;  %1255 = vmatpush3.bf16.msra.mxu1 (!%p197_p3), %v1284_v1 }
   0xd   : > { %285 = vst.msk [vmem:[#allocation2 + $0x60] sm:$0xff] (!%p197_p3), %vm272_vm0, %v1327_v3  ;;  %286 = vst.msk [vmem:[#allocation2 + $0x68] sm:$0xff] (!%p197_p3), %vm272_vm0, %v1327_v3  ;;  %1214 = vmatprep.subr.bf16.mxu0 (!%p197_p3), %v1285_v2  ;;  %1252 = vmatprep.subr.bf16.mxu1 (!%p197_p3), %v1285_v2 }
   0xe   : > { %s1763_s21 = smov (!%p239_p4, %s1146_s21), 63  ;;  %287 = vst.msk [vmem:[#allocation2 + $0x70] sm:$0xff] %vm272_vm0, %v1327_v3  ;;  %288 = vst.msk [vmem:[#allocation2 + $0x78] sm:$0xff] %vm272_vm0, %v1327_v3  ;;  %v307_v21 = vld [vmem:[#allocation2 + $0x10] sm:$0xff]  ;;  %v305_v23 = vld [vmem:[#allocation2] sm:$0xff]  ;;  %s1765_s15 = smov (!%p259_p5, %s1317_s15), 1 }
   0xf   : > { %s1147_s26 = sshll.u32 %s1763_s21, 2  ;;  %289 = vst.msk [vmem:[#allocation2 + $0x80] sm:$0xff] %vm272_vm0, %v1327_v3  ;;  %290 = vst.msk [vmem:[#allocation2 + $0x88] sm:$0xff] %vm272_vm0, %v1327_v3  ;;  %v308_v26 = vld [vmem:[#allocation2 + $0x18] sm:$0xff]  ;;  %v306_v31 = vld [vmem:[#allocation2 + $0x8] sm:$0xff]  ;;  %s1149_s6 = sshll.u32 %s1763_s21, 3 }
  0x10   : > { %291 = vst.msk [vmem:[#allocation2 + $0x90] sm:$0xff] %vm272_vm0, %v1327_v3  ;;  %292 = vst.msk [vmem:[#allocation2 + $0x98] sm:$0xff] %vm272_vm0, %v1327_v3  ;;  %s1423_s29 = scalar_lea.vmem %s1753_s0, %s1147_s26  ;;  %1215 = vmatpush3.bf16.msra.mxu0 %v1285_v2  ;;  %1256 = vmatpush3.bf16.msra.mxu1 %v1285_v2  ;;  %v309_v47 = vld [vmem:[#allocation2 + $0x20] sm:$0xff]  ;;  %s1472_s9 = scalar_lea.vmem %s1755_s2, %s1149_s6  ;;  %v310_v54 = vld [vmem:[#allocation2 + $0x28] sm:$0xff] }
  0x11   : > { %293 = vst.msk [vmem:[#allocation2 + $0xa0] sm:$0xff] %vm272_vm0, %v1327_v3  ;;  %294 = vst.msk [vmem:[#allocation2 + $0xa8] sm:$0xff] %vm272_vm0, %v1327_v3  ;;  %v1287_v4 = vld [vmem:[%s1423_s29] sm:$0xff]   ;;  %1216 = vmatprep.subr.bf16.mxu0 %v1286_v5  ;;  %1253 = vmatprep.subr.bf16.mxu1 %v1286_v5  ;;  %v1288_v6 = vld [vmem:[%s1423_s29 + $0x8] sm:$0xff]   ;;  %s1150_s10 = sshll.u32 %s1765_s15, 3 }
  0x12   : > { %295 = vst.msk [vmem:[#allocation2 + $0xb0] sm:$0xff] %vm272_vm0, %v1327_v3  ;;  %296 = vst.msk [vmem:[#allocation2 + $0xb8] sm:$0xff] %vm272_vm0, %v1327_v3  ;;  %1218 = vmatprep.mubr.msk.bf16.mxu0 %vm481_vm1, %v1287_v4  ;;  %v1289_v7 = vld [vmem:[%s1423_s29 + $0x10] sm:$0xff]   ;;  %v1295_v8 = vld [vmem:[%s1423_s29 + $0x40] sm:$0xff]   ;;  %s262_s13 = scalar_lea.vmem %s1756_s3, %s1150_s10  ;;  %s266_s20 = scalar_lea.vmem %s1757_s4, %s1150_s10 }
  0x13   : > { %297 = vst.msk [vmem:[#allocation2 + $0xc0] sm:$0xff] %vm272_vm0, %v1327_v3  ;;  %298 = vst.msk [vmem:[#allocation2 + $0xc8] sm:$0xff] %vm272_vm0, %v1327_v3  ;;  %v1296_v9 = vld [vmem:[%s1423_s29 + $0x48] sm:$0xff]   ;;  %1234 = vmatprep.mubr.msk.bf16.mxu1 %vm481_vm1, %v1295_v8  ;;  %v1297_v10 = vld [vmem:[%s1423_s29 + $0x50] sm:$0xff]  }
  0x14   : > { %299 = vst.msk [vmem:[#allocation2 + $0xd0] sm:$0xff] %vm272_vm0, %v1327_v3  ;;  %300 = vst.msk [vmem:[#allocation2 + $0xd8] sm:$0xff] %vm272_vm0, %v1327_v3  ;;  %1217 = vmatpush3.bf16.msra.mxu0 %v1286_v5  ;;  %1257 = vmatpush3.bf16.msra.mxu1 %v1286_v5  ;;  %v1290_v11 = vld [vmem:[%s1423_s29 + $0x18] sm:$0xff]   ;;  %v1291_v13 = vld [vmem:[%s1423_s29 + $0x20] sm:$0xff]  }
  0x15   : > { %301 = vst.msk [vmem:[#allocation2 + $0xe0] sm:$0xff] %vm272_vm0, %v1327_v3  ;;  %302 = vst.msk [vmem:[#allocation2 + $0xe8] sm:$0xff] %vm272_vm0, %v1327_v3  ;;  %v1298_v12 = vld [vmem:[%s1423_s29 + $0x58] sm:$0xff]   ;;  %v1299_v14 = vld [vmem:[%s1423_s29 + $0x60] sm:$0xff]  }
  0x16   : > { %303 = vst.msk [vmem:[#allocation2 + $0xf0] sm:$0xff] %vm272_vm0, %v1327_v3  ;;  %304 = vst.msk [vmem:[#allocation2 + $0xf8] sm:$0xff] %vm272_vm0, %v1327_v3  ;;  %v1292_v15 = vld [vmem:[%s1423_s29 + $0x28] sm:$0xff]   ;;  %v1293_v17 = vld [vmem:[%s1423_s29 + $0x30] sm:$0xff]  }
  0x17   : > { %1219 = vmatmul.mubr.msk.bf16.vlgmr.msra.gmra.mrb[0].mxu0 %vm481_vm1, %v1288_v6  ;;  %1235 = vmatmul.mubr.msk.bf16.vlgmr.msra.gmra.mrb[0].mxu1 %vm481_vm1, %v1296_v9  ;;  %v1300_v16 = vld [vmem:[%s1423_s29 + $0x68] sm:$0xff]   ;;  %v1301_v18 = vld [vmem:[%s1423_s29 + $0x70] sm:$0xff]   ;;  %v1294_v19 = vld [vmem:[%s1423_s29 + $0x38] sm:$0xff]  }
  0x18   : > { %1222 = vmatprep.mubr.msk.bf16.mxu0 %vm481_vm1, %v1289_v7  ;;  %1238 = vmatprep.mubr.msk.bf16.mxu1 %vm481_vm1, %v1297_v10  ;;  %v1302_v20 = vld [vmem:[%s1423_s29 + $0x78] sm:$0xff]   ;;  %v323_v22 = vld [vmem:[#allocation2 + $0x90] sm:$0xff]  ;;  %v321_v24 = vld [vmem:[#allocation2 + $0x80] sm:$0xff] }
  0x19   : > { %v324_v28 = vld [vmem:[#allocation2 + $0x98] sm:$0xff]  ;;  %v322_v34 = vld [vmem:[#allocation2 + $0x88] sm:$0xff]  ;;  %v311_v45 = vld [vmem:[#allocation2 + $0x30] sm:$0xff] }
  0x1a   : > { %v327_v46 = vld [vmem:[#allocation2 + $0xb0] sm:$0xff]  ;;  %v325_v48 = vld [vmem:[#allocation2 + $0xa0] sm:$0xff]  ;;  %v312_v50 = vld [vmem:[#allocation2 + $0x38] sm:$0xff] }
  0x1f   : > { %1223 = vmatmul.mubr.msk.bf16.gmra.mrb[4].mxu0 %vm481_vm1, %v1290_v11  ;;  %1239 = vmatmul.mubr.msk.bf16.gmra.mrb[4].mxu1 %vm481_vm1, %v1298_v12 }
  0x20   : > { %1226 = vmatprep.mubr.msk.bf16.mxu0 %vm481_vm1, %v1291_v13  ;;  %1242 = vmatprep.mubr.msk.bf16.mxu1 %vm481_vm1, %v1299_v14  ;;  %v315_v14 = vld [vmem:[#allocation2 + $0x50] sm:$0xff] }
  0x27   : > { %1227 = vmatmul.mubr.msk.bf16.gmra.mrb[8].mxu0 %vm481_vm1, %v1292_v15  ;;  %1243 = vmatmul.mubr.msk.bf16.gmra.mrb[8].mxu1 %vm481_vm1, %v1300_v16 }
  0x28   : > { %1230 = vmatprep.mubr.msk.bf16.mxu0 %vm481_vm1, %v1293_v17  ;;  %1246 = vmatprep.mubr.msk.bf16.mxu1 %vm481_vm1, %v1301_v18  ;;  %v313_v17 = vld [vmem:[#allocation2 + $0x40] sm:$0xff]  ;;  %v328_v18 = vld [vmem:[#allocation2 + $0xb8] sm:$0xff] }
  0x2f   : > { %1231 = vmatmul.mubr.msk.bf16.gmra.mrb[12].mxu0 %vm481_vm1, %v1294_v19  ;;  %1247 = vmatmul.mubr.msk.bf16.gmra.mrb[12].mxu1 %vm481_vm1, %v1302_v20 }
  0xea   : > { %v1220_v25 = vpop.f32.mrb[0].mxu0  ;;  %v1236_v27 = vpop.f32.mrb[0].mxu1 }
  0xeb   : > { %v693_v29 = vadd.f32 %v1220_v25, %v307_v21  ;;  %v564_v30 = vpop.f32.mrb[1].mxu0  ;;  %v709_v32 = vadd.f32 %v1236_v27, %v323_v22  ;;  %v628_v33 = vpop.f32.mrb[1].mxu1 }
  0xec   : > { %v691_v35 = vadd.f32 %v564_v30, %v305_v23  ;;  %v1221_v36 = vpop.f32.mrb[2].mxu0  ;;  %v707_v37 = vadd.f32 %v628_v33, %v321_v24  ;;  %v1237_v38 = vpop.f32.mrb[2].mxu1 }
  0xed   : > { %726 = vst.msk [vmem:[#allocation2 + $0x10] sm:$0xff] %vm272_vm0, %v693_v29  ;;  %v694_v39 = vadd.f32 %v1221_v36, %v308_v26  ;;  %v567_v40 = vpop.f32.mrb[3].mxu0  ;;  %742 = vst.msk [vmem:[#allocation2 + $0x90] sm:$0xff] %vm272_vm0, %v709_v32  ;;  %v710_v41 = vadd.f32 %v1237_v38, %v324_v28  ;;  %v631_v42 = vpop.f32.mrb[3].mxu1  ;;  %v316_v28 = vld [vmem:[#allocation2 + $0x58] sm:$0xff]  ;;  %v314_v29 = vld [vmem:[#allocation2 + $0x48] sm:$0xff] }
  0xee   : > { %724 = vst.msk [vmem:[#allocation2] sm:$0xff] %vm272_vm0, %v691_v35  ;;  %v692_v43 = vadd.f32 %v567_v40, %v306_v31  ;;  %740 = vst.msk [vmem:[#allocation2 + $0x80] sm:$0xff] %vm272_vm0, %v707_v37  ;;  %v708_v44 = vadd.f32 %v631_v42, %v322_v34 }
  0xef   : > { %727 = vst.msk [vmem:[#allocation2 + $0x18] sm:$0xff] %vm272_vm0, %v694_v39  ;;  %743 = vst.msk [vmem:[#allocation2 + $0x98] sm:$0xff] %vm272_vm0, %v710_v41 }
  0xf0   : > { %725 = vst.msk [vmem:[#allocation2 + $0x8] sm:$0xff] %vm272_vm0, %v692_v43  ;;  %741 = vst.msk [vmem:[#allocation2 + $0x88] sm:$0xff] %vm272_vm0, %v708_v44 }
  0xf2   : > { %v1224_v49 = vpop.f32.mrb[4].mxu0  ;;  %v1240_v51 = vpop.f32.mrb[4].mxu1 }
  0xf3   : > { %v697_v52 = vadd.f32 %v1224_v49, %v311_v45  ;;  %v580_v53 = vpop.f32.mrb[5].mxu0  ;;  %v713_v55 = vadd.f32 %v1240_v51, %v327_v46  ;;  %v644_v56 = vpop.f32.mrb[5].mxu1 }
  0xf4   : > { %v761_v57 = vld [vmem:[#allocation2 + $0x10] sm:$0xff]  ;;  %v695_v58 = vadd.f32 %v580_v53, %v309_v47  ;;  %v1225_v59 = vpop.f32.mrb[6].mxu0  ;;  %v711_v61 = vadd.f32 %v644_v56, %v325_v48  ;;  %v1241_v62 = vpop.f32.mrb[6].mxu1 }
  0xf5   : > { %v1474_v60 = vld [vmem:[#allocation2 + $0x90] sm:$0xff]  ;;  %793 = vst.msk [vmem:[%s1472_s9 + $0x10] sm:$0xff] %vm272_vm0, %v761_v57  ;;  %v759_v63 = vld [vmem:[#allocation2] sm:$0xff]  ;;  %730 = vst.msk [vmem:[#allocation2 + $0x30] sm:$0xff] %vm272_vm0, %v697_v52  ;;  %v698_v0 = vadd.f32 %v1225_v59, %v312_v50  ;;  %v583_v1 = vpop.f32.mrb[7].mxu0  ;;  %v1485_v3 = vpop.f32.mrb[7].mxu1  ;;  %v894_v10 = vmul.f32 %v761_v57, %v761_v57  ;;  %v714_v37 = vadd.f32 %v1241_v62, %v328_v18 }
  0xf6   : > { %809 = vst.msk [vmem:[%s1472_s9 + $0x90] sm:$0xff] %vm272_vm0, %v1474_v60  ;;  %v1482_v2 = vld [vmem:[#allocation2 + $0x80] sm:$0xff]  ;;  %746 = vst.msk [vmem:[#allocation2 + $0xb0] sm:$0xff] %vm272_vm0, %v713_v55  ;;  %v892_v4 = vmul.f32 %v759_v63, %v759_v63  ;;  %v762_v5 = vld [vmem:[#allocation2 + $0x18] sm:$0xff]  ;;  %v696_v6 = vadd.f32 %v583_v1, %v310_v54  ;;  %v823_v11 = vsel %vm272_vm0, %v759_v63, 0.0  ;;  %v826_v19 = vsel %vm272_vm0, %v761_v57, 0.0 }
  0xf7   : > { %791 = vst.msk [vmem:[%s1472_s9] sm:$0xff] %vm272_vm0, %v759_v63  ;;  %728 = vst.msk [vmem:[#allocation2 + $0x20] sm:$0xff] %vm272_vm0, %v695_v58  ;;  %v1493_v7 = vld [vmem:[#allocation2 + $0x98] sm:$0xff]  ;;  %v760_v8 = vld [vmem:[#allocation2 + $0x8] sm:$0xff]  ;;  %v895_v15 = vmul.f32 %v762_v5, %v762_v5  ;;  %v927_v31 = vsel %vm272_vm0, %v894_v10, 0.0  ;;  %v828_v32 = vsel %vm272_vm0, %v762_v5, 0.0 }
  0xf8   : > { %807 = vst.msk [vmem:[%s1472_s9 + $0x80] sm:$0xff] %vm272_vm0, %v1482_v2  ;;  %744 = vst.msk [vmem:[#allocation2 + $0xa0] sm:$0xff] %vm272_vm0, %v711_v61  ;;  %v1502_v9 = vld [vmem:[#allocation2 + $0x88] sm:$0xff]  ;;  %v824_v12 = vsel %vm272_vm0, %v760_v8, 0.0  ;;  %v893_v13 = vmul.f32 %v760_v8, %v760_v8  ;;  %v924_v20 = vsel %vm272_vm0, %v892_v4, 0.0  ;;  %v319_v58 = vld [vmem:[#allocation2 + $0x70] sm:$0xff] }
  0xf9   : > { %794 = vst.msk [vmem:[%s1472_s9 + $0x18] sm:$0xff] %vm272_vm0, %v762_v5  ;;  %731 = vst.msk [vmem:[#allocation2 + $0x38] sm:$0xff] %vm272_vm0, %v698_v0  ;;  %v825_v16 = vadd.f32 %v824_v12, %v823_v11  ;;  %v929_v39 = vsel %vm272_vm0, %v895_v15, 0.0  ;;  %v317_v63 = vld [vmem:[#allocation2 + $0x60] sm:$0xff]  ;;  %v326_v0 = vld [vmem:[#allocation2 + $0xa8] sm:$0xff] }
  0xfa   : > { %810 = vst.msk [vmem:[%s1472_s9 + $0x98] sm:$0xff] %vm272_vm0, %v1493_v7  ;;  %792 = vst.msk [vmem:[%s1472_s9 + $0x8] sm:$0xff] %vm272_vm0, %v760_v8  ;;  %v925_v21 = vsel %vm272_vm0, %v893_v13, 0.0  ;;  %v1228_v22 = vpop.f32.mrb[8].mxu0  ;;  %v1515_v23 = vpop.f32.mrb[8].mxu1  ;;  %v331_v1 = vld [vmem:[#allocation2 + $0xd0] sm:$0xff] }
  0xfb   : > { %729 = vst.msk [vmem:[#allocation2 + $0x28] sm:$0xff] %vm272_vm0, %v696_v6  ;;  %808 = vst.msk [vmem:[%s1472_s9 + $0x88] sm:$0xff] %vm272_vm0, %v1502_v9  ;;  %v827_v24 = vadd.f32 %v826_v19, %v825_v16  ;;  %v926_v25 = vadd.f32 %v925_v21, %v924_v20  ;;  %v701_v26 = vadd.f32 %v1228_v22, %v315_v14  ;;  %v596_v27 = vpop.f32.mrb[9].mxu0  ;;  %v1517_v30 = vpop.f32.mrb[9].mxu1  ;;  %v320_v15 = vld [vmem:[#allocation2 + $0x78] sm:$0xff]  ;;  %v318_v16 = vld [vmem:[#allocation2 + $0x68] sm:$0xff] }
  0xfc   : > { %v765_v33 = vld [vmem:[#allocation2 + $0x30] sm:$0xff]  ;;  %v699_v34 = vadd.f32 %v596_v27, %v313_v17  ;;  %v1229_v35 = vpop.f32.mrb[10].mxu0  ;;  %v1523_v38 = vpop.f32.mrb[10].mxu1  ;;  %747 = vst.msk [vmem:[#allocation2 + $0xb8] sm:$0xff] %vm272_vm0, %v714_v37  ;;  %v712_v22 = vadd.f32 %v1485_v3, %v326_v0  ;;  %v329_v37 = vld [vmem:[#allocation2 + $0xc0] sm:$0xff] }
  0xfd   : > { %v1521_v36 = vld [vmem:[#allocation2 + $0xb0] sm:$0xff]  ;;  %v928_v40 = vadd.f32 %v927_v31, %v926_v25  ;;  %797 = vst.msk [vmem:[%s1472_s9 + $0x30] sm:$0xff] %vm272_vm0, %v765_v33  ;;  %v829_v42 = vadd.f32 %v828_v32, %v827_v24  ;;  %734 = vst.msk [vmem:[#allocation2 + $0x50] sm:$0xff] %vm272_vm0, %v701_v26  ;;  %v599_v43 = vpop.f32.mrb[11].mxu0  ;;  %v1534_v45 = vpop.f32.mrb[11].mxu1  ;;  %v702_v49 = vadd.f32 %v1229_v35, %v316_v28  ;;  %v834_v4 = vsel %vm272_vm0, %v765_v33, 0.0 }
  0xfe   : > { %v763_v41 = vld [vmem:[#allocation2 + $0x20] sm:$0xff]  ;;  %813 = vst.msk [vmem:[%s1472_s9 + $0xb0] sm:$0xff] %vm272_vm0, %v1521_v36  ;;  %732 = vst.msk [vmem:[#allocation2 + $0x40] sm:$0xff] %vm272_vm0, %v699_v34  ;;  %v700_v50 = vadd.f32 %v599_v43, %v314_v29  ;;  %v898_v51 = vmul.f32 %v765_v33, %v765_v33  ;;  %v717_v24 = vadd.f32 %v1515_v23, %v331_v1 }
  0xff   : > { %v1532_v44 = vld [vmem:[#allocation2 + $0xa0] sm:$0xff]  ;;  %795 = vst.msk [vmem:[%s1472_s9 + $0x20] sm:$0xff] %vm272_vm0, %v763_v41  ;;  %v830_v46 = vsel %vm272_vm0, %v763_v41, 0.0  ;;  %v896_v47 = vmul.f32 %v763_v41, %v763_v41  ;;  %v930_v53 = vadd.f32 %v929_v39, %v928_v40  ;;  %735 = vst.msk [vmem:[#allocation2 + $0x58] sm:$0xff] %vm272_vm0, %v702_v49  ;;  %v332_v39 = vld [vmem:[#allocation2 + $0xd8] sm:$0xff] }
 0x100   : > { %v766_v48 = vld [vmem:[#allocation2 + $0x38] sm:$0xff]  ;;  %811 = vst.msk [vmem:[%s1472_s9 + $0xa0] sm:$0xff] %vm272_vm0, %v1532_v44  ;;  %v831_v52 = vadd.f32 %v830_v46, %v829_v42  ;;  %733 = vst.msk [vmem:[#allocation2 + $0x48] sm:$0xff] %vm272_vm0, %v700_v50  ;;  %v935_v10 = vsel %vm272_vm0, %v898_v51, 0.0  ;;  %v330_v46 = vld [vmem:[#allocation2 + $0xc8] sm:$0xff] }
 0x101   : > { %798 = vst.msk [vmem:[%s1472_s9 + $0x38] sm:$0xff] %vm272_vm0, %v766_v48  ;;  %v931_v55 = vsel %vm272_vm0, %v896_v47, 0.0  ;;  %v899_v61 = vmul.f32 %v766_v48, %v766_v48  ;;  %v836_v18 = vsel %vm272_vm0, %v766_v48, 0.0  ;;  %745 = vst.msk [vmem:[#allocation2 + $0xa8] sm:$0xff] %vm272_vm0, %v712_v22  ;;  %v335_v50 = vld [vmem:[#allocation2 + $0xf0] sm:$0xff] }
 0x102   : > { %v764_v54 = vld [vmem:[#allocation2 + $0x28] sm:$0xff]  ;;  %v932_v59 = vadd.f32 %v931_v55, %v930_v53  ;;  %v1232_v6 = vpop.f32.mrb[12].mxu0  ;;  %v1554_v8 = vpop.f32.mrb[12].mxu1  ;;  %750 = vst.msk [vmem:[#allocation2 + $0xd0] sm:$0xff] %vm272_vm0, %v717_v24  ;;  %v333_v55 = vld [vmem:[#allocation2 + $0xe0] sm:$0xff] }
 0x103   : > { %796 = vst.msk [vmem:[%s1472_s9 + $0x28] sm:$0xff] %vm272_vm0, %v764_v54  ;;  %v832_v56 = vsel %vm272_vm0, %v764_v54, 0.0  ;;  %v897_v57 = vmul.f32 %v764_v54, %v764_v54  ;;  %v705_v13 = vadd.f32 %v1232_v6, %v319_v58  ;;  %v612_v14 = vpop.f32.mrb[13].mxu0  ;;  %v676_v17 = vpop.f32.mrb[13].mxu1  ;;  %v937_v26 = vsel %vm272_vm0, %v899_v61, 0.0  ;;  %v1564_v32 = vld [vmem:[#allocation2 + $0xb8] sm:$0xff] }
 0x104   : > { %v833_v62 = vadd.f32 %v832_v56, %v831_v52  ;;  %v769_v19 = vld [vmem:[#allocation2 + $0x50] sm:$0xff]  ;;  %v703_v20 = vadd.f32 %v612_v14, %v317_v63  ;;  %v1233_v21 = vpop.f32.mrb[14].mxu0  ;;  %v1249_v25 = vpop.f32.mrb[14].mxu1  ;;  %814 = vst.msk [vmem:[%s1472_s9 + $0xb8] sm:$0xff] %vm272_vm0, %v1564_v32  ;;  %v336_v56 = vld [vmem:[#allocation2 + $0xf8] sm:$0xff]  ;;  %v718_v61 = vadd.f32 %v1523_v38, %v332_v39 }
 0x105   : > { %v933_v5 = vsel %vm272_vm0, %v897_v57, 0.0  ;;  %801 = vst.msk [vmem:[%s1472_s9 + $0x50] sm:$0xff] %vm272_vm0, %v769_v19  ;;  %v767_v28 = vld [vmem:[#allocation2 + $0x40] sm:$0xff]  ;;  %738 = vst.msk [vmem:[#allocation2 + $0x70] sm:$0xff] %vm272_vm0, %v705_v13  ;;  %v615_v31 = vpop.f32.mrb[15].mxu0  ;;  %v679_v33 = vpop.f32.mrb[15].mxu1  ;;  %v706_v34 = vadd.f32 %v1233_v21, %v320_v15  ;;  %v902_v51 = vmul.f32 %v769_v19, %v769_v19  ;;  %v722_v38 = vadd.f32 %v1249_v25, %v336_v56 }
 0x106   : > { %v835_v11 = vadd.f32 %v834_v4, %v833_v62  ;;  %v934_v12 = vadd.f32 %v933_v5, %v932_v59  ;;  %799 = vst.msk [vmem:[%s1472_s9 + $0x40] sm:$0xff] %vm272_vm0, %v767_v28  ;;  %v838_v3 = vsel %vm272_vm0, %v767_v28, 0.0  ;;  %v900_v23 = vmul.f32 %v767_v28, %v767_v28  ;;  %736 = vst.msk [vmem:[#allocation2 + $0x60] sm:$0xff] %vm272_vm0, %v703_v20  ;;  %v770_v42 = vld [vmem:[#allocation2 + $0x58] sm:$0xff]  ;;  %v334_v57 = vld [vmem:[#allocation2 + $0xe8] sm:$0xff] }
 0x107   : > { %v704_v35 = vadd.f32 %v615_v31, %v318_v16  ;;  %v768_v43 = vld [vmem:[#allocation2 + $0x48] sm:$0xff]  ;;  %v842_v47 = vsel %vm272_vm0, %v769_v19, 0.0  ;;  %802 = vst.msk [vmem:[%s1472_s9 + $0x58] sm:$0xff] %vm272_vm0, %v770_v42  ;;  %739 = vst.msk [vmem:[#allocation2 + $0x78] sm:$0xff] %vm272_vm0, %v706_v34  ;;  %v844_v58 = vsel %vm272_vm0, %v770_v42, 0.0  ;;  %v715_v59 = vadd.f32 %v1517_v30, %v329_v37 }
 0x108   : > { %v936_v27 = vadd.f32 %v935_v10, %v934_v12  ;;  %v837_v29 = vadd.f32 %v836_v18, %v835_v11  ;;  %v939_v48 = vsel %vm272_vm0, %v900_v23, 0.0  ;;  %800 = vst.msk [vmem:[%s1472_s9 + $0x48] sm:$0xff] %vm272_vm0, %v768_v43  ;;  %v840_v49 = vsel %vm272_vm0, %v768_v43, 0.0  ;;  %751 = vst.msk [vmem:[#allocation2 + $0xd8] sm:$0xff] %vm272_vm0, %v718_v61  ;;  %v1596_v12 = vld [vmem:[#allocation2 + $0xa8] sm:$0xff] }
 0x109   : > { %737 = vst.msk [vmem:[#allocation2 + $0x68] sm:$0xff] %vm272_vm0, %v704_v35  ;;  %v901_v54 = vmul.f32 %v768_v43, %v768_v43  ;;  %v716_v62 = vadd.f32 %v1534_v45, %v330_v46  ;;  %v903_v63 = vmul.f32 %v770_v42, %v770_v42  ;;  %v721_v4 = vadd.f32 %v1554_v8, %v335_v50  ;;  %v1598_v13 = vld [vmem:[#allocation2 + $0xd0] sm:$0xff] }
 0x10a   : > { %v839_v40 = vadd.f32 %v838_v3, %v837_v29  ;;  %v938_v41 = vadd.f32 %v937_v26, %v936_v27  ;;  %748 = vst.msk [vmem:[#allocation2 + $0xc0] sm:$0xff] %vm272_vm0, %v715_v59  ;;  %v719_v30 = vadd.f32 %v676_v17, %v333_v55  ;;  %v720_v45 = vadd.f32 %v679_v33, %v334_v57 }
 0x10b   : > { %v941_v1 = vsel %vm272_vm0, %v901_v54, 0.0  ;;  %749 = vst.msk [vmem:[#allocation2 + $0xc8] sm:$0xff] %vm272_vm0, %v716_v62  ;;  %v943_v10 = vsel %vm272_vm0, %v902_v51, 0.0  ;;  %754 = vst.msk [vmem:[#allocation2 + $0xf0] sm:$0xff] %vm272_vm0, %v721_v4  ;;  %v945_v17 = vsel %vm272_vm0, %v903_v63, 0.0  ;;  %v908_v3 = vmul.f32 %v1482_v2, %v1482_v2 }
 0x10c   : > { %v940_v52 = vadd.f32 %v939_v48, %v938_v41  ;;  %v841_v53 = vadd.f32 %v840_v49, %v839_v40  ;;  %v773_v6 = vld [vmem:[#allocation2 + $0x70] sm:$0xff]  ;;  %812 = vst.msk [vmem:[%s1472_s9 + $0xa8] sm:$0xff] %vm272_vm0, %v1596_v12  ;;  %817 = vst.msk [vmem:[%s1472_s9 + $0xd0] sm:$0xff] %vm272_vm0, %v1598_v13  ;;  %v854_v43 = vsel %vm272_vm0, %v1482_v2, 0.0  ;;  %v910_v55 = vmul.f32 %v1474_v60, %v1474_v60 }
 0x10d   : > { %805 = vst.msk [vmem:[%s1472_s9 + $0x70] sm:$0xff] %vm272_vm0, %v773_v6  ;;  %v771_v11 = vld [vmem:[#allocation2 + $0x60] sm:$0xff]  ;;  %752 = vst.msk [vmem:[#allocation2 + $0xe0] sm:$0xff] %vm272_vm0, %v719_v30  ;;  %v906_v24 = vmul.f32 %v773_v6, %v773_v6  ;;  %v850_v29 = vsel %vm272_vm0, %v773_v6, 0.0  ;;  %v955_v51 = vsel %vm272_vm0, %v908_v3, 0.0  ;;  %v856_v56 = vsel %vm272_vm0, %v1502_v9, 0.0 }
 0x10e   : > { %v843_v0 = vadd.f32 %v842_v47, %v841_v53  ;;  %v942_v5 = vadd.f32 %v941_v1, %v940_v52  ;;  %803 = vst.msk [vmem:[%s1472_s9 + $0x60] sm:$0xff] %vm272_vm0, %v771_v11  ;;  %v846_v15 = vsel %vm272_vm0, %v771_v11, 0.0  ;;  %v904_v16 = vmul.f32 %v771_v11, %v771_v11  ;;  %755 = vst.msk [vmem:[#allocation2 + $0xf8] sm:$0xff] %vm272_vm0, %v722_v38  ;;  %v774_v19 = vld [vmem:[#allocation2 + $0x78] sm:$0xff] }
 0x10f   : > { %753 = vst.msk [vmem:[#allocation2 + $0xe8] sm:$0xff] %vm272_vm0, %v720_v45  ;;  %806 = vst.msk [vmem:[%s1472_s9 + $0x78] sm:$0xff] %vm272_vm0, %v774_v19  ;;  %v907_v31 = vmul.f32 %v774_v19, %v774_v19  ;;  %v1624_v34 = vld [vmem:[#allocation2 + $0xd8] sm:$0xff]  ;;  %v951_v41 = vsel %vm272_vm0, %v906_v24, 0.0  ;;  %v852_v42 = vsel %vm272_vm0, %v774_v19, 0.0  ;;  %v909_v52 = vmul.f32 %v1502_v9, %v1502_v9 }
 0x110   : > { %v845_v8 = vadd.f32 %v844_v58, %v843_v0  ;;  %v944_v14 = vadd.f32 %v943_v10, %v942_v5  ;;  %v772_v20 = vld [vmem:[#allocation2 + $0x68] sm:$0xff]  ;;  %v947_v22 = vsel %vm272_vm0, %v904_v16, 0.0  ;;  %818 = vst.msk [vmem:[%s1472_s9 + $0xd8] sm:$0xff] %vm272_vm0, %v1624_v34  ;;  %v858_v59 = vsel %vm272_vm0, %v1474_v60, 0.0 }
 0x111   : > { %804 = vst.msk [vmem:[%s1472_s9 + $0x68] sm:$0xff] %vm272_vm0, %v772_v20  ;;  %v848_v25 = vsel %vm272_vm0, %v772_v20, 0.0  ;;  %v905_v26 = vmul.f32 %v772_v20, %v772_v20  ;;  %v783_v23 = vld [vmem:[#allocation2 + $0xc0] sm:$0xff]  ;;  %v953_v2 = vsel %vm272_vm0, %v907_v31, 0.0  ;;  %v911_v61 = vmul.f32 %v1493_v7, %v1493_v7 }
 0x112   : > { %v847_v18 = vadd.f32 %v846_v15, %v845_v8  ;;  %v946_v21 = vadd.f32 %v945_v17, %v944_v14  ;;  %v1626_v35 = vld [vmem:[#allocation2 + $0xc8] sm:$0xff]  ;;  %815 = vst.msk [vmem:[%s1472_s9 + $0xc0] sm:$0xff] %vm272_vm0, %v783_v23  ;;  %v1636_v40 = vld [vmem:[#allocation2 + $0xf0] sm:$0xff]  ;;  %v957_v62 = vsel %vm272_vm0, %v909_v52, 0.0  ;;  %v912_v63 = vmul.f32 %v1532_v44, %v1532_v44 }
 0x113   : > { %v949_v33 = vsel %vm272_vm0, %v905_v26, 0.0  ;;  %816 = vst.msk [vmem:[%s1472_s9 + $0xc8] sm:$0xff] %vm272_vm0, %v1626_v35  ;;  %821 = vst.msk [vmem:[%s1472_s9 + $0xf0] sm:$0xff] %vm272_vm0, %v1636_v40  ;;  %v959_v4 = vsel %vm272_vm0, %v910_v55, 0.0  ;;  %v860_v9 = vsel %vm272_vm0, %v1493_v7, 0.0  ;;  %v862_v5 = vsel %vm272_vm0, %v1532_v44, 0.0 }
 0x114   : > { %v948_v27 = vadd.f32 %v947_v22, %v946_v21  ;;  %v849_v28 = vadd.f32 %v848_v25, %v847_v18  ;;  %v1645_v46 = vld [vmem:[#allocation2 + $0xe0] sm:$0xff]  ;;  %v961_v30 = vsel %vm272_vm0, %v911_v61, 0.0  ;;  %v963_v38 = vsel %vm272_vm0, %v912_v63, 0.0 }
 0x115   : > { %v1647_v47 = vld [vmem:[#allocation2 + $0xf8] sm:$0xff]  ;;  %819 = vst.msk [vmem:[%s1472_s9 + $0xe0] sm:$0xff] %vm272_vm0, %v1645_v46  ;;  %v913_v45 = vmul.f32 %v1596_v12, %v1596_v12  ;;  %v914_v8 = vmul.f32 %v1521_v36, %v1521_v36  ;;  %v864_v7 = vsel %vm272_vm0, %v1596_v12, 0.0  ;;  %v866_v44 = vsel %vm272_vm0, %v1521_v36, 0.0 }
 0x116   : > { %v851_v37 = vadd.f32 %v850_v29, %v849_v28  ;;  %v950_v39 = vadd.f32 %v949_v33, %v948_v27  ;;  %v1649_v48 = vld [vmem:[#allocation2 + $0xe8] sm:$0xff]  ;;  %822 = vst.msk [vmem:[%s1472_s9 + $0xf8] sm:$0xff] %vm272_vm0, %v1647_v47  ;;  %v915_v16 = vmul.f32 %v1564_v32, %v1564_v32  ;;  %v916_v18 = vmul.f32 %v783_v23, %v783_v23 }
 0x117   : > { %820 = vst.msk [vmem:[%s1472_s9 + $0xe8] sm:$0xff] %vm272_vm0, %v1649_v48  ;;  %v965_v17 = vsel %vm272_vm0, %v913_v45, 0.0  ;;  %v967_v21 = vsel %vm272_vm0, %v914_v8, 0.0  ;;  %v868_v22 = vsel %vm272_vm0, %v1564_v32, 0.0  ;;  %v870_v12 = vsel %vm272_vm0, %v783_v23, 0.0 }
 0x118   : > { %v952_v49 = vadd.f32 %v951_v41, %v950_v39  ;;  %v853_v50 = vadd.f32 %v852_v42, %v851_v37  ;;  %v969_v26 = vsel %vm272_vm0, %v915_v16, 0.0  ;;  %v971_v36 = vsel %vm272_vm0, %v916_v18, 0.0 }
 0x119   : > { %v917_v27 = vmul.f32 %v1626_v35, %v1626_v35  ;;  %v918_v31 = vmul.f32 %v1598_v13, %v1598_v13  ;;  %v872_v33 = vsel %vm272_vm0, %v1626_v35, 0.0  ;;  %v874_v23 = vsel %vm272_vm0, %v1598_v13, 0.0 }
 0x11a   : > { %v855_v53 = vadd.f32 %v854_v43, %v853_v50  ;;  %v954_v54 = vadd.f32 %v953_v2, %v952_v49  ;;  %v919_v37 = vmul.f32 %v1624_v34, %v1624_v34  ;;  %v920_v41 = vmul.f32 %v1645_v46, %v1645_v46 }
 0x11b   : > { %v973_v39 = vsel %vm272_vm0, %v917_v27, 0.0  ;;  %v975_v49 = vsel %vm272_vm0, %v918_v31, 0.0  ;;  %v876_v35 = vsel %vm272_vm0, %v1624_v34, 0.0  ;;  %v878_v50 = vsel %vm272_vm0, %v1645_v46, 0.0 }
 0x11c   : > { %v956_v57 = vadd.f32 %v955_v51, %v954_v54  ;;  %v857_v58 = vadd.f32 %v856_v56, %v855_v53  ;;  %v977_v51 = vsel %vm272_vm0, %v919_v37, 0.0  ;;  %v979_v52 = vsel %vm272_vm0, %v920_v41, 0.0 }
 0x11d   : > { %v921_v53 = vmul.f32 %v1649_v48, %v1649_v48  ;;  %v922_v56 = vmul.f32 %v1636_v40, %v1636_v40  ;;  %v880_v34 = vsel %vm272_vm0, %v1649_v48, 0.0 }
 0x11e   : > { %v859_v0 = vadd.f32 %v858_v59, %v857_v58  ;;  %v958_v1 = vadd.f32 %v957_v62, %v956_v57  ;;  %v882_v58 = vsel %vm272_vm0, %v1636_v40, 0.0  ;;  %v923_v59 = vmul.f32 %v1647_v47, %v1647_v47 }
 0x11f   : > { %v981_v61 = vsel %vm272_vm0, %v921_v53, 0.0 }
 0x120   : > { %v960_v6 = vadd.f32 %v959_v4, %v958_v1  ;;  %v861_v60 = vadd.f32 %v860_v9, %v859_v0  ;;  %v983_v0 = vsel %vm272_vm0, %v922_v56, 0.0  ;;  %v884_v1 = vsel %vm272_vm0, %v1647_v47, 0.0 }
 0x121   : > { %v985_v9 = vsel %vm272_vm0, %v923_v59, 0.0 }
 0x122   : > { %v863_v10 = vadd.f32 %v862_v5, %v861_v60  ;;  %v962_v11 = vadd.f32 %v961_v30, %v960_v6 }
 0x124   : > { %v964_v14 = vadd.f32 %v963_v38, %v962_v11  ;;  %v865_v15 = vadd.f32 %v864_v7, %v863_v10 }
 0x126   : > { %v867_v19 = vadd.f32 %v866_v44, %v865_v15  ;;  %v966_v20 = vadd.f32 %v965_v17, %v964_v14 }
 0x128   : > { %v968_v24 = vadd.f32 %v967_v21, %v966_v20  ;;  %v869_v25 = vadd.f32 %v868_v22, %v867_v19 }
 0x12a   : > { %v871_v28 = vadd.f32 %v870_v12, %v869_v25  ;;  %v970_v29 = vadd.f32 %v969_v26, %v968_v24 }
 0x12c   : > { %v972_v32 = vadd.f32 %v971_v36, %v970_v29  ;;  %v873_v3 = vadd.f32 %v872_v33, %v871_v28 }
 0x12e   : > { %v875_v42 = vadd.f32 %v874_v23, %v873_v3  ;;  %v974_v43 = vadd.f32 %v973_v39, %v972_v32 }
 0x130   : > { %v976_v2 = vadd.f32 %v975_v49, %v974_v43  ;;  %v877_v13 = vadd.f32 %v876_v35, %v875_v42 }
 0x132   : > { %v879_v54 = vadd.f32 %v878_v50, %v877_v13  ;;  %v978_v55 = vadd.f32 %v977_v51, %v976_v2 }
 0x134   : > { %v980_v46 = vadd.f32 %v979_v52, %v978_v55  ;;  %v881_v57 = vadd.f32 %v880_v34, %v879_v54 }
 0x136   : > { %v883_v62 = vadd.f32 %v882_v58, %v881_v57  ;;  %v982_v63 = vadd.f32 %v981_v61, %v980_v46 }
 0x138   : > { %v885_v48 = vadd.f32 %v884_v1, %v883_v62  ;;  %v984_v4 = vadd.f32 %v983_v0, %v982_v63 }
 0x13a   : > { %v886_v5 = vrot.slane %v885_v48, 4  ;;  %v986_v6 = vadd.f32 %v985_v9, %v984_v4 }
 0x13c   : > { %v887_v40 = vadd.f32 %v886_v5, %v885_v48  ;;  %v987_v60 = vrot.slane %v986_v6, 4 }
 0x13e   : > { %v888_v30 = vrot.slane %v887_v40, 2  ;;  %v988_v38 = vadd.f32 %v987_v60, %v986_v6 }
 0x140   : > { %v889_v45 = vadd.f32 %v888_v30, %v887_v40  ;;  %v989_v10 = vrot.slane %v988_v38, 2 }
 0x142   : > { %v890_v11 = vrot.slane %v889_v45, 1  ;;  %v990_v8 = vadd.f32 %v989_v10, %v988_v38 }
 0x144   : > { %v891_v47 = vadd.f32 %v890_v11, %v889_v45  ;;  %v991_v7 = vrot.slane %v990_v8, 1 }
 0x146   : > { %v992_v14 = vadd.f32 %v991_v7, %v990_v8  ;;  %993 = vst.msk [vmem:[%s262_s13] sm:$0xff] %vm272_vm0, %v891_v47 }
 0x148   : > { %994 = vst.msk [vmem:[%s266_s20] sm:$0xff] %vm272_vm0, %v992_v14 }
 0x149 PF: > { %s15_s17 = sadd.s32 1, %s1325_s17   ;;  %s1758_s15 = smov %s1321_s16 }
 0x14a   : > { %p12_p6 = scmp.ge.s32.totalorder %s15_s17, 4   ;;  %s1759_s16 = smov %s1761_s18 }
 0x14c   :  { %14 = sbr.rel (!%p12_p6) target bundleno = 2 (0x2), region = 93 }

// kernel: generator_forward.54
= control target key start
LH: loop header
LB: loop body
LE: loop exit
PB: predicated region body
PF: predicated region fallthrough
CT: control target
= control target key end

     0   :  { %vm540_vm0 = vcmask 60416   ;;  %s1345_s0 = inlined_call_operand.vmem [shape: f32[512,8], index: 0, kind: input, shape index: {}]   ;;  %s1346_s1 = inlined_call_operand.vmem [shape: f32[1,8], index: 1, kind: input, shape index: {}]   ;;  %s1347_s2 = inlined_call_operand.vmem [shape: f32[1,8], index: 2, kind: input, shape index: {}]   ;;  %s1348_s3 = inlined_call_operand.vmem [shape: bf16[512,8], index: 3, kind: output, shape index: {}]  }
   0x1   :  { %v14_v0 = vld [vmem:[%s1345_s0] sm:$0xff]  ;;  %v15_v4 = vld [vmem:[%s1345_s0 + $0x8] sm:$0xff]  ;;  %v16_v5 = vld [vmem:[%s1345_s0 + $0x10] sm:$0xff] }
   0x2   :  { %v765_v1 = vld [vmem:[%s1346_s1] ss:$0 sm:$0xff]  ;;  %v17_v6 = vld [vmem:[%s1345_s0 + $0x18] sm:$0xff]  ;;  %v19_v11 = vld [vmem:[%s1345_s0 + $0x28] sm:$0xff] }
   0x3   :  { %v770_v2 = vld [vmem:[%s1347_s2] ss:$0 sm:$0xff]  ;;  %v85_v3 = vmul.f32 %v765_v1, %v14_v0  ;;  %v86_v7 = vmul.f32 %v765_v1, %v15_v4  ;;  %v87_v8 = vmul.f32 %v765_v1, %v16_v5  ;;  %v88_v9 = vmul.f32 %v765_v1, %v17_v6  ;;  %v20_v12 = vld [vmem:[%s1345_s0 + $0x30] sm:$0xff]  ;;  %v21_v17 = vld [vmem:[%s1345_s0 + $0x38] sm:$0xff] }
   0x4   :  { %v18_v10 = vld [vmem:[%s1345_s0 + $0x20] sm:$0xff]  ;;  %v90_v15 = vmul.f32 %v765_v1, %v19_v11  ;;  %v91_v16 = vmul.f32 %v765_v1, %v20_v12  ;;  %v92_v21 = vmul.f32 %v765_v1, %v21_v17  ;;  %v23_v35 = vld [vmem:[%s1345_s0 + $0x48] sm:$0xff]  ;;  %v24_v36 = vld [vmem:[%s1345_s0 + $0x50] sm:$0xff] }
   0x5   :  { %v156_v13 = vadd.f32 %v770_v2, %v85_v3  ;;  %v89_v14 = vmul.f32 %v765_v1, %v18_v10  ;;  %v157_v18 = vadd.f32 %v770_v2, %v86_v7  ;;  %v158_v19 = vadd.f32 %v770_v2, %v87_v8  ;;  %v22_v30 = vld [vmem:[%s1345_s0 + $0x40] sm:$0xff]  ;;  %v25_v37 = vld [vmem:[%s1345_s0 + $0x58] sm:$0xff]  ;;  %v27_v43 = vld [vmem:[%s1345_s0 + $0x68] sm:$0xff] }
   0x6   :  { %v159_v20 = vadd.f32 %v770_v2, %v88_v9  ;;  %v161_v24 = vadd.f32 %v770_v2, %v90_v15  ;;  %v162_v25 = vadd.f32 %v770_v2, %v91_v16  ;;  %v163_v29 = vadd.f32 %v770_v2, %v92_v21  ;;  %v26_v42 = vld [vmem:[%s1345_s0 + $0x60] sm:$0xff]  ;;  %v28_v44 = vld [vmem:[%s1345_s0 + $0x70] sm:$0xff]  ;;  %v29_v49 = vld [vmem:[%s1345_s0 + $0x78] sm:$0xff] }
   0x7   :  { %v220_v22 = vmax.f32 %v156_v13, 0.0  ;;  %v160_v23 = vadd.f32 %v770_v2, %v89_v14  ;;  %v221_v26 = vmax.f32 %v157_v18, 0.0  ;;  %v222_v27 = vmax.f32 %v158_v19, 0.0  ;;  %v30_v8 = vld [vmem:[%s1345_s0 + $0x80] sm:$0xff]  ;;  %v31_v13 = vld [vmem:[%s1345_s0 + $0x88] sm:$0xff]  ;;  %v32_v14 = vld [vmem:[%s1345_s0 + $0x90] sm:$0xff] }
   0x8   :  { %v223_v28 = vmax.f32 %v159_v20, 0.0  ;;  %v225_v33 = vmax.f32 %v161_v24, 0.0  ;;  %v226_v34 = vmax.f32 %v162_v25, 0.0  ;;  %v227_v41 = vmax.f32 %v163_v29, 0.0  ;;  %v33_v15 = vld [vmem:[%s1345_s0 + $0x98] sm:$0xff]  ;;  %v34_v20 = vld [vmem:[%s1345_s0 + $0xa0] sm:$0xff] }
   0x9   :  { %v675_v31 = vpack.c.bf16 %v220_v22, %v220_v22  ;;  %v224_v32 = vmax.f32 %v160_v23, 0.0  ;;  %v676_v38 = vpack.c.bf16 %v221_v26, %v221_v26  ;;  %v677_v39 = vpack.c.bf16 %v222_v27, %v222_v27  ;;  %v35_v21 = vld [vmem:[%s1345_s0 + $0xa8] sm:$0xff]  ;;  %v36_v22 = vld [vmem:[%s1345_s0 + $0xb0] sm:$0xff]  ;;  %v37_v27 = vld [vmem:[%s1345_s0 + $0xb8] sm:$0xff] }
   0xa   :  { %v678_v40 = vpack.c.bf16 %v223_v28, %v223_v28  ;;  %v680_v46 = vpack.c.bf16 %v225_v33, %v225_v33  ;;  %v681_v47 = vpack.c.bf16 %v226_v34, %v226_v34  ;;  %v93_v48 = vmul.f32 %v765_v1, %v22_v30 }
   0xb   :  { %541 = vst.msk [vmem:[%s1348_s3] sm:$0xf] %vm540_vm0, %v675_v31  ;;  %v679_v45 = vpack.c.bf16 %v224_v32, %v224_v32  ;;  %542 = vst.msk [vmem:[%s1348_s3 + $0x4] sm:$0xf] %vm540_vm0, %v676_v38  ;;  %v682_v50 = vpack.c.bf16 %v227_v41, %v227_v41  ;;  %v94_v51 = vmul.f32 %v765_v1, %v23_v35 }
   0xc   :  { %543 = vst.msk [vmem:[%s1348_s3 + $0x8] sm:$0xf] %vm540_vm0, %v677_v39  ;;  %544 = vst.msk [vmem:[%s1348_s3 + $0xc] sm:$0xf] %vm540_vm0, %v678_v40  ;;  %v95_v52 = vmul.f32 %v765_v1, %v24_v36  ;;  %v96_v53 = vmul.f32 %v765_v1, %v25_v37  ;;  %v164_v54 = vadd.f32 %v770_v2, %v93_v48  ;;  %v38_v48 = vld [vmem:[%s1345_s0 + $0xc0] sm:$0xff] }
   0xd   :  { %545 = vst.msk [vmem:[%s1348_s3 + $0x10] sm:$0xf] %vm540_vm0, %v679_v45  ;;  %546 = vst.msk [vmem:[%s1348_s3 + $0x14] sm:$0xf] %vm540_vm0, %v680_v46  ;;  %v97_v55 = vmul.f32 %v765_v1, %v26_v42  ;;  %v98_v56 = vmul.f32 %v765_v1, %v27_v43  ;;  %v99_v57 = vmul.f32 %v765_v1, %v28_v44 }
   0xe   :  { %547 = vst.msk [vmem:[%s1348_s3 + $0x18] sm:$0xf] %vm540_vm0, %v681_v47  ;;  %548 = vst.msk [vmem:[%s1348_s3 + $0x1c] sm:$0xf] %vm540_vm0, %v682_v50  ;;  %v165_v58 = vadd.f32 %v770_v2, %v94_v51  ;;  %v166_v59 = vadd.f32 %v770_v2, %v95_v52  ;;  %v167_v60 = vadd.f32 %v770_v2, %v96_v53  ;;  %v228_v62 = vmax.f32 %v164_v54, 0.0  ;;  %v39_v53 = vld [vmem:[%s1345_s0 + $0xc8] sm:$0xff] }
   0xf   :  { %v100_v61 = vmul.f32 %v765_v1, %v29_v49  ;;  %v168_v63 = vadd.f32 %v770_v2, %v97_v55  ;;  %v169_v0 = vadd.f32 %v770_v2, %v98_v56  ;;  %v170_v3 = vadd.f32 %v770_v2, %v99_v57  ;;  %v40_v54 = vld [vmem:[%s1345_s0 + $0xd0] sm:$0xff]  ;;  %v41_v55 = vld [vmem:[%s1345_s0 + $0xd8] sm:$0xff] }
  0x10   :  { %v229_v4 = vmax.f32 %v165_v58, 0.0  ;;  %v230_v5 = vmax.f32 %v166_v59, 0.0  ;;  %v231_v6 = vmax.f32 %v167_v60, 0.0  ;;  %v683_v9 = vpack.c.bf16 %v228_v62, %v228_v62  ;;  %v42_v60 = vld [vmem:[%s1345_s0 + $0xe0] sm:$0xff]  ;;  %v44_v62 = vld [vmem:[%s1345_s0 + $0xf0] sm:$0xff] }
  0x11   :  { %v171_v7 = vadd.f32 %v770_v2, %v100_v61  ;;  %v232_v10 = vmax.f32 %v168_v63, 0.0  ;;  %v233_v11 = vmax.f32 %v169_v0, 0.0  ;;  %v234_v12 = vmax.f32 %v170_v3, 0.0  ;;  %v43_v61 = vld [vmem:[%s1345_s0 + $0xe8] sm:$0xff] }
  0x12   :  { %v684_v16 = vpack.c.bf16 %v229_v4, %v229_v4  ;;  %v685_v17 = vpack.c.bf16 %v230_v5, %v230_v5  ;;  %v686_v18 = vpack.c.bf16 %v231_v6, %v231_v6  ;;  %549 = vst.msk [vmem:[%s1348_s3 + $0x20] sm:$0xf] %vm540_vm0, %v683_v9  ;;  %v101_v26 = vmul.f32 %v765_v1, %v30_v8  ;;  %v45_v5 = vld [vmem:[%s1345_s0 + $0xf8] sm:$0xff] }
  0x13   :  { %v235_v19 = vmax.f32 %v171_v7, 0.0  ;;  %v687_v23 = vpack.c.bf16 %v232_v10, %v232_v10  ;;  %v688_v24 = vpack.c.bf16 %v233_v11, %v233_v11  ;;  %v689_v25 = vpack.c.bf16 %v234_v12, %v234_v12 }
  0x14   :  { %550 = vst.msk [vmem:[%s1348_s3 + $0x24] sm:$0xf] %vm540_vm0, %v684_v16  ;;  %551 = vst.msk [vmem:[%s1348_s3 + $0x28] sm:$0xf] %vm540_vm0, %v685_v17  ;;  %v102_v29 = vmul.f32 %v765_v1, %v31_v13  ;;  %v103_v30 = vmul.f32 %v765_v1, %v32_v14  ;;  %v104_v31 = vmul.f32 %v765_v1, %v33_v15 }
  0x15   :  { %552 = vst.msk [vmem:[%s1348_s3 + $0x2c] sm:$0xf] %vm540_vm0, %v686_v18  ;;  %v690_v28 = vpack.c.bf16 %v235_v19, %v235_v19  ;;  %553 = vst.msk [vmem:[%s1348_s3 + $0x30] sm:$0xf] %vm540_vm0, %v687_v23  ;;  %v172_v32 = vadd.f32 %v770_v2, %v101_v26  ;;  %v105_v33 = vmul.f32 %v765_v1, %v34_v20  ;;  %v46_v26 = vld [vmem:[%s1345_s0 + $0x100] sm:$0xff] }
  0x16   :  { %554 = vst.msk [vmem:[%s1348_s3 + $0x34] sm:$0xf] %vm540_vm0, %v688_v24  ;;  %555 = vst.msk [vmem:[%s1348_s3 + $0x38] sm:$0xf] %vm540_vm0, %v689_v25  ;;  %v106_v34 = vmul.f32 %v765_v1, %v35_v21  ;;  %v107_v35 = vmul.f32 %v765_v1, %v36_v22  ;;  %v173_v36 = vadd.f32 %v770_v2, %v102_v29 }
  0x17   :  { %556 = vst.msk [vmem:[%s1348_s3 + $0x3c] sm:$0xf] %vm540_vm0, %v690_v28  ;;  %v174_v37 = vadd.f32 %v770_v2, %v103_v30  ;;  %v175_v38 = vadd.f32 %v770_v2, %v104_v31  ;;  %v108_v39 = vmul.f32 %v765_v1, %v37_v27  ;;  %v236_v40 = vmax.f32 %v172_v32, 0.0  ;;  %v47_v31 = vld [vmem:[%s1345_s0 + $0x108] sm:$0xff]  ;;  %v48_v32 = vld [vmem:[%s1345_s0 + $0x110] sm:$0xff] }
  0x18   :  { %v176_v41 = vadd.f32 %v770_v2, %v105_v33  ;;  %v177_v42 = vadd.f32 %v770_v2, %v106_v34  ;;  %v178_v43 = vadd.f32 %v770_v2, %v107_v35  ;;  %v237_v44 = vmax.f32 %v173_v36, 0.0  ;;  %v49_v33 = vld [vmem:[%s1345_s0 + $0x118] sm:$0xff] }
  0x19   :  { %v238_v45 = vmax.f32 %v174_v37, 0.0  ;;  %v239_v46 = vmax.f32 %v175_v38, 0.0  ;;  %v179_v47 = vadd.f32 %v770_v2, %v108_v39  ;;  %v691_v49 = vpack.c.bf16 %v236_v40, %v236_v40  ;;  %v50_v38 = vld [vmem:[%s1345_s0 + $0x120] sm:$0xff]  ;;  %v51_v39 = vld [vmem:[%s1345_s0 + $0x128] sm:$0xff]  ;;  %v52_v40 = vld [vmem:[%s1345_s0 + $0x130] sm:$0xff] }
  0x1a   :  { %v240_v50 = vmax.f32 %v176_v41, 0.0  ;;  %v241_v51 = vmax.f32 %v177_v42, 0.0  ;;  %v242_v52 = vmax.f32 %v178_v43, 0.0  ;;  %v692_v56 = vpack.c.bf16 %v237_v44, %v237_v44 }
  0x1b   :  { %v693_v57 = vpack.c.bf16 %v238_v45, %v238_v45  ;;  %v694_v58 = vpack.c.bf16 %v239_v46, %v239_v46  ;;  %v243_v59 = vmax.f32 %v179_v47, 0.0  ;;  %557 = vst.msk [vmem:[%s1348_s3 + $0x40] sm:$0xf] %vm540_vm0, %v691_v49  ;;  %v109_v4 = vmul.f32 %v765_v1, %v38_v48  ;;  %v53_v45 = vld [vmem:[%s1345_s0 + $0x138] sm:$0xff] }
  0x1c   :  { %v695_v63 = vpack.c.bf16 %v240_v50, %v240_v50  ;;  %v696_v0 = vpack.c.bf16 %v241_v51, %v241_v51  ;;  %v697_v3 = vpack.c.bf16 %v242_v52, %v242_v52  ;;  %558 = vst.msk [vmem:[%s1348_s3 + $0x44] sm:$0xf] %vm540_vm0, %v692_v56  ;;  %v110_v7 = vmul.f32 %v765_v1, %v39_v53 }
  0x1d   :  { %559 = vst.msk [vmem:[%s1348_s3 + $0x48] sm:$0xf] %vm540_vm0, %v693_v57  ;;  %560 = vst.msk [vmem:[%s1348_s3 + $0x4c] sm:$0xf] %vm540_vm0, %v694_v58  ;;  %v698_v6 = vpack.c.bf16 %v243_v59, %v243_v59  ;;  %v111_v8 = vmul.f32 %v765_v1, %v40_v54  ;;  %v112_v9 = vmul.f32 %v765_v1, %v41_v55 }
  0x1e   :  { %561 = vst.msk [vmem:[%s1348_s3 + $0x50] sm:$0xf] %vm540_vm0, %v695_v63  ;;  %562 = vst.msk [vmem:[%s1348_s3 + $0x54] sm:$0xf] %vm540_vm0, %v696_v0  ;;  %v180_v10 = vadd.f32 %v770_v2, %v109_v4  ;;  %v113_v11 = vmul.f32 %v765_v1, %v42_v60  ;;  %v114_v12 = vmul.f32 %v765_v1, %v43_v61  ;;  %v54_v4 = vld [vmem:[%s1345_s0 + $0x140] sm:$0xff] }
  0x1f   :  { %563 = vst.msk [vmem:[%s1348_s3 + $0x58] sm:$0xf] %vm540_vm0, %v697_v3  ;;  %v115_v13 = vmul.f32 %v765_v1, %v44_v62  ;;  %564 = vst.msk [vmem:[%s1348_s3 + $0x5c] sm:$0xf] %vm540_vm0, %v698_v6  ;;  %v181_v14 = vadd.f32 %v770_v2, %v110_v7  ;;  %v182_v15 = vadd.f32 %v770_v2, %v111_v8 }
  0x20   :  { %v183_v16 = vadd.f32 %v770_v2, %v112_v9  ;;  %v116_v17 = vmul.f32 %v765_v1, %v45_v5  ;;  %v244_v18 = vmax.f32 %v180_v10, 0.0  ;;  %v184_v19 = vadd.f32 %v770_v2, %v113_v11  ;;  %v55_v9 = vld [vmem:[%s1345_s0 + $0x148] sm:$0xff]  ;;  %v56_v10 = vld [vmem:[%s1345_s0 + $0x150] sm:$0xff]  ;;  %v57_v11 = vld [vmem:[%s1345_s0 + $0x158] sm:$0xff] }
  0x21   :  { %v185_v20 = vadd.f32 %v770_v2, %v114_v12  ;;  %v186_v21 = vadd.f32 %v770_v2, %v115_v13  ;;  %v245_v22 = vmax.f32 %v181_v14, 0.0  ;;  %v246_v23 = vmax.f32 %v182_v15, 0.0 }
  0x22   :  { %v247_v24 = vmax.f32 %v183_v16, 0.0  ;;  %v187_v25 = vadd.f32 %v770_v2, %v116_v17  ;;  %v699_v27 = vpack.c.bf16 %v244_v18, %v244_v18  ;;  %v248_v28 = vmax.f32 %v184_v19, 0.0  ;;  %v58_v16 = vld [vmem:[%s1345_s0 + $0x160] sm:$0xff]  ;;  %v59_v17 = vld [vmem:[%s1345_s0 + $0x168] sm:$0xff]  ;;  %v60_v18 = vld [vmem:[%s1345_s0 + $0x170] sm:$0xff] }
  0x23   :  { %v249_v29 = vmax.f32 %v185_v20, 0.0  ;;  %v250_v30 = vmax.f32 %v186_v21, 0.0  ;;  %v700_v34 = vpack.c.bf16 %v245_v22, %v245_v22  ;;  %v701_v35 = vpack.c.bf16 %v246_v23, %v246_v23  ;;  %v61_v23 = vld [vmem:[%s1345_s0 + $0x178] sm:$0xff] }
  0x24   :  { %v702_v36 = vpack.c.bf16 %v247_v24, %v247_v24  ;;  %v251_v37 = vmax.f32 %v187_v25, 0.0  ;;  %565 = vst.msk [vmem:[%s1348_s3 + $0x60] sm:$0xf] %vm540_vm0, %v699_v27  ;;  %v703_v41 = vpack.c.bf16 %v248_v28, %v248_v28  ;;  %v117_v44 = vmul.f32 %v765_v1, %v46_v26 }
  0x25   :  { %v704_v42 = vpack.c.bf16 %v249_v29, %v249_v29  ;;  %v705_v43 = vpack.c.bf16 %v250_v30, %v250_v30  ;;  %566 = vst.msk [vmem:[%s1348_s3 + $0x64] sm:$0xf] %vm540_vm0, %v700_v34  ;;  %567 = vst.msk [vmem:[%s1348_s3 + $0x68] sm:$0xf] %vm540_vm0, %v701_v35  ;;  %v118_v47 = vmul.f32 %v765_v1, %v47_v31 }
  0x26   :  { %568 = vst.msk [vmem:[%s1348_s3 + $0x6c] sm:$0xf] %vm540_vm0, %v702_v36  ;;  %v706_v46 = vpack.c.bf16 %v251_v37, %v251_v37  ;;  %v119_v48 = vmul.f32 %v765_v1, %v48_v32  ;;  %v120_v49 = vmul.f32 %v765_v1, %v49_v33  ;;  %569 = vst.msk [vmem:[%s1348_s3 + $0x70] sm:$0xf] %vm540_vm0, %v703_v41 }
  0x27   :  { %570 = vst.msk [vmem:[%s1348_s3 + $0x74] sm:$0xf] %vm540_vm0, %v704_v42  ;;  %571 = vst.msk [vmem:[%s1348_s3 + $0x78] sm:$0xf] %vm540_vm0, %v705_v43  ;;  %v188_v50 = vadd.f32 %v770_v2, %v117_v44  ;;  %v121_v51 = vmul.f32 %v765_v1, %v50_v38  ;;  %v122_v52 = vmul.f32 %v765_v1, %v51_v39  ;;  %v62_v44 = vld [vmem:[%s1345_s0 + $0x180] sm:$0xff] }
  0x28   :  { %v123_v53 = vmul.f32 %v765_v1, %v52_v40  ;;  %572 = vst.msk [vmem:[%s1348_s3 + $0x7c] sm:$0xf] %vm540_vm0, %v706_v46  ;;  %v189_v54 = vadd.f32 %v770_v2, %v118_v47  ;;  %v190_v55 = vadd.f32 %v770_v2, %v119_v48  ;;  %v191_v56 = vadd.f32 %v770_v2, %v120_v49  ;;  %v63_v49 = vld [vmem:[%s1345_s0 + $0x188] sm:$0xff] }
  0x29   :  { %v124_v57 = vmul.f32 %v765_v1, %v53_v45  ;;  %v252_v58 = vmax.f32 %v188_v50, 0.0  ;;  %v192_v59 = vadd.f32 %v770_v2, %v121_v51  ;;  %v193_v60 = vadd.f32 %v770_v2, %v122_v52  ;;  %v64_v50 = vld [vmem:[%s1345_s0 + $0x190] sm:$0xff]  ;;  %v65_v51 = vld [vmem:[%s1345_s0 + $0x198] sm:$0xff] }
  0x2a   :  { %v194_v61 = vadd.f32 %v770_v2, %v123_v53  ;;  %v253_v62 = vmax.f32 %v189_v54, 0.0  ;;  %v254_v63 = vmax.f32 %v190_v55, 0.0  ;;  %v255_v0 = vmax.f32 %v191_v56, 0.0  ;;  %v66_v56 = vld [vmem:[%s1345_s0 + $0x1a0] sm:$0xff] }
  0x2b   :  { %v195_v3 = vadd.f32 %v770_v2, %v124_v57  ;;  %v707_v5 = vpack.c.bf16 %v252_v58, %v252_v58  ;;  %v256_v6 = vmax.f32 %v192_v59, 0.0  ;;  %v257_v7 = vmax.f32 %v193_v60, 0.0  ;;  %v67_v57 = vld [vmem:[%s1345_s0 + $0x1a8] sm:$0xff]  ;;  %v68_v58 = vld [vmem:[%s1345_s0 + $0x1b0] sm:$0xff] }
  0x2c   :  { %v258_v8 = vmax.f32 %v194_v61, 0.0  ;;  %v708_v12 = vpack.c.bf16 %v253_v62, %v253_v62  ;;  %v709_v13 = vpack.c.bf16 %v254_v63, %v254_v63  ;;  %v710_v14 = vpack.c.bf16 %v255_v0, %v255_v0  ;;  %v69_v63 = vld [vmem:[%s1345_s0 + $0x1b8] sm:$0xff] }
  0x2d   :  { %v259_v15 = vmax.f32 %v195_v3, 0.0  ;;  %573 = vst.msk [vmem:[%s1348_s3 + $0x80] sm:$0xf] %vm540_vm0, %v707_v5  ;;  %v711_v19 = vpack.c.bf16 %v256_v6, %v256_v6  ;;  %v712_v20 = vpack.c.bf16 %v257_v7, %v257_v7  ;;  %v125_v22 = vmul.f32 %v765_v1, %v54_v4 }
  0x2e   :  { %v713_v21 = vpack.c.bf16 %v258_v8, %v258_v8  ;;  %574 = vst.msk [vmem:[%s1348_s3 + $0x84] sm:$0xf] %vm540_vm0, %v708_v12  ;;  %575 = vst.msk [vmem:[%s1348_s3 + $0x88] sm:$0xf] %vm540_vm0, %v709_v13  ;;  %v126_v25 = vmul.f32 %v765_v1, %v55_v9  ;;  %v127_v26 = vmul.f32 %v765_v1, %v56_v10 }
  0x2f   :  { %576 = vst.msk [vmem:[%s1348_s3 + $0x8c] sm:$0xf] %vm540_vm0, %v710_v14  ;;  %v714_v24 = vpack.c.bf16 %v259_v15, %v259_v15  ;;  %v128_v27 = vmul.f32 %v765_v1, %v57_v11  ;;  %577 = vst.msk [vmem:[%s1348_s3 + $0x90] sm:$0xf] %vm540_vm0, %v711_v19  ;;  %v196_v28 = vadd.f32 %v770_v2, %v125_v22  ;;  %v70_v22 = vld [vmem:[%s1345_s0 + $0x1c0] sm:$0xff] }
  0x30   :  { %578 = vst.msk [vmem:[%s1348_s3 + $0x94] sm:$0xf] %vm540_vm0, %v712_v20  ;;  %579 = vst.msk [vmem:[%s1348_s3 + $0x98] sm:$0xf] %vm540_vm0, %v713_v21  ;;  %v129_v29 = vmul.f32 %v765_v1, %v58_v16  ;;  %v130_v30 = vmul.f32 %v765_v1, %v59_v17  ;;  %v131_v31 = vmul.f32 %v765_v1, %v60_v18 }
  0x31   :  { %580 = vst.msk [vmem:[%s1348_s3 + $0x9c] sm:$0xf] %vm540_vm0, %v714_v24  ;;  %v197_v32 = vadd.f32 %v770_v2, %v126_v25  ;;  %v198_v33 = vadd.f32 %v770_v2, %v127_v26  ;;  %v199_v34 = vadd.f32 %v770_v2, %v128_v27  ;;  %v132_v35 = vmul.f32 %v765_v1, %v61_v23  ;;  %v71_v27 = vld [vmem:[%s1345_s0 + $0x1c8] sm:$0xff] }
  0x32   :  { %v260_v36 = vmax.f32 %v196_v28, 0.0  ;;  %v200_v37 = vadd.f32 %v770_v2, %v129_v29  ;;  %v201_v38 = vadd.f32 %v770_v2, %v130_v30  ;;  %v202_v39 = vadd.f32 %v770_v2, %v131_v31  ;;  %v72_v28 = vld [vmem:[%s1345_s0 + $0x1d0] sm:$0xff]  ;;  %v73_v29 = vld [vmem:[%s1345_s0 + $0x1d8] sm:$0xff] }
  0x33   :  { %v261_v40 = vmax.f32 %v197_v32, 0.0  ;;  %v262_v41 = vmax.f32 %v198_v33, 0.0  ;;  %v263_v42 = vmax.f32 %v199_v34, 0.0  ;;  %v203_v43 = vadd.f32 %v770_v2, %v132_v35  ;;  %v74_v34 = vld [vmem:[%s1345_s0 + $0x1e0] sm:$0xff]  ;;  %v75_v35 = vld [vmem:[%s1345_s0 + $0x1e8] sm:$0xff] }
  0x34   :  { %v715_v45 = vpack.c.bf16 %v260_v36, %v260_v36  ;;  %v264_v46 = vmax.f32 %v200_v37, 0.0  ;;  %v265_v47 = vmax.f32 %v201_v38, 0.0  ;;  %v266_v48 = vmax.f32 %v202_v39, 0.0  ;;  %v76_v36 = vld [vmem:[%s1345_s0 + $0x1f0] sm:$0xff] }
  0x35   :  { %v716_v52 = vpack.c.bf16 %v261_v40, %v261_v40  ;;  %v717_v53 = vpack.c.bf16 %v262_v41, %v262_v41  ;;  %v718_v54 = vpack.c.bf16 %v263_v42, %v263_v42  ;;  %v267_v55 = vmax.f32 %v203_v43, 0.0  ;;  %v77_v41 = vld [vmem:[%s1345_s0 + $0x1f8] sm:$0xff] }
  0x36   :  { %581 = vst.msk [vmem:[%s1348_s3 + $0xa0] sm:$0xf] %vm540_vm0, %v715_v45  ;;  %v719_v59 = vpack.c.bf16 %v264_v46, %v264_v46  ;;  %v720_v60 = vpack.c.bf16 %v265_v47, %v265_v47  ;;  %v721_v61 = vpack.c.bf16 %v266_v48, %v266_v48  ;;  %v133_v62 = vmul.f32 %v765_v1, %v62_v44 }
  0x37   :  { %582 = vst.msk [vmem:[%s1348_s3 + $0xa4] sm:$0xf] %vm540_vm0, %v716_v52  ;;  %583 = vst.msk [vmem:[%s1348_s3 + $0xa8] sm:$0xf] %vm540_vm0, %v717_v53  ;;  %v722_v0 = vpack.c.bf16 %v267_v55, %v267_v55  ;;  %v134_v3 = vmul.f32 %v765_v1, %v63_v49  ;;  %v135_v4 = vmul.f32 %v765_v1, %v64_v50 }
  0x38   :  { %584 = vst.msk [vmem:[%s1348_s3 + $0xac] sm:$0xf] %vm540_vm0, %v718_v54  ;;  %v136_v5 = vmul.f32 %v765_v1, %v65_v51  ;;  %585 = vst.msk [vmem:[%s1348_s3 + $0xb0] sm:$0xf] %vm540_vm0, %v719_v59  ;;  %v204_v6 = vadd.f32 %v770_v2, %v133_v62  ;;  %v137_v7 = vmul.f32 %v765_v1, %v66_v56 }
  0x39   :  { %586 = vst.msk [vmem:[%s1348_s3 + $0xb4] sm:$0xf] %vm540_vm0, %v720_v60  ;;  %587 = vst.msk [vmem:[%s1348_s3 + $0xb8] sm:$0xf] %vm540_vm0, %v721_v61  ;;  %v138_v8 = vmul.f32 %v765_v1, %v67_v57  ;;  %v139_v9 = vmul.f32 %v765_v1, %v68_v58  ;;  %v205_v10 = vadd.f32 %v770_v2, %v134_v3 }
  0x3a   :  { %588 = vst.msk [vmem:[%s1348_s3 + $0xbc] sm:$0xf] %vm540_vm0, %v722_v0  ;;  %v206_v11 = vadd.f32 %v770_v2, %v135_v4  ;;  %v207_v12 = vadd.f32 %v770_v2, %v136_v5  ;;  %v140_v13 = vmul.f32 %v765_v1, %v69_v63  ;;  %v268_v14 = vmax.f32 %v204_v6, 0.0 }
  0x3b   :  { %v208_v15 = vadd.f32 %v770_v2, %v137_v7  ;;  %v209_v16 = vadd.f32 %v770_v2, %v138_v8  ;;  %v210_v17 = vadd.f32 %v770_v2, %v139_v9  ;;  %v269_v18 = vmax.f32 %v205_v10, 0.0 }
  0x3c   :  { %v270_v19 = vmax.f32 %v206_v11, 0.0  ;;  %v271_v20 = vmax.f32 %v207_v12, 0.0  ;;  %v211_v21 = vadd.f32 %v770_v2, %v140_v13  ;;  %v723_v23 = vpack.c.bf16 %v268_v14, %v268_v14 }
  0x3d   :  { %v272_v24 = vmax.f32 %v208_v15, 0.0  ;;  %v273_v25 = vmax.f32 %v209_v16, 0.0  ;;  %v274_v26 = vmax.f32 %v210_v17, 0.0  ;;  %v724_v30 = vpack.c.bf16 %v269_v18, %v269_v18 }
  0x3e   :  { %v725_v31 = vpack.c.bf16 %v270_v19, %v270_v19  ;;  %v726_v32 = vpack.c.bf16 %v271_v20, %v271_v20  ;;  %v275_v33 = vmax.f32 %v211_v21, 0.0  ;;  %589 = vst.msk [vmem:[%s1348_s3 + $0xc0] sm:$0xf] %vm540_vm0, %v723_v23  ;;  %v141_v40 = vmul.f32 %v765_v1, %v70_v22 }
  0x3f   :  { %v727_v37 = vpack.c.bf16 %v272_v24, %v272_v24  ;;  %v728_v38 = vpack.c.bf16 %v273_v25, %v273_v25  ;;  %v729_v39 = vpack.c.bf16 %v274_v26, %v274_v26  ;;  %590 = vst.msk [vmem:[%s1348_s3 + $0xc4] sm:$0xf] %vm540_vm0, %v724_v30  ;;  %v142_v43 = vmul.f32 %v765_v1, %v71_v27 }
  0x40   :  { %591 = vst.msk [vmem:[%s1348_s3 + $0xc8] sm:$0xf] %vm540_vm0, %v725_v31  ;;  %592 = vst.msk [vmem:[%s1348_s3 + $0xcc] sm:$0xf] %vm540_vm0, %v726_v32  ;;  %v730_v42 = vpack.c.bf16 %v275_v33, %v275_v33  ;;  %v143_v44 = vmul.f32 %v765_v1, %v72_v28  ;;  %v144_v45 = vmul.f32 %v765_v1, %v73_v29 }
  0x41   :  { %593 = vst.msk [vmem:[%s1348_s3 + $0xd0] sm:$0xf] %vm540_vm0, %v727_v37  ;;  %594 = vst.msk [vmem:[%s1348_s3 + $0xd4] sm:$0xf] %vm540_vm0, %v728_v38  ;;  %v212_v46 = vadd.f32 %v770_v2, %v141_v40  ;;  %v145_v47 = vmul.f32 %v765_v1, %v74_v34  ;;  %v146_v48 = vmul.f32 %v765_v1, %v75_v35 }
  0x42   :  { %595 = vst.msk [vmem:[%s1348_s3 + $0xd8] sm:$0xf] %vm540_vm0, %v729_v39  ;;  %v147_v49 = vmul.f32 %v765_v1, %v76_v36  ;;  %596 = vst.msk [vmem:[%s1348_s3 + $0xdc] sm:$0xf] %vm540_vm0, %v730_v42  ;;  %v213_v50 = vadd.f32 %v770_v2, %v142_v43  ;;  %v214_v51 = vadd.f32 %v770_v2, %v143_v44 }
  0x43   :  { %v215_v52 = vadd.f32 %v770_v2, %v144_v45  ;;  %v148_v53 = vmul.f32 %v765_v1, %v77_v41  ;;  %v276_v54 = vmax.f32 %v212_v46, 0.0  ;;  %v216_v55 = vadd.f32 %v770_v2, %v145_v47 }
  0x44   :  { %v217_v56 = vadd.f32 %v770_v2, %v146_v48  ;;  %v218_v57 = vadd.f32 %v770_v2, %v147_v49  ;;  %v277_v58 = vmax.f32 %v213_v50, 0.0  ;;  %v278_v59 = vmax.f32 %v214_v51, 0.0 }
  0x45   :  { %v279_v60 = vmax.f32 %v215_v52, 0.0  ;;  %v219_v61 = vadd.f32 %v770_v2, %v148_v53  ;;  %v731_v62 = vpack.c.bf16 %v276_v54, %v276_v54  ;;  %v280_v63 = vmax.f32 %v216_v55, 0.0 }
  0x46   :  { %v281_v0 = vmax.f32 %v217_v56, 0.0  ;;  %v282_v3 = vmax.f32 %v218_v57, 0.0  ;;  %v732_v4 = vpack.c.bf16 %v277_v58, %v277_v58  ;;  %v733_v5 = vpack.c.bf16 %v278_v59, %v278_v59 }
  0x47   :  { %v734_v6 = vpack.c.bf16 %v279_v60, %v279_v60  ;;  %v283_v1 = vmax.f32 %v219_v61, 0.0  ;;  %597 = vst.msk [vmem:[%s1348_s3 + $0xe0] sm:$0xf] %vm540_vm0, %v731_v62  ;;  %v735_v7 = vpack.c.bf16 %v280_v63, %v280_v63 }
  0x48   :  { %v736_v8 = vpack.c.bf16 %v281_v0, %v281_v0  ;;  %v737_v9 = vpack.c.bf16 %v282_v3, %v282_v3  ;;  %598 = vst.msk [vmem:[%s1348_s3 + $0xe4] sm:$0xf] %vm540_vm0, %v732_v4  ;;  %599 = vst.msk [vmem:[%s1348_s3 + $0xe8] sm:$0xf] %vm540_vm0, %v733_v5 }
  0x49   :  { %600 = vst.msk [vmem:[%s1348_s3 + $0xec] sm:$0xf] %vm540_vm0, %v734_v6  ;;  %v738_v2 = vpack.c.bf16 %v283_v1, %v283_v1  ;;  %601 = vst.msk [vmem:[%s1348_s3 + $0xf0] sm:$0xf] %vm540_vm0, %v735_v7 }
  0x4a   :  { %602 = vst.msk [vmem:[%s1348_s3 + $0xf4] sm:$0xf] %vm540_vm0, %v736_v8  ;;  %603 = vst.msk [vmem:[%s1348_s3 + $0xf8] sm:$0xf] %vm540_vm0, %v737_v9 }
  0x4b   :  { %604 = vst.msk [vmem:[%s1348_s3 + $0xfc] sm:$0xf] %vm540_vm0, %v738_v2 }

// kernel: generator_forward.58
= control target key start
LH: loop header
LB: loop body
LE: loop exit
PB: predicated region body
PF: predicated region fallthrough
CT: control target
= control target key end

     0   :  { %s1094_s9 = smov 0   ;;  %s1096_s10 = smov 0   ;;  %s1205_s0 = inlined_call_operand.vmem [shape: bf16[2048,32], index: 0, kind: input, shape index: {}]   ;;  %s1206_s1 = inlined_call_operand.vmem [shape: bf16[32,128], index: 1, kind: input, shape index: {}]   ;;  %s1207_s2 = inlined_call_operand.vmem [shape: f32[2048,128], index: 2, kind: output, shape index: {}]  }
   0x1   :  { %s1098_s11 = smov 0  }
   0x2 LB: > { %s24_s12 = sadd.s32 1, %s1073_s10  ;;  %p850_p0 = scmp.ge.s32.totalorder %s1077_s11, 1  ;;  %s1077_s11 = sphi %s1098_s11, %s12_s11   ;;  %s1073_s10 = sphi %s1096_s10, %s1209_s10   ;;  %s1069_s9 = sphi %s1094_s9, %s1208_s9  }
   0x3   : > { %p26_p1 = scmp.ge.s32.totalorder %s24_s12, 8  ;;  %p141_p2 = scmp.lt.s32.totalorder %s1077_s11, 9 }
   0x5   : > { %s1211_s12 = smov (%p26_p1, %s24_s12), 0  ;;  %p142_p3 = pnand %p850_p0, %p141_p2 }
   0x6   : > { %v973_v0 = vld [vmem:[%s1206_s1] sm:$0xff] (!%p142_p3)   ;;  %s851_s15 = sshll.u32 (!%p142_p3), %s1069_s9, 5  ;;  %v974_v1 = vld [vmem:[%s1206_s1 + $0x8] sm:$0xff] (!%p142_p3)   ;;  %vm389_vm0 = vcmask (!%p142_p3), 261120  }
   0x7   : > { %145 = sbr.rel (%p142_p3) target bundleno = 276 (0x114), region = 28  ;;  %p172_p4 = scmp.lt.s32.totalorder (!%p142_p3), %s851_s15, 255  ;;  %909 = vmatprep.subr.bf16.mxu0 (!%p142_p3), %v973_v0  ;;  %945 = vmatprep.subr.bf16.mxu1 (!%p142_p3), %v973_v0 }
   0x8   : > { %910 = vmatpush3.bf16.msra.mxu0 (!%p142_p3), %v973_v0  ;;  %947 = vmatpush3.bf16.msra.mxu1 (!%p142_p3), %v973_v0 }
   0x9   : > { %911 = vmatprep.subr.bf16.mxu0 (!%p142_p3), %v974_v1  ;;  %946 = vmatprep.subr.bf16.mxu1 (!%p142_p3), %v974_v1 }
   0xc   : > { %912 = vmatpush3.bf16.msra.mxu0 (!%p142_p3), %v974_v1  ;;  %948 = vmatpush3.bf16.msra.mxu1 (!%p142_p3), %v974_v1 }
   0xe   : > { %s1213_s15 = smov (!%p172_p4, %s851_s15), 255 }
   0xf   : > { %s852_s18 = sshll.u32 %s1213_s15, 2  ;;  %s854_s22 = sshll.u32 %s1213_s15, 3 }
  0x10   : > { %s1124_s21 = scalar_lea.vmem %s1205_s0, %s852_s18  ;;  %s1162_s25 = scalar_lea.vmem %s1207_s2, %s854_s22 }
  0x11   : > { %v975_v2 = vld [vmem:[%s1124_s21] sm:$0xff]   ;;  %v977_v4 = vld [vmem:[%s1124_s21 + $0x8] sm:$0xff]   ;;  %v979_v6 = vld [vmem:[%s1124_s21 + $0x10] sm:$0xff]  }
  0x12   : > { %v976_v3 = vld [vmem:[%s1124_s21 + $0x40] sm:$0xff]   ;;  %913 = vmatprep.mubr.msk.bf16.mxu0 %vm389_vm0, %v975_v2  ;;  %v978_v5 = vld [vmem:[%s1124_s21 + $0x48] sm:$0xff]   ;;  %v980_v7 = vld [vmem:[%s1124_s21 + $0x50] sm:$0xff]  }
  0x13   : > { %929 = vmatprep.mubr.msk.bf16.mxu1 %vm389_vm0, %v976_v3  ;;  %914 = vmatmul.mubr.msk.bf16.vlgmr.msra.gmra.mrb[0].mxu0 %vm389_vm0, %v977_v4  ;;  %v981_v8 = vld [vmem:[%s1124_s21 + $0x18] sm:$0xff]   ;;  %v983_v10 = vld [vmem:[%s1124_s21 + $0x20] sm:$0xff]   ;;  %v985_v12 = vld [vmem:[%s1124_s21 + $0x28] sm:$0xff]  }
  0x14   : > { %930 = vmatmul.mubr.msk.bf16.vlgmr.msra.gmra.mrb[0].mxu1 %vm389_vm0, %v978_v5  ;;  %917 = vmatprep.mubr.msk.bf16.mxu0 %vm389_vm0, %v979_v6  ;;  %v982_v9 = vld [vmem:[%s1124_s21 + $0x58] sm:$0xff]   ;;  %v984_v11 = vld [vmem:[%s1124_s21 + $0x60] sm:$0xff]   ;;  %v986_v13 = vld [vmem:[%s1124_s21 + $0x68] sm:$0xff]  }
  0x15   : > { %933 = vmatprep.mubr.msk.bf16.mxu1 %vm389_vm0, %v980_v7  ;;  %v987_v14 = vld [vmem:[%s1124_s21 + $0x30] sm:$0xff]   ;;  %v989_v16 = vld [vmem:[%s1124_s21 + $0x38] sm:$0xff]  }
  0x16   : > { %v988_v15 = vld [vmem:[%s1124_s21 + $0x70] sm:$0xff]   ;;  %v990_v17 = vld [vmem:[%s1124_s21 + $0x78] sm:$0xff]  }
  0x1b   : > { %918 = vmatmul.mubr.msk.bf16.gmra.mrb[4].mxu0 %vm389_vm0, %v981_v8 }
  0x1c   : > { %934 = vmatmul.mubr.msk.bf16.gmra.mrb[4].mxu1 %vm389_vm0, %v982_v9  ;;  %921 = vmatprep.mubr.msk.bf16.mxu0 %vm389_vm0, %v983_v10 }
  0x1d   : > { %937 = vmatprep.mubr.msk.bf16.mxu1 %vm389_vm0, %v984_v11 }
  0x23   : > { %922 = vmatmul.mubr.msk.bf16.gmra.mrb[8].mxu0 %vm389_vm0, %v985_v12 }
  0x24   : > { %938 = vmatmul.mubr.msk.bf16.gmra.mrb[8].mxu1 %vm389_vm0, %v986_v13  ;;  %925 = vmatprep.mubr.msk.bf16.mxu0 %vm389_vm0, %v987_v14 }
  0x25   : > { %941 = vmatprep.mubr.msk.bf16.mxu1 %vm389_vm0, %v988_v15 }
  0x2b   : > { %926 = vmatmul.mubr.msk.bf16.gmra.mrb[12].mxu0 %vm389_vm0, %v989_v16 }
  0x2c   : > { %942 = vmatmul.mubr.msk.bf16.gmra.mrb[12].mxu1 %vm389_vm0, %v990_v17 }
  0xe6   : > { %v915_v18 = vpop.f32.mrb[0].mxu0 }
  0xe7   : > { %991 = vtanh.f32 %v915_v18  ;;  %v931_v19 = vpop.f32.mrb[0].mxu1  ;;  %v472_v20 = vpop.f32.mrb[1].mxu0 }
  0xe8   : > { %993 = vtanh.f32 %v931_v19  ;;  %v536_v21 = vpop.f32.mrb[1].mxu1  ;;  %v916_v22 = vpop.f32.mrb[2].mxu0 }
  0xe9   : > { %995 = vtanh.f32 %v472_v20  ;;  %v932_v23 = vpop.f32.mrb[2].mxu1  ;;  %v475_v24 = vpop.f32.mrb[3].mxu0 }
  0xea   : > { %997 = vtanh.f32 %v536_v21  ;;  %v539_v25 = vpop.f32.mrb[3].mxu1 }
  0xeb   : > { %999 = vtanh.f32 %v916_v22 }
  0xec   : > { %1001 = vtanh.f32 %v932_v23 }
  0xed   : > { %1003 = vtanh.f32 %v475_v24 }
  0xee   : > { %1005 = vtanh.f32 %v539_v25  ;;  %v919_v26 = vpop.f32.mrb[4].mxu0 }
  0xef   : > { %1007 = vtanh.f32 %v919_v26  ;;  %v935_v27 = vpop.f32.mrb[4].mxu1  ;;  %v488_v28 = vpop.f32.mrb[5].mxu0 }
  0xf0   : > { %1009 = vtanh.f32 %v935_v27  ;;  %v552_v29 = vpop.f32.mrb[5].mxu1  ;;  %v920_v30 = vpop.f32.mrb[6].mxu0 }
  0xf1   : > { %v992_v31 = vpop.eup %991  ;;  %1011 = vtanh.f32 %v488_v28  ;;  %v936_v32 = vpop.f32.mrb[6].mxu1 }
  0xf2   : > { %v491_v33 = vpop.f32.mrb[7].mxu0  ;;  %v994_v34 = vpop.eup %993  ;;  %732 = vst [vmem:[%s1162_s25 + $0x10] sm:$0xff] %v992_v31  ;;  %1013 = vtanh.f32 %v552_v29 }
  0xf3   : > { %v555_v35 = vpop.f32.mrb[7].mxu1  ;;  %v996_v36 = vpop.eup %995  ;;  %748 = vst [vmem:[%s1162_s25 + $0x90] sm:$0xff] %v994_v34  ;;  %1015 = vtanh.f32 %v920_v30 }
  0xf4   : > { %v998_v37 = vpop.eup %997  ;;  %730 = vst [vmem:[%s1162_s25] sm:$0xff] %v996_v36  ;;  %1017 = vtanh.f32 %v936_v32 }
  0xf5   : > { %v1000_v38 = vpop.eup %999  ;;  %746 = vst [vmem:[%s1162_s25 + $0x80] sm:$0xff] %v998_v37  ;;  %1019 = vtanh.f32 %v491_v33 }
  0xf6   : > { %v1002_v39 = vpop.eup %1001  ;;  %733 = vst [vmem:[%s1162_s25 + $0x18] sm:$0xff] %v1000_v38  ;;  %1021 = vtanh.f32 %v555_v35  ;;  %v923_v40 = vpop.f32.mrb[8].mxu0 }
  0xf7   : > { %v1004_v41 = vpop.eup %1003  ;;  %749 = vst [vmem:[%s1162_s25 + $0x98] sm:$0xff] %v1002_v39  ;;  %1023 = vtanh.f32 %v923_v40  ;;  %v939_v42 = vpop.f32.mrb[8].mxu1 }
  0xf8   : > { %v504_v43 = vpop.f32.mrb[9].mxu0  ;;  %v1006_v44 = vpop.eup %1005  ;;  %731 = vst [vmem:[%s1162_s25 + $0x8] sm:$0xff] %v1004_v41  ;;  %1025 = vtanh.f32 %v939_v42 }
  0xf9   : > { %v568_v45 = vpop.f32.mrb[9].mxu1  ;;  %v924_v46 = vpop.f32.mrb[10].mxu0  ;;  %747 = vst [vmem:[%s1162_s25 + $0x88] sm:$0xff] %v1006_v44  ;;  %1027 = vtanh.f32 %v504_v43 }
  0xfa   : > { %v1008_v47 = vpop.eup %1007  ;;  %v940_v48 = vpop.f32.mrb[10].mxu1  ;;  %1029 = vtanh.f32 %v568_v45 }
  0xfb   : > { %v507_v49 = vpop.f32.mrb[11].mxu0  ;;  %v1010_v50 = vpop.eup %1009  ;;  %736 = vst [vmem:[%s1162_s25 + $0x30] sm:$0xff] %v1008_v47  ;;  %1031 = vtanh.f32 %v924_v46 }
  0xfc   : > { %v571_v51 = vpop.f32.mrb[11].mxu1  ;;  %v1012_v52 = vpop.eup %1011  ;;  %752 = vst [vmem:[%s1162_s25 + $0xb0] sm:$0xff] %v1010_v50  ;;  %1033 = vtanh.f32 %v940_v48 }
  0xfd   : > { %v1014_v53 = vpop.eup %1013  ;;  %734 = vst [vmem:[%s1162_s25 + $0x20] sm:$0xff] %v1012_v52  ;;  %1035 = vtanh.f32 %v507_v49 }
  0xfe   : > { %v1016_v54 = vpop.eup %1015  ;;  %750 = vst [vmem:[%s1162_s25 + $0xa0] sm:$0xff] %v1014_v53  ;;  %1037 = vtanh.f32 %v571_v51  ;;  %v927_v56 = vpop.f32.mrb[12].mxu0 }
  0xff   : > { %v1018_v55 = vpop.eup %1017  ;;  %737 = vst [vmem:[%s1162_s25 + $0x38] sm:$0xff] %v1016_v54  ;;  %1039 = vtanh.f32 %v927_v56  ;;  %v943_v58 = vpop.f32.mrb[12].mxu1 }
 0x100   : > { %v1020_v57 = vpop.eup %1019  ;;  %753 = vst [vmem:[%s1162_s25 + $0xb8] sm:$0xff] %v1018_v55  ;;  %v520_v59 = vpop.f32.mrb[13].mxu0  ;;  %1041 = vtanh.f32 %v943_v58 }
 0x101   : > { %v1022_v60 = vpop.eup %1021  ;;  %735 = vst [vmem:[%s1162_s25 + $0x28] sm:$0xff] %v1020_v57  ;;  %v584_v61 = vpop.f32.mrb[13].mxu1  ;;  %1043 = vtanh.f32 %v520_v59 }
 0x102   : > { %v928_v62 = vpop.f32.mrb[14].mxu0  ;;  %v1024_v63 = vpop.eup %1023  ;;  %751 = vst [vmem:[%s1162_s25 + $0xa8] sm:$0xff] %v1022_v60  ;;  %1045 = vtanh.f32 %v584_v61 }
 0x103   : > { %v944_v0 = vpop.f32.mrb[14].mxu1  ;;  %v523_v1 = vpop.f32.mrb[15].mxu0  ;;  %740 = vst [vmem:[%s1162_s25 + $0x50] sm:$0xff] %v1024_v63  ;;  %1047 = vtanh.f32 %v928_v62 }
 0x104   : > { %v1026_v2 = vpop.eup %1025  ;;  %v587_v3 = vpop.f32.mrb[15].mxu1  ;;  %1049 = vtanh.f32 %v944_v0 }
 0x105   : > { %v1028_v4 = vpop.eup %1027  ;;  %756 = vst [vmem:[%s1162_s25 + $0xd0] sm:$0xff] %v1026_v2  ;;  %1051 = vtanh.f32 %v523_v1 }
 0x106   : > { %v1030_v5 = vpop.eup %1029  ;;  %738 = vst [vmem:[%s1162_s25 + $0x40] sm:$0xff] %v1028_v4  ;;  %1053 = vtanh.f32 %v587_v3 }
 0x107   : > { %v1032_v6 = vpop.eup %1031  ;;  %754 = vst [vmem:[%s1162_s25 + $0xc0] sm:$0xff] %v1030_v5 }
 0x108   : > { %v1034_v7 = vpop.eup %1033  ;;  %741 = vst [vmem:[%s1162_s25 + $0x58] sm:$0xff] %v1032_v6 }
 0x109   : > { %v1036_v8 = vpop.eup %1035  ;;  %757 = vst [vmem:[%s1162_s25 + $0xd8] sm:$0xff] %v1034_v7 }
 0x10a   : > { %v1038_v9 = vpop.eup %1037  ;;  %739 = vst [vmem:[%s1162_s25 + $0x48] sm:$0xff] %v1036_v8 }
 0x10b   : > { %v1040_v10 = vpop.eup %1039  ;;  %755 = vst [vmem:[%s1162_s25 + $0xc8] sm:$0xff] %v1038_v9 }
 0x10c   : > { %v1042_v11 = vpop.eup %1041  ;;  %744 = vst [vmem:[%s1162_s25 + $0x70] sm:$0xff] %v1040_v10 }
 0x10d   : > { %v1044_v12 = vpop.eup %1043  ;;  %760 = vst [vmem:[%s1162_s25 + $0xf0] sm:$0xff] %v1042_v11 }
 0x10e   : > { %v1046_v13 = vpop.eup %1045  ;;  %742 = vst [vmem:[%s1162_s25 + $0x60] sm:$0xff] %v1044_v12 }
 0x10f   : > { %v1048_v14 = vpop.eup %1047  ;;  %758 = vst [vmem:[%s1162_s25 + $0xe0] sm:$0xff] %v1046_v13 }
 0x110   : > { %v1050_v15 = vpop.eup %1049  ;;  %745 = vst [vmem:[%s1162_s25 + $0x78] sm:$0xff] %v1048_v14 }
 0x111   : > { %v1052_v16 = vpop.eup %1051  ;;  %761 = vst [vmem:[%s1162_s25 + $0xf8] sm:$0xff] %v1050_v15 }
 0x112   : > { %v1054_v17 = vpop.eup %1053  ;;  %743 = vst [vmem:[%s1162_s25 + $0x68] sm:$0xff] %v1052_v16 }
 0x113   : > { %759 = vst [vmem:[%s1162_s25 + $0xe8] sm:$0xff] %v1054_v17 }
 0x114 PF: > { %s12_s11 = sadd.s32 1, %s1077_s11   ;;  %s1208_s9 = smov %s1073_s10 }
 0x115   : > { %p9_p5 = scmp.ge.s32.totalorder %s12_s11, 10   ;;  %s1209_s10 = smov %s1211_s12 }
 0x117   :  { %11 = sbr.rel (!%p9_p5) target bundleno = 2 (0x2), region = 69 }

</bundles_post_ra>
